<compile_context>
chip_gen: v5e
topology: v5e:2x2
jax: 0.10.0
libtpu: 0.0.40
codegen_flags: <defaults>
</compile_context>

<pallas_src>
import functools

import jax
import jax.numpy as jnp
import numpy as np
from jax.experimental import pallas as pl
from jax.experimental.pallas import tpu as pltpu

EPS = 1e-5
NEG_SLOPE = 0.1
FOLD = 2            # rows of H folded into the lane axis (-> 128-lane slabs)
TARGET_ROWS = 256   # aim for ~256 MXU rows (M) per grid step


def _leaky_relu(x):
    return jnp.where(x > 0, x, NEG_SLOPE * x)


def _row_stats(vals):
    """Per-lane [sum; sum_of_squares] over the row axis of an (R, L) f32 slab."""
    return jnp.concatenate(
        [jnp.sum(vals, axis=0, keepdims=True),
         jnp.sum(vals * vals, axis=0, keepdims=True)], axis=0)


def _conv1(x_ref, w1_ref):
    # (R, 2W*Cin) bf16 @ (2W*Cin, 2W*P0) bf16 -> (R, 2W*P0) f32 on the MXU.
    return jnp.dot(x_ref[...], w1_ref[...], preferred_element_type=jnp.float32)


def _conv2(h1, m_ref, rows_per_image):
    """3x3 conv (padding=1) on the row-pair-folded layout.

    h1:    (R, 2W*P0) f32, R = B * (H/2) super-rows (B whole images).
    m_ref: (3, 2W*P0, 2W*P1) bf16 banded matrices for super-row taps t=-1,0,+1.
           W zero-padding and the intra-super-row (2s <-> 2s+1) coupling are
           encoded in the band structure; H zero-padding is the row mask below.
    """
    h1b = h1.astype(jnp.bfloat16)                                      # cast once
    up = jnp.dot(h1b, m_ref[0], preferred_element_type=jnp.float32)    # t = -1
    mid = jnp.dot(h1b, m_ref[1], preferred_element_type=jnp.float32)   # t =  0
    dn = jnp.dot(h1b, m_ref[2], preferred_element_type=jnp.float32)    # t = +1
    r, l = mid.shape
    zero = jnp.zeros((1, l), jnp.float32)
    # shift(h1, t) @ M_t == shift(h1 @ M_t, t): shift the narrower f32 outputs.
    from_above = jnp.concatenate([zero, up[:-1, :]], axis=0)   # row s <- up[s-1]
    from_below = jnp.concatenate([dn[1:, :], zero], axis=0)    # row s <- dn[s+1]
    sr = jax.lax.broadcasted_iota(jnp.int32, (r, 1), 0) % rows_per_image
    return (mid
            + jnp.where(sr == 0, 0.0, from_above)
            + jnp.where(sr == rows_per_image - 1, 0.0, from_below))


# ----------------------------------------------------------------------------
# Kernels
# ----------------------------------------------------------------------------
def stats1_kernel(x_ref, w1_ref, s_ref):
    s_ref[0] = _row_stats(_conv1(x_ref, w1_ref))


def stats2_kernel(x_ref, w1_ref, a1_ref, b1_ref, m_ref, s_ref, h2_ref, *,
                  rows_per_image):
    h1 = _leaky_relu(_conv1(x_ref, w1_ref) * a1_ref[...] + b1_ref[...])
    h2 = _conv2(h1, m_ref, rows_per_image)
    s_ref[0] = _row_stats(h2)
    h2_ref[...] = h2.astype(h2_ref.dtype)          # materialize for pass 3


def apply_kernel(x_ref, h2_ref, a2_ref, b2_ref, o_ref):
    h2 = h2_ref[...].astype(jnp.float32)
    out = _leaky_relu(h2 * a2_ref[...] + b2_ref[...]) + x_ref[...].astype(jnp.float32)
    o_ref[...] = out.astype(o_ref.dtype)


# ----------------------------------------------------------------------------
# Host-side weight repacking (call ONCE; hoisted out of the forward path)
# ----------------------------------------------------------------------------
def prepare_block_weights(w1, w2, W, fold=FOLD):
    """w1: (Cin, P0); w2: (ky, kx, P0, P1).  Returns
       w1_bd: (fold*W*Cin, fold*W*P0) bf16   block-diagonal kron(I, w1)
       m_all: (3, fold*W*P0, fold*W*P1) bf16 banded conv2 matrices (t=-1,0,+1)."""
    Cin, P0 = w1.shape
    P1 = w2.shape[3]
    Wf = fold * W
    w1_bd = jnp.kron(jnp.eye(Wf, dtype=w1.dtype), w1).astype(jnp.bfloat16)

    # Static one-hot selector (depends on shapes only, built in numpy) so the
    # repack is a single einsum instead of many small scatter ops.
    sel = np.zeros((3, Wf, Wf, 3, 3), np.float32)
    for ti, t in enumerate((-1, 0, 1)):
        for fi in range(Wf):
            for fo in range(Wf):
                dy = fold * t + fi // W - fo // W      # actual-row offset
                dx = fi % W - fo % W                   # actual-col offset
                if -1 <= dy <= 1 and -1 <= dx <= 1:
                    sel[ti, fi, fo, dy + 1, dx + 1] = 1.0
    m_all = jnp.einsum("tioyx,yxpq->tipoq", jnp.asarray(sel), w2)
    m_all = m_all.reshape(3, Wf * P0, Wf * P1).astype(jnp.bfloat16)
    return w1_bd, m_all


def _fold_bn(stats, gamma, beta, count, Wf, C):
    """Per-lane [sum; sumsq] -> lane-tiled (scale, shift) for y = x*scale + shift."""
    s = stats.reshape(2, Wf, C).sum(axis=1)             # (2, C)
    mean = s[0] / count
    var = jnp.maximum(s[1] / count - mean * mean, 0.0)  # training-mode (biased)
    # TODO(synk): switch to centered / Welford accumulation if N*H*W gets large.
    scale = gamma.reshape(-1) * jax.lax.rsqrt(var + EPS)
    shift = beta.reshape(-1) - mean * scale
    return (jnp.tile(scale, Wf)[None, :].astype(jnp.float32),
            jnp.tile(shift, Wf)[None, :].astype(jnp.float32))


def _pick_block_images(n, rows_per_image, target_rows=TARGET_ROWS):
    b = max(1, min(n, target_rows // max(1, rows_per_image)))
    while n % b:                                  # largest divisor of n <= target
        b -= 1
    return b


# ----------------------------------------------------------------------------
# Forward
# ----------------------------------------------------------------------------
@jax.jit
def basic_block_forward(x_nchw, w1_bd, m_all, gamma1, beta1, gamma2, beta2):
    """NCHW in / NCHW out, matching the PyTorch module (training-mode BN).
    The fold/unfold transposes would disappear in an NHWC end-to-end pipeline;
    they are kept only for interface parity with the NCHW module."""
    N, Cin, H, W = x_nchw.shape
    assert H % FOLD == 0, "row-pair fold needs even H"  # TODO(synk): fold=1 fallback
    H2, Wf = H // FOLD, FOLD * W
    P0 = w1_bd.shape[1] // Wf
    P1 = m_all.shape[2] // Wf
    assert P1 == Cin, "residual add requires planes[1] == inplanes"

    L_in, L_mid, L_out = Wf * Cin, Wf * P0, Wf * P1     # 128 / 256 / 128 here
    B = _pick_block_images(N, H2)                        # images per grid step
    R = B * H2                                           # MXU rows per grid step
    G = N // B
    count = float(N * H * W)

    # bf16 activations in HBM (halves bandwidth); f32 math stays inside VMEM.
    x_f = (jnp.transpose(x_nchw, (0, 2, 3, 1))
           .reshape(N * H2, L_in).astype(jnp.bfloat16))

    x_spec = pl.BlockSpec((R, L_in), lambda n: (n, 0))
    w1_spec = pl.BlockSpec((L_in, L_mid), lambda n: (0, 0))
    m_spec = pl.BlockSpec((3, L_mid, L_out), lambda n: (0, 0, 0))
    vmid_spec = pl.BlockSpec((1, L_mid), lambda n: (0, 0))
    vout_spec = pl.BlockSpec((1, L_out), lambda n: (0, 0))
    h2_spec = pl.BlockSpec((R, L_out), lambda n: (n, 0))
    cparams = pltpu.CompilerParams(dimension_semantics=("parallel",))

    # Pass 1: BN1 batch statistics of conv1(x) (per-step partials, reduced in JAX).
    stats1 = pl.pallas_call(
        stats1_kernel,
        grid=(G,),
        in_specs=[x_spec, w1_spec],
        out_specs=pl.BlockSpec((1, 2, L_mid), lambda n: (n, 0, 0)),
        out_shape=jax.ShapeDtypeStruct((G, 2, L_mid), jnp.float32),
        compiler_params=cparams,
    )(x_f, w1_bd)
    a1, b1 = _fold_bn(stats1.sum(axis=0), gamma1, beta1, count, Wf, P0)

    # Pass 2: BN2 statistics AND the conv2 output h2, so pass 3 is elementwise.
    stats2, h2 = pl.pallas_call(
        functools.partial(stats2_kernel, rows_per_image=H2),
        grid=(G,),
        in_specs=[x_spec, w1_spec, vmid_spec, vmid_spec, m_spec],
        out_specs=(pl.BlockSpec((1, 2, L_out), lambda n: (n, 0, 0)), h2_spec),
        out_shape=(jax.ShapeDtypeStruct((G, 2, L_out), jnp.float32),
                   jax.ShapeDtypeStruct((N * H2, L_out), jnp.bfloat16)),
        compiler_params=cparams,
    )(x_f, w1_bd, a1, b1, m_all)
    a2, b2 = _fold_bn(stats2.sum(axis=0), gamma2, beta2, count, Wf, P1)

    # Pass 3: elementwise epilogue BN2 -> LeakyReLU -> +residual (128-lane stores).
    out_f = pl.pallas_call(
        apply_kernel,
        grid=(G,),
        in_specs=[x_spec, h2_spec, vout_spec, vout_spec],
        out_specs=pl.BlockSpec((R, L_out), lambda n: (n, 0)),
        out_shape=jax.ShapeDtypeStruct((N * H2, L_out), jnp.float32),
        compiler_params=cparams,
    )(x_f, h2, a2, b2)

    return jnp.transpose(out_f.reshape(N, H, W, P1), (0, 3, 1, 2))


# ----------------------------------------------------------------------------
# Pure-JAX reference (training-mode BN, f32 everywhere) for verification
# ----------------------------------------------------------------------------
def _bn_lrelu_ref(z, gamma, beta):
    mean = z.mean(axis=(0, 1, 2))
    var = ((z - mean) ** 2).mean(axis=(0, 1, 2))
    zn = (z - mean) * jax.lax.rsqrt(var + EPS) * gamma.reshape(-1) + beta.reshape(-1)
    return jnp.where(zn > 0, zn, NEG_SLOPE * zn)


def reference_forward(x_nchw, w1, gamma1, beta1, w2, gamma2, beta2):
    x = jnp.transpose(x_nchw, (0, 2, 3, 1)).astype(jnp.float32)   # NHWC
    N, H, W, _ = x.shape
    P1 = w2.shape[3]
    h1 = jnp.einsum("nhwc,cp->nhwp", x, w1)
    h1 = _bn_lrelu_ref(h1, gamma1, beta1)
    h1p = jnp.pad(h1, ((0, 0), (1, 1), (1, 1), (0, 0)))
    h2 = jnp.zeros((N, H, W, P1), jnp.float32)
    for ky in range(3):
        for kx in range(3):
            h2 = h2 + jnp.einsum("nhwp,pq->nhwq",
                                 h1p[:, ky:ky + H, kx:kx + W, :], w2[ky, kx])
    h2 = _bn_lrelu_ref(h2, gamma2, beta2)
    return jnp.transpose(h2 + x, (0, 3, 1, 2))


if __name__ == "__main__":
    # BasicBlock(inplanes=4, planes=(8, 4), dim=...) -- dim is unused by forward.
    N, Cin, H, W = 64, 4, 16, 16
    P0, P1 = 8, 4

    key = jax.random.PRNGKey(0)
    kx, kw1, kw2, kg1, kb1, kg2, kb2 = jax.random.split(key, 7)

    x = jax.random.normal(kx, (N, Cin, H, W), dtype=jnp.float32)

    # Parameter layouts vs. PyTorch:
    #   conv1.weight (P0, Cin, 1, 1) -> (Cin, P0)
    #   conv2.weight (P1, P0, 3, 3)  -> (3, 3, P0, P1)   (ky, kx, in, out)
    w1 = jax.random.normal(kw1, (Cin, P0), dtype=jnp.float32) * 0.1
    w2 = jax.random.normal(kw2, (3, 3, P0, P1), dtype=jnp.float32) * 0.1
    gamma1 = 1.0 + 0.1 * jax.random.normal(kg1, (P0,), dtype=jnp.float32)
    beta1 = 0.1 * jax.random.normal(kb1, (P0,), dtype=jnp.float32)
    gamma2 = 1.0 + 0.1 * jax.random.normal(kg2, (P1,), dtype=jnp.float32)
    beta2 = 0.1 * jax.random.normal(kb2, (P1,), dtype=jnp.float32)

    # Weight repacking is done ONCE (hoisted out of the forward path).
    w1_bd, m_all = prepare_block_weights(w1, w2, W)

    out = jax.block_until_ready(
        basic_block_forward(x, w1_bd, m_all, gamma1, beta1, gamma2, beta2))
    assert out.shape == (N, Cin, H, W)

    ref = jax.block_until_ready(
        reference_forward(x, w1, gamma1, beta1, w2, gamma2, beta2))
    # bf16 MXU operands + bf16 HBM activations -> typical max |err| ~1e-2;
    # keep a loose (but still meaningful) tolerance.
    np.testing.assert_allclose(np.asarray(out), np.asarray(ref), atol=0.1, rtol=0.1)

    print("KERNEL_OK")
</pallas_src>

<mosaic_0001>
module attributes {stable_mosaic.version = 11 : i64} {
  func.func @stats1_kernel(%arg0: i32, %arg1: memref<256x128xbf16, #tpu.memory_space<vmem>>, %arg2: memref<128x256xbf16, #tpu.memory_space<vmem>>, %arg3: memref<1x2x256xf32, #tpu.memory_space<vmem>>) attributes {dimension_semantics = [#tpu.dimension_semantics<parallel>], iteration_bounds = array<i64: 2>, scalar_prefetch = 0 : i64, scratch_operands = 0 : i64, tpu.core_type = #tpu.core_type<tc>, window_params = [{transform_indices = @transform_0, window_bounds = array<i64: 256, 128>}, {pipeline_mode = #tpu.pipeline_mode<synchronous>, transform_indices = @transform_1, window_bounds = array<i64: 128, 256>}, {transform_indices = @transform_2, window_bounds = array<i64: 1, 2, 256>}]} {
    %c0 = arith.constant 0 : index
    %c0_0 = arith.constant 0 : index
    %0 = vector.load %arg1[%c0, %c0_0] : memref<256x128xbf16, #tpu.memory_space<vmem>>, vector<256x128xbf16>
    %c0_1 = arith.constant 0 : index
    %c0_2 = arith.constant 0 : index
    %1 = vector.load %arg2[%c0_1, %c0_2] : memref<128x256xbf16, #tpu.memory_space<vmem>>, vector<128x256xbf16>
    %cst = arith.constant dense<0.000000e+00> : vector<256x256xf32>
    %2 = tpu.matmul %0, %1, %cst {dimension_numbers = #tpu.dot_dimension_numbers<[1], [0], [0], [1], [0, 0, 1, 1], [], []>} : vector<256x128xbf16>, vector<128x256xbf16>, vector<256x256xf32> -> vector<256x256xf32>
    %cst_3 = arith.constant dense<0.000000e+00> : vector<256xf32>
    %3 = vector.multi_reduction <add>, %2, %cst_3 [0] : vector<256x256xf32> to vector<256xf32>
    %4 = vector.shape_cast %3 : vector<256xf32> to vector<1x256xf32>
    %5 = arith.mulf %2, %2 : vector<256x256xf32>
    %cst_4 = arith.constant dense<0.000000e+00> : vector<256xf32>
    %6 = vector.multi_reduction <add>, %5, %cst_4 [0] : vector<256x256xf32> to vector<256xf32>
    %7 = vector.shape_cast %6 : vector<256xf32> to vector<1x256xf32>
    %8 = tpu.concatenate %4, %7 in 0 : vector<1x256xf32>, vector<1x256xf32> -> vector<2x256xf32>
    %c0_5 = arith.constant 0 : index
    %c0_6 = arith.constant 0 : index
    %c0_7 = arith.constant 0 : index
    %9 = vector.load %arg3[%c0_5, %c0_6, %c0_7] : memref<1x2x256xf32, #tpu.memory_space<vmem>>, vector<1x2x256xf32>
    %10 = vector.shape_cast %9 : vector<1x2x256xf32> to vector<2x256xf32>
    %11 = vector.shape_cast %8 : vector<2x256xf32> to vector<1x2x256xf32>
    tpu.vector_store %arg3[%c0_5, %c0_6, %c0_7], %11 {strides = array<i32>} : memref<1x2x256xf32, #tpu.memory_space<vmem>>, vector<1x2x256xf32>,
    return
  }
  func.func @transform_0(%arg0: i32) -> (i32, i32) {
    %c0_i32 = arith.constant 0 : i32
    %c0_i32_0 = arith.constant 0 : i32
    return %arg0, %c0_i32 : i32, i32
  }
  func.func @transform_1(%arg0: i32) -> (i32, i32) {
    %c0_i32 = arith.constant 0 : i32
    %c0_i32_0 = arith.constant 0 : i32
    %c0_i32_1 = arith.constant 0 : i32
    return %c0_i32, %c0_i32_0 : i32, i32
  }
  func.func @transform_2(%arg0: i32) -> (i32, i32, i32) {
    %c0_i32 = arith.constant 0 : i32
    %c0_i32_0 = arith.constant 0 : i32
    %c0_i32_1 = arith.constant 0 : i32
    return %arg0, %c0_i32, %c0_i32_0 : i32, i32, i32
  }
}

module attributes {stable_mosaic.version = 11 : i64} {
  func.func @stats2_kernel(%arg0: i32, %arg1: memref<256x128xbf16, #tpu.memory_space<vmem>>, %arg2: memref<128x256xbf16, #tpu.memory_space<vmem>>, %arg3: memref<1x256xf32, #tpu.memory_space<vmem>>, %arg4: memref<1x256xf32, #tpu.memory_space<vmem>>, %arg5: memref<3x256x128xbf16, #tpu.memory_space<vmem>>, %arg6: memref<1x2x128xf32, #tpu.memory_space<vmem>>, %arg7: memref<256x128xbf16, #tpu.memory_space<vmem>>) attributes {dimension_semantics = [#tpu.dimension_semantics<parallel>], iteration_bounds = array<i64: 2>, scalar_prefetch = 0 : i64, scratch_operands = 0 : i64, tpu.core_type = #tpu.core_type<tc>, window_params = [{transform_indices = @transform_0, window_bounds = array<i64: 256, 128>}, {pipeline_mode = #tpu.pipeline_mode<synchronous>, transform_indices = @transform_1, window_bounds = array<i64: 128, 256>}, {pipeline_mode = #tpu.pipeline_mode<synchronous>, transform_indices = @transform_2, window_bounds = array<i64: 1, 256>}, {pipeline_mode = #tpu.pipeline_mode<synchronous>, transform_indices = @transform_3, window_bounds = array<i64: 1, 256>}, {pipeline_mode = #tpu.pipeline_mode<synchronous>, transform_indices = @transform_4, window_bounds = array<i64: 3, 256, 128>}, {transform_indices = @transform_5, window_bounds = array<i64: 1, 2, 128>}, {transform_indices = @transform_6, window_bounds = array<i64: 256, 128>}]} {
    %c0 = arith.constant 0 : index
    %c0_0 = arith.constant 0 : index
    %0 = vector.load %arg1[%c0, %c0_0] : memref<256x128xbf16, #tpu.memory_space<vmem>>, vector<256x128xbf16>
    %c0_1 = arith.constant 0 : index
    %c0_2 = arith.constant 0 : index
    %1 = vector.load %arg2[%c0_1, %c0_2] : memref<128x256xbf16, #tpu.memory_space<vmem>>, vector<128x256xbf16>
    %cst = arith.constant dense<0.000000e+00> : vector<256x256xf32>
    %2 = tpu.matmul %0, %1, %cst {dimension_numbers = #tpu.dot_dimension_numbers<[1], [0], [0], [1], [0, 0, 1, 1], [], []>} : vector<256x128xbf16>, vector<128x256xbf16>, vector<256x256xf32> -> vector<256x256xf32>
    %c0_3 = arith.constant 0 : index
    %c0_4 = arith.constant 0 : index
    %3 = vector.load %arg3[%c0_3, %c0_4] : memref<1x256xf32, #tpu.memory_space<vmem>>, vector<1x256xf32>
    %4 = vector.broadcast %3 : vector<1x256xf32> to vector<256x256xf32>
    %5 = arith.mulf %2, %4 : vector<256x256xf32>
    %c0_5 = arith.constant 0 : index
    %c0_6 = arith.constant 0 : index
    %6 = vector.load %arg4[%c0_5, %c0_6] : memref<1x256xf32, #tpu.memory_space<vmem>>, vector<1x256xf32>
    %7 = vector.broadcast %6 : vector<1x256xf32> to vector<256x256xf32>
    %8 = arith.addf %5, %7 : vector<256x256xf32>
    %cst_7 = arith.constant 0.000000e+00 : f32
    %9 = vector.broadcast %cst_7 : f32 to vector<256x256xf32>
    %10 = arith.cmpf ogt, %8, %9 : vector<256x256xf32>
    %cst_8 = arith.constant 1.000000e-01 : f32
    %11 = vector.broadcast %cst_8 : f32 to vector<256x256xf32>
    %12 = arith.mulf %11, %8 : vector<256x256xf32>
    %13 = arith.select %10, %8, %12 : vector<256x256xi1>, vector<256x256xf32>
    %14 = arith.truncf %13 : vector<256x256xf32> to vector<256x256xbf16>
    %c0_9 = arith.constant 0 : index
    %c0_10 = arith.constant 0 : index
    %c0_11 = arith.constant 0 : index
    %15 = vector.load %arg5[%c0_9, %c0_10, %c0_11] : memref<3x256x128xbf16, #tpu.memory_space<vmem>>, vector<1x256x128xbf16>
    %16 = vector.shape_cast %15 : vector<1x256x128xbf16> to vector<256x128xbf16>
    %cst_12 = arith.constant dense<0.000000e+00> : vector<256x128xf32>
    %17 = tpu.matmul %14, %16, %cst_12 {dimension_numbers = #tpu.dot_dimension_numbers<[1], [0], [0], [1], [0, 0, 1, 1], [], []>} : vector<256x256xbf16>, vector<256x128xbf16>, vector<256x128xf32> -> vector<256x128xf32>
    %c1 = arith.constant 1 : index
    %c0_13 = arith.constant 0 : index
    %c0_14 = arith.constant 0 : index
    %18 = vector.load %arg5[%c1, %c0_13, %c0_14] : memref<3x256x128xbf16, #tpu.memory_space<vmem>>, vector<1x256x128xbf16>
    %19 = vector.shape_cast %18 : vector<1x256x128xbf16> to vector<256x128xbf16>
    %cst_15 = arith.constant dense<0.000000e+00> : vector<256x128xf32>
    %20 = tpu.matmul %14, %19, %cst_15 {dimension_numbers = #tpu.dot_dimension_numbers<[1], [0], [0], [1], [0, 0, 1, 1], [], []>} : vector<256x256xbf16>, vector<256x128xbf16>, vector<256x128xf32> -> vector<256x128xf32>
    %c2 = arith.constant 2 : index
    %c0_16 = arith.constant 0 : index
    %c0_17 = arith.constant 0 : index
    %21 = vector.load %arg5[%c2, %c0_16, %c0_17] : memref<3x256x128xbf16, #tpu.memory_space<vmem>>, vector<1x256x128xbf16>
    %22 = vector.shape_cast %21 : vector<1x256x128xbf16> to vector<256x128xbf16>
    %cst_18 = arith.constant dense<0.000000e+00> : vector<256x128xf32>
    %23 = tpu.matmul %14, %22, %cst_18 {dimension_numbers = #tpu.dot_dimension_numbers<[1], [0], [0], [1], [0, 0, 1, 1], [], []>} : vector<256x256xbf16>, vector<256x128xbf16>, vector<256x128xf32> -> vector<256x128xf32>
    %cst_19 = arith.constant 0.000000e+00 : f32
    %24 = vector.broadcast %cst_19 : f32 to vector<1x128xf32>
    %25 = vector.extract_strided_slice %17 {offsets = [0, 0], sizes = [255, 128], strides = [1, 1]} : vector<256x128xf32> to vector<255x128xf32>
    %26 = tpu.concatenate %24, %25 in 0 : vector<1x128xf32>, vector<255x128xf32> -> vector<256x128xf32>
    %27 = vector.extract_strided_slice %23 {offsets = [1, 0], sizes = [255, 128], strides = [1, 1]} : vector<256x128xf32> to vector<255x128xf32>
    %28 = tpu.concatenate %27, %24 in 0 : vector<255x128xf32>, vector<1x128xf32> -> vector<256x128xf32>
    %29 = tpu.iota {dimensions = array<i32: 0>} : vector<256x1xi32>
    %c8_i32 = arith.constant 8 : i32
    %c0_i32 = arith.constant 0 : i32
    %30 = arith.cmpi eq, %c8_i32, %c0_i32 : i32
    %c1_i32 = arith.constant 1 : i32
    %31 = arith.select %30, %c1_i32, %c8_i32 : i32
    %32 = vector.broadcast %31 : i32 to vector<256x1xi32>
    %33 = arith.remsi %29, %32 : vector<256x1xi32>
    %c0_i32_20 = arith.constant 0 : i32
    %34 = vector.broadcast %c0_i32_20 : i32 to vector<256x1xi32>
    %35 = arith.cmpi ne, %33, %34 : vector<256x1xi32>
    %c0_i32_21 = arith.constant 0 : i32
    %36 = vector.broadcast %c0_i32_21 : i32 to vector<256x1xi32>
    %37 = arith.cmpi slt, %33, %36 : vector<256x1xi32>
    %c0_i32_22 = arith.constant 0 : i32
    %38 = arith.cmpi slt, %31, %c0_i32_22 : i32
    %39 = vector.broadcast %38 : i1 to vector<256x1xi1>
    %40 = vector.broadcast %39 : vector<256x1xi1> to vector<256x1xi1>
    %41 = arith.xori %37, %40 : vector<256x1xi1>
    %42 = arith.andi %41, %35 : vector<256x1xi1>
    %43 = vector.broadcast %31 : i32 to vector<256x1xi32>
    %44 = arith.addi %33, %43 : vector<256x1xi32>
    %45 = arith.select %42, %44, %33 : vector<256x1xi1>, vector<256x1xi32>
    %c0_i32_23 = arith.constant 0 : i32
    %46 = vector.broadcast %c0_i32_23 : i32 to vector<256x1xi32>
    %47 = arith.cmpi eq, %45, %46 : vector<256x1xi32>
    %cst_24 = arith.constant 0.000000e+00 : f32
    %48 = vector.shape_cast %47 : vector<256x1xi1> to vector<256x1xi1>
    %49 = vector.broadcast %48 : vector<256x1xi1> to vector<256x128xi1>
    %50 = vector.broadcast %cst_24 : f32 to vector<256x128xf32>
    %51 = arith.select %49, %50, %26 : vector<256x128xi1>, vector<256x128xf32>
    %52 = arith.addf %20, %51 : vector<256x128xf32>
    %c7_i32 = arith.constant 7 : i32
    %53 = vector.broadcast %c7_i32 : i32 to vector<256x1xi32>
    %54 = arith.cmpi eq, %45, %53 : vector<256x1xi32>
    %cst_25 = arith.constant 0.000000e+00 : f32
    %55 = vector.shape_cast %54 : vector<256x1xi1> to vector<256x1xi1>
    %56 = vector.broadcast %55 : vector<256x1xi1> to vector<256x128xi1>
    %57 = vector.broadcast %cst_25 : f32 to vector<256x128xf32>
    %58 = arith.select %56, %57, %28 : vector<256x128xi1>, vector<256x128xf32>
    %59 = arith.addf %52, %58 : vector<256x128xf32>
    %cst_26 = arith.constant dense<0.000000e+00> : vector<128xf32>
    %60 = vector.multi_reduction <add>, %59, %cst_26 [0] : vector<256x128xf32> to vector<128xf32>
    %61 = vector.shape_cast %60 : vector<128xf32> to vector<1x128xf32>
    %62 = arith.mulf %59, %59 : vector<256x128xf32>
    %cst_27 = arith.constant dense<0.000000e+00> : vector<128xf32>
    %63 = vector.multi_reduction <add>, %62, %cst_27 [0] : vector<256x128xf32> to vector<128xf32>
    %64 = vector.shape_cast %63 : vector<128xf32> to vector<1x128xf32>
    %65 = tpu.concatenate %61, %64 in 0 : vector<1x128xf32>, vector<1x128xf32> -> vector<2x128xf32>
    %c0_28 = arith.constant 0 : index
    %c0_29 = arith.constant 0 : index
    %c0_30 = arith.constant 0 : index
    %66 = vector.load %arg6[%c0_28, %c0_29, %c0_30] : memref<1x2x128xf32, #tpu.memory_space<vmem>>, vector<1x2x128xf32>
    %67 = vector.shape_cast %66 : vector<1x2x128xf32> to vector<2x128xf32>
    %68 = vector.shape_cast %65 : vector<2x128xf32> to vector<1x2x128xf32>
    tpu.vector_store %arg6[%c0_28, %c0_29, %c0_30], %68 {strides = array<i32>} : memref<1x2x128xf32, #tpu.memory_space<vmem>>, vector<1x2x128xf32>,
    %69 = arith.truncf %59 : vector<256x128xf32> to vector<256x128xbf16>
    %c0_31 = arith.constant 0 : index
    %c0_32 = arith.constant 0 : index
    %70 = vector.load %arg7[%c0_31, %c0_32] : memref<256x128xbf16, #tpu.memory_space<vmem>>, vector<256x128xbf16>
    tpu.vector_store %arg7[%c0_31, %c0_32], %69 {strides = array<i32>} : memref<256x128xbf16, #tpu.memory_space<vmem>>, vector<256x128xbf16>,
    return
  }
  func.func @transform_0(%arg0: i32) -> (i32, i32) {
    %c0_i32 = arith.constant 0 : i32
    %c0_i32_0 = arith.constant 0 : i32
    return %arg0, %c0_i32 : i32, i32
  }
  func.func @transform_1(%arg0: i32) -> (i32, i32) {
    %c0_i32 = arith.constant 0 : i32
    %c0_i32_0 = arith.constant 0 : i32
    %c0_i32_1 = arith.constant 0 : i32
    return %c0_i32, %c0_i32_0 : i32, i32
  }
  func.func @transform_2(%arg0: i32) -> (i32, i32) {
    %c0_i32 = arith.constant 0 : i32
    %c0_i32_0 = arith.constant 0 : i32
    %c0_i32_1 = arith.constant 0 : i32
    return %c0_i32, %c0_i32_0 : i32, i32
  }
  func.func @transform_3(%arg0: i32) -> (i32, i32) {
    %c0_i32 = arith.constant 0 : i32
    %c0_i32_0 = arith.constant 0 : i32
    %c0_i32_1 = arith.constant 0 : i32
    return %c0_i32, %c0_i32_0 : i32, i32
  }
  func.func @transform_4(%arg0: i32) -> (i32, i32, i32) {
    %c0_i32 = arith.constant 0 : i32
    %c0_i32_0 = arith.constant 0 : i32
    %c0_i32_1 = arith.constant 0 : i32
    %c0_i32_2 = arith.constant 0 : i32
    return %c0_i32, %c0_i32_0, %c0_i32_1 : i32, i32, i32
  }
  func.func @transform_5(%arg0: i32) -> (i32, i32, i32) {
    %c0_i32 = arith.constant 0 : i32
    %c0_i32_0 = arith.constant 0 : i32
    %c0_i32_1 = arith.constant 0 : i32
    return %arg0, %c0_i32, %c0_i32_0 : i32, i32, i32
  }
  func.func @transform_6(%arg0: i32) -> (i32, i32) {
    %c0_i32 = arith.constant 0 : i32
    %c0_i32_0 = arith.constant 0 : i32
    return %arg0, %c0_i32 : i32, i32
  }
}

module attributes {stable_mosaic.version = 11 : i64} {
  func.func @apply_kernel(%arg0: i32, %arg1: memref<256x128xbf16, #tpu.memory_space<vmem>>, %arg2: memref<256x128xbf16, #tpu.memory_space<vmem>>, %arg3: memref<1x128xf32, #tpu.memory_space<vmem>>, %arg4: memref<1x128xf32, #tpu.memory_space<vmem>>, %arg5: memref<256x128xf32, #tpu.memory_space<vmem>>) attributes {dimension_semantics = [#tpu.dimension_semantics<parallel>], iteration_bounds = array<i64: 2>, scalar_prefetch = 0 : i64, scratch_operands = 0 : i64, tpu.core_type = #tpu.core_type<tc>, window_params = [{transform_indices = @transform_0, window_bounds = array<i64: 256, 128>}, {transform_indices = @transform_1, window_bounds = array<i64: 256, 128>}, {pipeline_mode = #tpu.pipeline_mode<synchronous>, transform_indices = @transform_2, window_bounds = array<i64: 1, 128>}, {pipeline_mode = #tpu.pipeline_mode<synchronous>, transform_indices = @transform_3, window_bounds = array<i64: 1, 128>}, {transform_indices = @transform_4, window_bounds = array<i64: 256, 128>}]} {
    %c0 = arith.constant 0 : index
    %c0_0 = arith.constant 0 : index
    %0 = vector.load %arg2[%c0, %c0_0] : memref<256x128xbf16, #tpu.memory_space<vmem>>, vector<256x128xbf16>
    %1 = arith.extf %0 : vector<256x128xbf16> to vector<256x128xf32>
    %c0_1 = arith.constant 0 : index
    %c0_2 = arith.constant 0 : index
    %2 = vector.load %arg3[%c0_1, %c0_2] : memref<1x128xf32, #tpu.memory_space<vmem>>, vector<1x128xf32>
    %3 = vector.broadcast %2 : vector<1x128xf32> to vector<256x128xf32>
    %4 = arith.mulf %1, %3 : vector<256x128xf32>
    %c0_3 = arith.constant 0 : index
    %c0_4 = arith.constant 0 : index
    %5 = vector.load %arg4[%c0_3, %c0_4] : memref<1x128xf32, #tpu.memory_space<vmem>>, vector<1x128xf32>
    %6 = vector.broadcast %5 : vector<1x128xf32> to vector<256x128xf32>
    %7 = arith.addf %4, %6 : vector<256x128xf32>
    %cst = arith.constant 0.000000e+00 : f32
    %8 = vector.broadcast %cst : f32 to vector<256x128xf32>
    %9 = arith.cmpf ogt, %7, %8 : vector<256x128xf32>
    %cst_5 = arith.constant 1.000000e-01 : f32
    %10 = vector.broadcast %cst_5 : f32 to vector<256x128xf32>
    %11 = arith.mulf %10, %7 : vector<256x128xf32>
    %12 = arith.select %9, %7, %11 : vector<256x128xi1>, vector<256x128xf32>
    %c0_6 = arith.constant 0 : index
    %c0_7 = arith.constant 0 : index
    %13 = vector.load %arg1[%c0_6, %c0_7] : memref<256x128xbf16, #tpu.memory_space<vmem>>, vector<256x128xbf16>
    %14 = arith.extf %13 : vector<256x128xbf16> to vector<256x128xf32>
    %15 = arith.addf %12, %14 : vector<256x128xf32>
    %c0_8 = arith.constant 0 : index
    %c0_9 = arith.constant 0 : index
    %16 = vector.load %arg5[%c0_8, %c0_9] : memref<256x128xf32, #tpu.memory_space<vmem>>, vector<256x128xf32>
    tpu.vector_store %arg5[%c0_8, %c0_9], %15 {strides = array<i32>} : memref<256x128xf32, #tpu.memory_space<vmem>>, vector<256x128xf32>,
    return
  }
  func.func @transform_0(%arg0: i32) -> (i32, i32) {
    %c0_i32 = arith.constant 0 : i32
    %c0_i32_0 = arith.constant 0 : i32
    return %arg0, %c0_i32 : i32, i32
  }
  func.func @transform_1(%arg0: i32) -> (i32, i32) {
    %c0_i32 = arith.constant 0 : i32
    %c0_i32_0 = arith.constant 0 : i32
    return %arg0, %c0_i32 : i32, i32
  }
  func.func @transform_2(%arg0: i32) -> (i32, i32) {
    %c0_i32 = arith.constant 0 : i32
    %c0_i32_0 = arith.constant 0 : i32
    %c0_i32_1 = arith.constant 0 : i32
    return %c0_i32, %c0_i32_0 : i32, i32
  }
  func.func @transform_3(%arg0: i32) -> (i32, i32) {
    %c0_i32 = arith.constant 0 : i32
    %c0_i32_0 = arith.constant 0 : i32
    %c0_i32_1 = arith.constant 0 : i32
    return %c0_i32, %c0_i32_0 : i32, i32
  }
  func.func @transform_4(%arg0: i32) -> (i32, i32) {
    %c0_i32 = arith.constant 0 : i32
    %c0_i32_0 = arith.constant 0 : i32
    return %arg0, %c0_i32 : i32, i32
  }
}

</mosaic_0001>

<bundles_post_ra>
// kernel: tile.28
= control target key start
LH: loop header
LB: loop body
LE: loop exit
PB: predicated region body
PF: predicated region fallthrough
CT: control target
= control target key end

     0   :  { %s40_s0 = inlined_call_operand.vmem [shape: f32[8], index: 0, kind: input, shape index: {}]   ;;  %s41_s1 = inlined_call_operand.vmem [shape: f32[32,8], index: 1, kind: output, shape index: {}]  }
   0x1   :  { %v4_v0 = vld [vmem:[%s40_s0] ss:$0 sm:$0xff] }
   0x2   :  { %5 = vst [vmem:[%s41_s1] sm:$0xff] %v4_v0 }
   0x3   :  { %12 = vst [vmem:[%s41_s1 + $0x8] sm:$0xff] %v4_v0 }
   0x4   :  { %13 = vst [vmem:[%s41_s1 + $0x10] sm:$0xff] %v4_v0 }
   0x5   :  { %14 = vst [vmem:[%s41_s1 + $0x18] sm:$0xff] %v4_v0 }

// kernel: tile.29
= control target key start
LH: loop header
LB: loop body
LE: loop exit
PB: predicated region body
PF: predicated region fallthrough
CT: control target
= control target key end

     0   :  { %s7_s6 = smov 3  ;;  %s21_s9 = smov 3  ;;  %vm4_vm0 = vcmask 64512   ;;  %vm11_vm1 = vcmask 1048512   ;;  %vm18_vm2 = vcmask 982912   ;;  %vm25_vm3 = vcmask 917312   ;;  %s233_s0 = inlined_call_operand.vmem [shape: f32[32,8], index: 0, kind: input, shape index: {}]   ;;  %s234_s1 = inlined_call_operand.vmem [shape: f32[1,256], index: 1, kind: output, shape index: {}]  }
   0x1   :  { %v123_v0 = vld [vmem:[%s233_s0 + $0xf] ss:$16 sm:%s7_s6]   ;;  %s154_s10 = smov 120   ;;  %v125_v1 = vld [vmem:[%s233_s0 + $0xd] ss:$16 sm:%s21_s9]   ;;  %s155_s13 = smov 104  }
   0x2   :  { %9 = vrot.lane.b32.xlu0 %v123_v0, %s154_s10  ;;  %23 = vrot.lane.b32.xlu1 %v125_v1, %s155_s13  ;;  %s14_s14 = smov 3  ;;  %s28_s15 = smov 3  ;;  %vm32_vm4 = vcmask 851712   ;;  %vm39_vm5 = vcmask 786112   ;;  %vm46_vm6 = vcmask 720512   ;;  %vm53_vm7 = vcmask 654912  }
   0x3   :  { %v124_v2 = vld [vmem:[%s233_s0 + $0xe] ss:$16 sm:%s14_s14]   ;;  %v126_v3 = vld [vmem:[%s233_s0 + $0xc] ss:$16 sm:%s28_s15]   ;;  %s35_s20 = smov 3  ;;  %s156_s23 = smov 112  }
   0x4   :  { %v127_v4 = vld [vmem:[%s233_s0 + $0xb] ss:$16 sm:%s35_s20]   ;;  %s157_s24 = smov 88   ;;  %s158_s25 = smov 96   ;;  %vm60_vm8 = vcmask 589312   ;;  %vm67_vm9 = vcmask 523712  }
   0x5   :  { %37 = vrot.lane.b32.xlu2 %v127_v4, %s157_s24  ;;  %s49_s26 = smov 3  ;;  %s42_s27 = smov 3  ;;  %vm74_vm10 = vcmask 458112   ;;  %vm81_vm11 = vcmask 392512   ;;  %vm88_vm12 = vcmask 326912   ;;  %vm95_vm13 = vcmask 261312  }
   0x6   :  { %s56_s28 = smov 3  ;;  %v129_v5 = vld [vmem:[%s233_s0 + $0x9] ss:$16 sm:%s49_s26]   ;;  %v128_v6 = vld [vmem:[%s233_s0 + $0xa] ss:$16 sm:%s42_s27]   ;;  %s159_s6 = smov 72  }
   0x7   :  { %v130_v7 = vld [vmem:[%s233_s0 + $0x8] ss:$16 sm:%s56_s28]   ;;  %s160_s7 = smov 80   ;;  %s161_s8 = smov 64   ;;  %vm102_vm14 = vcmask 195712   ;;  %vm109_vm15 = vcmask 130112  }
   0x8   :  { %s70_s9 = smov 3  ;;  %s63_s10 = smov 3 }
   0x9   :  { %s77_s11 = smov 3  ;;  %v132_v8 = vld [vmem:[%s233_s0 + $0x6] ss:$16 sm:%s70_s9]   ;;  %v131_v9 = vld [vmem:[%s233_s0 + $0x7] ss:$16 sm:%s63_s10]   ;;  %s162_s18 = smov 48  }
   0xa   :  { %16 = vrot.lane.b32.xlu0 %v124_v2, %s156_s23  ;;  %30 = vrot.lane.b32.xlu1 %v126_v3, %s158_s25  ;;  %v133_v10 = vld [vmem:[%s233_s0 + $0x5] ss:$16 sm:%s77_s11]   ;;  %s163_s19 = smov 56   ;;  %s164_s20 = smov 40  }
   0xb   :  { %s91_s21 = smov 3  ;;  %s84_s22 = smov 3 }
   0xc   :  { %s98_s23 = smov 3  ;;  %v135_v11 = vld [vmem:[%s233_s0 + $0x3] ss:$16 sm:%s91_s21]   ;;  %v134_v12 = vld [vmem:[%s233_s0 + $0x4] ss:$16 sm:%s84_s22]   ;;  %s165_s30 = smov 24  }
   0xd   :  { %44 = vrot.lane.b32.xlu2 %v128_v6, %s160_s7  ;;  %v136_v13 = vld [vmem:[%s233_s0 + $0x2] ss:$16 sm:%s98_s23]   ;;  %s166_s2 = smov 32   ;;  %s167_s3 = smov 16  }
   0xe   :  { %s105_s4 = smov 3  ;;  %s168_s7 = smov 8  }
   0xf   :  { %v137_v14 = vld [vmem:[%s233_s0 + $0x1] ss:$16 sm:%s105_s4]  }
  0x12   :  { %51 = vrot.lane.b32.xlu0 %v129_v5, %s159_s6  ;;  %58 = vrot.lane.b32.xlu1 %v130_v7, %s161_s8  ;;  %s2_s8 = smov 3 }
  0x13   :  { %v3_v15 = vld [vmem:[%s233_s0] ss:$16 sm:%s2_s8]  }
  0x14   :  { %5 = vst.msk [vmem:[#allocation0] ss:$8 sm:$0x3] %vm4_vm0, %v3_v15  }
  0x15   :  { %65 = vrot.lane.b32.xlu2 %v131_v9, %s163_s19 }
  0x1a   :  { %72 = vrot.lane.b32.xlu0 %v132_v8, %s162_s18  ;;  %79 = vrot.lane.b32.xlu1 %v133_v10, %s164_s20 }
  0x1d   :  { %86 = vrot.lane.b32.xlu2 %v134_v12, %s166_s2 }
  0x22   :  { %93 = vrot.lane.b32.xlu0 %v135_v11, %s165_s30  ;;  %100 = vrot.lane.b32.xlu1 %v136_v13, %s167_s3 }
  0x25   :  { %107 = vrot.lane.b32.xlu2 %v137_v14, %s168_s7 }
  0x5f   :  { %v38_v16 = vpop.permute.xlu2 %37  }
  0x67   :  { %v45_v17 = vpop.permute.xlu2 %44  }
  0x6f   :  { %v66_v19 = vpop.permute.xlu2 %65  }
  0x74   :  { %v10_v18 = vpop.permute.xlu0 %9   ;;  %v24_v20 = vpop.permute.xlu1 %23  }
  0x75   :  { %12 = vst.msk [vmem:[#allocation0] ss:$8 sm:$0x3] %vm11_vm1, %v10_v18  }
  0x77   :  { %v87_v22 = vpop.permute.xlu2 %86  }
  0x7c   :  { %v17_v21 = vpop.permute.xlu0 %16   ;;  %v31_v23 = vpop.permute.xlu1 %30  }
  0x7d   :  { %19 = vst.msk [vmem:[#allocation0] ss:$8 sm:$0x3] %vm18_vm2, %v17_v21  }
  0x7e   :  { %26 = vst.msk [vmem:[#allocation0] ss:$8 sm:$0x3] %vm25_vm3, %v24_v20  }
  0x7f   :  { %33 = vst.msk [vmem:[#allocation0] ss:$8 sm:$0x3] %vm32_vm4, %v31_v23   ;;  %v108_v25 = vpop.permute.xlu2 %107  }
  0x80   :  { %40 = vst.msk [vmem:[#allocation0] ss:$8 sm:$0x3] %vm39_vm5, %v38_v16  }
  0x81   :  { %47 = vst.msk [vmem:[#allocation0] ss:$8 sm:$0x3] %vm46_vm6, %v45_v17  }
  0x84   :  { %v52_v24 = vpop.permute.xlu0 %51   ;;  %v59_v26 = vpop.permute.xlu1 %58  }
  0x85   :  { %54 = vst.msk [vmem:[#allocation0] ss:$8 sm:$0x3] %vm53_vm7, %v52_v24  }
  0x86   :  { %61 = vst.msk [vmem:[#allocation0] ss:$8 sm:$0x3] %vm60_vm8, %v59_v26  }
  0x87   :  { %68 = vst.msk [vmem:[#allocation0] ss:$8 sm:$0x3] %vm67_vm9, %v66_v19  }
  0x8c   :  { %v73_v27 = vpop.permute.xlu0 %72   ;;  %v80_v28 = vpop.permute.xlu1 %79  }
  0x8d   :  { %75 = vst.msk [vmem:[#allocation0] ss:$8 sm:$0x3] %vm74_vm10, %v73_v27  }
  0x8e   :  { %82 = vst.msk [vmem:[#allocation0] ss:$8 sm:$0x3] %vm81_vm11, %v80_v28  }
  0x8f   :  { %89 = vst.msk [vmem:[#allocation0] ss:$8 sm:$0x3] %vm88_vm12, %v87_v22  }
  0x94   :  { %v94_v29 = vpop.permute.xlu0 %93   ;;  %v101_v30 = vpop.permute.xlu1 %100  }
  0x95   :  { %96 = vst.msk [vmem:[#allocation0] ss:$8 sm:$0x3] %vm95_vm13, %v94_v29  }
  0x96   :  { %103 = vst.msk [vmem:[#allocation0] ss:$8 sm:$0x3] %vm102_vm14, %v101_v30  }
  0x97   :  { %110 = vst.msk [vmem:[#allocation0] ss:$8 sm:$0x3] %vm109_vm15, %v108_v25  }
  0x9e   :  { %v113_v31 = vld [vmem:[#allocation0] sm:$0x1]  ;;  %v118_v32 = vld [vmem:[#allocation0 + $0x8] sm:$0x1] }
  0x9f   :  { %116 = vst [vmem:[%s234_s1] sm:$0x1] %v113_v31 }
  0xa0   :  { %138 = vst [vmem:[%s234_s1 + $0x1] sm:$0x1] %v118_v32 }

// kernel: basic_block_forward.3
= control target key start
LH: loop header
LB: loop body
LE: loop exit
PB: predicated region body
PF: predicated region fallthrough
CT: control target
= control target key end

     0   :  { %s1044_s9 = smov 0   ;;  %s1310_s0 = inlined_call_operand.vmem [shape: bf16[512,128], index: 0, kind: input, shape index: {}]   ;;  %s1311_s1 = inlined_call_operand.vmem [shape: bf16[128,256], index: 1, kind: input, shape index: {}]   ;;  %s1312_s2 = inlined_call_operand.vmem [shape: f32[2,2,256], index: 2, kind: output, shape index: {}]  }
   0x1 LB: > { %s1050_s10 = sadd.s32 4294967295, %s1027_s9   ;;  %p829_p0 = scmp.ge.s32.totalorder %s1027_s9, 1  ;;  %s1027_s9 = sphi %s1044_s9, %s12_s9  }
   0x2   : > { %p113_p1 = scmp.lt.s32.totalorder %s1027_s9, 3 }
   0x4   : > { %p114_p2 = pnand %p829_p0, %p113_p1 }
   0x5   : > { %s830_s25 = sshll.u32 (!%p114_p2), %s1050_s10, 5  ;;  %p141_p4 = scmp.lt.s32.totalorder (!%p114_p2), %s1050_s10, 1 }
   0x6   : > { %117 = sbr.rel (%p114_p2) target bundleno = 345 (0x159), region = 28  ;;  %p136_p3 = scmp.lt.s32.totalorder (!%p114_p2), %s830_s25, 63 }
   0xb   : > { %v956_v0 = vld [vmem:[%s1311_s1 + $0x70] sm:$0xf]  ;;  %v996_v1 = vld [vmem:[%s1311_s1 + $0x74] sm:$0xf0]  ;;  %v995_v2 = vld [vmem:[%s1311_s1 + $0x74] sm:$0xf] }
   0xc   : > { %v957_v3 = vor.u32 %v996_v1, %v956_v0  ;;  %v958_v4 = vld [vmem:[%s1311_s1 + $0x78] sm:$0xf0]  ;;  %v948_v5 = vld [vmem:[%s1311_s1 + $0x60] sm:$0xf]  ;;  %v994_v6 = vld [vmem:[%s1311_s1 + $0x64] sm:$0xf0] }
   0xd   : > { %v961_v7 = vor.u32 %v995_v2, %v958_v4  ;;  %v993_v8 = vld [vmem:[%s1311_s1 + $0x64] sm:$0xf]  ;;  %v950_v9 = vld [vmem:[%s1311_s1 + $0x68] sm:$0xf0]  ;;  %v949_v10 = vor.u32 %v994_v6, %v948_v5  ;;  %v940_v12 = vld [vmem:[%s1311_s1 + $0x50] sm:$0xf] }
   0xe   : > { %370 = vmatpush.bf16.msra.mxu0 %v957_v3  ;;  %997 = vmatpush.bf16.msra.mxu2 %v957_v3  ;;  %v953_v11 = vor.u32 %v993_v8, %v950_v9  ;;  %v992_v13 = vld [vmem:[%s1311_s1 + $0x54] sm:$0xf0]  ;;  %v991_v14 = vld [vmem:[%s1311_s1 + $0x54] sm:$0xf]  ;;  %v942_v15 = vld [vmem:[%s1311_s1 + $0x58] sm:$0xf0] }
   0xf   : > { %459 = vmatpush.bf16.msra.mxu1 %v961_v7  ;;  %1005 = vmatpush.bf16.msra.mxu3 %v961_v7  ;;  %v941_v16 = vor.u32 %v992_v13, %v940_v12  ;;  %v945_v17 = vor.u32 %v991_v14, %v942_v15  ;;  %v932_v18 = vld [vmem:[%s1311_s1 + $0x40] sm:$0xf]  ;;  %v990_v19 = vld [vmem:[%s1311_s1 + $0x44] sm:$0xf0]  ;;  %v989_v20 = vld [vmem:[%s1311_s1 + $0x44] sm:$0xf] }
  0x10   : > { %v934_v21 = vld [vmem:[%s1311_s1 + $0x48] sm:$0xf0]  ;;  %v933_v22 = vor.u32 %v990_v19, %v932_v18  ;;  %v924_v24 = vld [vmem:[%s1311_s1 + $0x30] sm:$0xf]  ;;  %v988_v25 = vld [vmem:[%s1311_s1 + $0x34] sm:$0xf0] }
  0x11   : > { %v937_v23 = vor.u32 %v989_v20, %v934_v21  ;;  %v987_v26 = vld [vmem:[%s1311_s1 + $0x34] sm:$0xf]  ;;  %v926_v27 = vld [vmem:[%s1311_s1 + $0x38] sm:$0xf0]  ;;  %v925_v28 = vor.u32 %v988_v25, %v924_v24  ;;  %v916_v30 = vld [vmem:[%s1311_s1 + $0x20] sm:$0xf] }
  0x12   : > { %371 = vmatpush.bf16.msra.mxu0 %v949_v10  ;;  %998 = vmatpush.bf16.msra.mxu2 %v949_v10  ;;  %v929_v29 = vor.u32 %v987_v26, %v926_v27  ;;  %v986_v31 = vld [vmem:[%s1311_s1 + $0x24] sm:$0xf0]  ;;  %v985_v32 = vld [vmem:[%s1311_s1 + $0x24] sm:$0xf]  ;;  %v918_v33 = vld [vmem:[%s1311_s1 + $0x28] sm:$0xf0] }
  0x13   : > { %460 = vmatpush.bf16.msra.mxu1 %v953_v11  ;;  %1006 = vmatpush.bf16.msra.mxu3 %v953_v11  ;;  %v917_v34 = vor.u32 %v986_v31, %v916_v30  ;;  %v921_v35 = vor.u32 %v985_v32, %v918_v33  ;;  %v908_v36 = vld [vmem:[%s1311_s1 + $0x10] sm:$0xf]  ;;  %v984_v37 = vld [vmem:[%s1311_s1 + $0x14] sm:$0xf0]  ;;  %s1314_s25 = smov (!%p136_p3, %s830_s25), 63  ;;  %s1316_s10 = smov (!%p141_p4, %s1050_s10), 1 }
  0x14   : > { %v983_v38 = vld [vmem:[%s1311_s1 + $0x14] sm:$0xf]  ;;  %v910_v39 = vld [vmem:[%s1311_s1 + $0x18] sm:$0xf0]  ;;  %v909_v40 = vor.u32 %v984_v37, %v908_v36  ;;  %v900_v42 = vld [vmem:[%s1311_s1] sm:$0xf] }
  0x15   : > { %v913_v41 = vor.u32 %v983_v38, %v910_v39  ;;  %v982_v43 = vld [vmem:[%s1311_s1 + $0x4] sm:$0xf0]  ;;  %s831_s20 = sshll.u32 %s1314_s25, 2  ;;  %v981_v44 = vld [vmem:[%s1311_s1 + $0x4] sm:$0xf]  ;;  %vm760_vm0 = vcmask 1040384  }
  0x16   : > { %372 = vmatpush.bf16.msra.mxu0 %v941_v16  ;;  %999 = vmatpush.bf16.msra.mxu2 %v941_v16  ;;  %v902_v45 = vld [vmem:[%s1311_s1 + $0x8] sm:$0xf0]  ;;  %v901_v46 = vor.u32 %v982_v43, %v900_v42  ;;  %s1154_s28 = scalar_lea.vmem %s1310_s0, %s831_s20  ;;  %s964_s25 = sshll.u32 %s1316_s10, 2  ;;  %vm766_vm1 = vcmask 1041408  }
  0x17   : > { %461 = vmatpush.bf16.msra.mxu1 %v945_v17  ;;  %1007 = vmatpush.bf16.msra.mxu3 %v945_v17  ;;  %v905_v47 = vor.u32 %v981_v44, %v902_v45  ;;  %v965_v48 = vld [vmem:[%s1154_s28] sm:$0xff]  ;;  %v966_v50 = vld [vmem:[%s1154_s28 + $0x8] sm:$0xff]  ;;  %v967_v52 = vld [vmem:[%s1154_s28 + $0x10] sm:$0xff]  ;;  %s145_s3 = scalar_lea.vmem %s1312_s2, %s964_s25 }
  0x18   : > { %v973_v49 = vld [vmem:[%s1154_s28 + $0x40] sm:$0xff]  ;;  %v974_v51 = vld [vmem:[%s1154_s28 + $0x48] sm:$0xff]  ;;  %v975_v53 = vld [vmem:[%s1154_s28 + $0x50] sm:$0xff] }
  0x19   : > { %v968_v54 = vld [vmem:[%s1154_s28 + $0x18] sm:$0xff]  ;;  %v969_v56 = vld [vmem:[%s1154_s28 + $0x20] sm:$0xff]  ;;  %v970_v58 = vld [vmem:[%s1154_s28 + $0x28] sm:$0xff] }
  0x1a   : > { %373 = vmatpush.bf16.msra.mxu0 %v933_v22  ;;  %1000 = vmatpush.bf16.msra.mxu2 %v933_v22  ;;  %v976_v55 = vld [vmem:[%s1154_s28 + $0x58] sm:$0xff]  ;;  %v977_v57 = vld [vmem:[%s1154_s28 + $0x60] sm:$0xff]  ;;  %v978_v59 = vld [vmem:[%s1154_s28 + $0x68] sm:$0xff] }
  0x1b   : > { %462 = vmatpush.bf16.msra.mxu1 %v937_v23  ;;  %1008 = vmatpush.bf16.msra.mxu3 %v937_v23  ;;  %v971_v60 = vld [vmem:[%s1154_s28 + $0x30] sm:$0xff]  ;;  %v972_v62 = vld [vmem:[%s1154_s28 + $0x38] sm:$0xff] }
  0x1c   : > { %v979_v61 = vld [vmem:[%s1154_s28 + $0x70] sm:$0xff]  ;;  %v980_v63 = vld [vmem:[%s1154_s28 + $0x78] sm:$0xff] }
  0x1e   : > { %374 = vmatpush.bf16.msra.mxu0 %v925_v28  ;;  %1001 = vmatpush.bf16.msra.mxu2 %v925_v28 }
  0x1f   : > { %463 = vmatpush.bf16.msra.mxu1 %v929_v29  ;;  %1009 = vmatpush.bf16.msra.mxu3 %v929_v29 }
  0x22   : > { %375 = vmatpush.bf16.msra.mxu0 %v917_v34  ;;  %1002 = vmatpush.bf16.msra.mxu2 %v917_v34 }
  0x23   : > { %464 = vmatpush.bf16.msra.mxu1 %v921_v35  ;;  %1010 = vmatpush.bf16.msra.mxu3 %v921_v35 }
  0x26   : > { %376 = vmatpush.bf16.msra.mxu0 %v909_v40  ;;  %1003 = vmatpush.bf16.msra.mxu2 %v909_v40 }
  0x27   : > { %465 = vmatpush.bf16.msra.mxu1 %v913_v41  ;;  %1011 = vmatpush.bf16.msra.mxu3 %v913_v41 }
  0x2a   : > { %377 = vmatpush.bf16.msra.mxu0 %v901_v46  ;;  %1004 = vmatpush.bf16.msra.mxu2 %v901_v46 }
  0x2b   : > { %466 = vmatpush.bf16.msra.mxu1 %v905_v47  ;;  %1012 = vmatpush.bf16.msra.mxu3 %v905_v47 }
  0x2d   : > { %378 = vmatmul.bf16.vlgmr.msra.gmra.mxu0 %v965_v48  ;;  %418 = vmatmul.bf16.vlgmr.msra.gmra.mxu2 %v973_v49 }
  0x2e   : > { %467 = vmatmul.bf16.vlgmr.msra.gmra.mxu1 %v965_v48  ;;  %507 = vmatmul.bf16.vlgmr.msra.gmra.mxu3 %v973_v49 }
  0x3d   : > { %383 = vmatmul.bf16.gmra.mxu0 %v966_v50  ;;  %423 = vmatmul.bf16.gmra.mxu2 %v974_v51 }
  0x3e   : > { %472 = vmatmul.bf16.gmra.mxu1 %v966_v50  ;;  %512 = vmatmul.bf16.gmra.mxu3 %v974_v51 }
  0x4d   : > { %388 = vmatmul.bf16.gmra.mxu0 %v967_v52  ;;  %428 = vmatmul.bf16.gmra.mxu2 %v975_v53 }
  0x4e   : > { %477 = vmatmul.bf16.gmra.mxu1 %v967_v52  ;;  %517 = vmatmul.bf16.gmra.mxu3 %v975_v53 }
  0x5d   : > { %393 = vmatmul.bf16.gmra.mxu0 %v968_v54  ;;  %433 = vmatmul.bf16.gmra.mxu2 %v976_v55 }
  0x5e   : > { %482 = vmatmul.bf16.gmra.mxu1 %v968_v54  ;;  %522 = vmatmul.bf16.gmra.mxu3 %v976_v55 }
  0x6d   : > { %398 = vmatmul.bf16.gmra.mxu0 %v969_v56  ;;  %438 = vmatmul.bf16.gmra.mxu2 %v977_v57 }
  0x6e   : > { %487 = vmatmul.bf16.gmra.mxu1 %v969_v56  ;;  %527 = vmatmul.bf16.gmra.mxu3 %v977_v57 }
  0x7d   : > { %403 = vmatmul.bf16.gmra.mxu0 %v970_v58  ;;  %443 = vmatmul.bf16.gmra.mxu2 %v978_v59 }
  0x7e   : > { %492 = vmatmul.bf16.gmra.mxu1 %v970_v58  ;;  %532 = vmatmul.bf16.gmra.mxu3 %v978_v59 }
  0x8d   : > { %408 = vmatmul.bf16.gmra.mxu0 %v971_v60  ;;  %448 = vmatmul.bf16.gmra.mxu2 %v979_v61 }
  0x8e   : > { %497 = vmatmul.bf16.gmra.mxu1 %v971_v60  ;;  %537 = vmatmul.bf16.gmra.mxu3 %v979_v61 }
  0x9d   : > { %413 = vmatmul.bf16.gmra.mxu0 %v972_v62  ;;  %453 = vmatmul.bf16.gmra.mxu2 %v980_v63 }
  0x9e   : > { %502 = vmatmul.bf16.gmra.mxu1 %v972_v62  ;;  %542 = vmatmul.bf16.gmra.mxu3 %v980_v63 }
  0xaa   : > { %v379_v0 = vpop.f32.mrf.mxu0 }
  0xab   : > { %v468_v1 = vpop.f32.mrf.mxu1  ;;  %v622_v5 = vmul.f32 %v379_v0, %v379_v0 }
  0xac   : > { %v623_v9 = vmul.f32 %v468_v1, %v468_v1 }
  0xb0   : > { %v1172_v2 = vpop.f32.mrf.mxu2 }
  0xb1   : > { %v1174_v3 = vpop.f32.mrf.mxu3 }
  0xb2   : > { %v381_v4 = vpop.f32.mrf.mxu0 }
  0xb3   : > { %v548_v6 = vadd.f32 %v381_v4, %v379_v0  ;;  %v624_v7 = vmul.f32 %v381_v4, %v381_v4  ;;  %v470_v8 = vpop.f32.mrf.mxu1 }
  0xb4   : > { %v585_v10 = vadd.f32 %v470_v8, %v468_v1  ;;  %v625_v11 = vmul.f32 %v470_v8, %v470_v8 }
  0xb5   : > { %v686_v12 = vadd.f32 %v624_v7, %v622_v5 }
  0xb6   : > { %v723_v13 = vadd.f32 %v625_v11, %v623_v9 }
  0xb8   : > { %v1176_v14 = vpop.f32.mrf.mxu2 }
  0xb9   : > { %v1178_v15 = vpop.f32.mrf.mxu3 }
  0xba   : > { %v384_v16 = vpop.f32.mrf.mxu0 }
  0xbb   : > { %v549_v17 = vadd.f32 %v548_v6, %v384_v16  ;;  %v626_v18 = vmul.f32 %v384_v16, %v384_v16  ;;  %v473_v19 = vpop.f32.mrf.mxu1 }
  0xbc   : > { %v586_v20 = vadd.f32 %v585_v10, %v473_v19  ;;  %v627_v21 = vmul.f32 %v473_v19, %v473_v19 }
  0xbd   : > { %v687_v22 = vadd.f32 %v686_v12, %v626_v18 }
  0xbe   : > { %v724_v23 = vadd.f32 %v723_v13, %v627_v21 }
  0xc0   : > { %v1180_v24 = vpop.f32.mrf.mxu2 }
  0xc1   : > { %v1182_v25 = vpop.f32.mrf.mxu3 }
  0xc2   : > { %v386_v26 = vpop.f32.mrf.mxu0 }
  0xc3   : > { %v550_v27 = vadd.f32 %v549_v17, %v386_v26  ;;  %v628_v28 = vmul.f32 %v386_v26, %v386_v26  ;;  %v475_v29 = vpop.f32.mrf.mxu1 }
  0xc4   : > { %v587_v30 = vadd.f32 %v586_v20, %v475_v29  ;;  %v629_v31 = vmul.f32 %v475_v29, %v475_v29 }
  0xc5   : > { %v688_v32 = vadd.f32 %v687_v22, %v628_v28 }
  0xc6   : > { %v725_v33 = vadd.f32 %v724_v23, %v629_v31 }
  0xc8   : > { %v1184_v34 = vpop.f32.mrf.mxu2 }
  0xc9   : > { %v1186_v35 = vpop.f32.mrf.mxu3 }
  0xca   : > { %v389_v36 = vpop.f32.mrf.mxu0 }
  0xcb   : > { %v551_v37 = vadd.f32 %v550_v27, %v389_v36  ;;  %v630_v38 = vmul.f32 %v389_v36, %v389_v36  ;;  %v478_v39 = vpop.f32.mrf.mxu1 }
  0xcc   : > { %v588_v40 = vadd.f32 %v587_v30, %v478_v39  ;;  %v631_v41 = vmul.f32 %v478_v39, %v478_v39 }
  0xcd   : > { %v689_v42 = vadd.f32 %v688_v32, %v630_v38 }
  0xce   : > { %v726_v43 = vadd.f32 %v725_v33, %v631_v41 }
  0xd0   : > { %v1188_v45 = vpop.f32.mrf.mxu2 }
  0xd1   : > { %v1190_v47 = vpop.f32.mrf.mxu3 }
  0xd2   : > { %v391_v44 = vpop.f32.mrf.mxu0 }
  0xd3   : > { %v480_v46 = vpop.f32.mrf.mxu1  ;;  %v632_v10 = vmul.f32 %v391_v44, %v391_v44  ;;  %v552_v13 = vadd.f32 %v551_v37, %v391_v44 }
  0xd4   : > { %v633_v11 = vmul.f32 %v480_v46, %v480_v46  ;;  %v589_v18 = vadd.f32 %v588_v40, %v480_v46 }
  0xd5   : > { %v690_v20 = vadd.f32 %v689_v42, %v632_v10 }
  0xd6   : > { %v727_v23 = vadd.f32 %v726_v43, %v633_v11 }
  0xd8   : > { %v1192_v50 = vpop.f32.mrf.mxu2 }
  0xd9   : > { %v1194_v51 = vpop.f32.mrf.mxu3 }
  0xda   : > { %v394_v48 = vpop.f32.mrf.mxu0 }
  0xdb   : > { %v483_v49 = vpop.f32.mrf.mxu1  ;;  %v634_v16 = vmul.f32 %v394_v48, %v394_v48  ;;  %v553_v21 = vadd.f32 %v552_v13, %v394_v48 }
  0xdc   : > { %v635_v19 = vmul.f32 %v483_v49, %v483_v49  ;;  %v590_v26 = vadd.f32 %v589_v18, %v483_v49 }
  0xdd   : > { %v691_v29 = vadd.f32 %v690_v20, %v634_v16 }
  0xde   : > { %v728_v33 = vadd.f32 %v727_v23, %v635_v19 }
  0xe0   : > { %v1196_v54 = vpop.f32.mrf.mxu2 }
  0xe1   : > { %v1198_v55 = vpop.f32.mrf.mxu3 }
  0xe2   : > { %v396_v52 = vpop.f32.mrf.mxu0 }
  0xe3   : > { %v485_v53 = vpop.f32.mrf.mxu1  ;;  %v636_v22 = vmul.f32 %v396_v52, %v396_v52  ;;  %v554_v30 = vadd.f32 %v553_v21, %v396_v52 }
  0xe4   : > { %v637_v27 = vmul.f32 %v485_v53, %v485_v53  ;;  %v591_v36 = vadd.f32 %v590_v26, %v485_v53 }
  0xe5   : > { %v692_v37 = vadd.f32 %v691_v29, %v636_v22 }
  0xe6   : > { %v729_v44 = vadd.f32 %v728_v33, %v637_v27 }
  0xe8   : > { %v1200_v58 = vpop.f32.mrf.mxu2 }
  0xe9   : > { %v1202_v59 = vpop.f32.mrf.mxu3 }
  0xea   : > { %v399_v56 = vpop.f32.mrf.mxu0 }
  0xeb   : > { %v488_v57 = vpop.f32.mrf.mxu1  ;;  %v638_v31 = vmul.f32 %v399_v56, %v399_v56  ;;  %v555_v39 = vadd.f32 %v554_v30, %v399_v56 }
  0xec   : > { %v639_v38 = vmul.f32 %v488_v57, %v488_v57  ;;  %v592_v40 = vadd.f32 %v591_v36, %v488_v57 }
  0xed   : > { %v693_v42 = vadd.f32 %v692_v37, %v638_v31 }
  0xee   : > { %v730_v43 = vadd.f32 %v729_v44, %v639_v38 }
  0xf0   : > { %v1204_v63 = vpop.f32.mrf.mxu2 }
  0xf1   : > { %v1206_v1 = vpop.f32.mrf.mxu3 }
  0xf2   : > { %v401_v60 = vpop.f32.mrf.mxu0 }
  0xf3   : > { %v490_v61 = vpop.f32.mrf.mxu1  ;;  %v640_v41 = vmul.f32 %v401_v60, %v401_v60  ;;  %v556_v48 = vadd.f32 %v555_v39, %v401_v60 }
  0xf4   : > { %v641_v46 = vmul.f32 %v490_v61, %v490_v61  ;;  %v593_v49 = vadd.f32 %v592_v40, %v490_v61 }
  0xf5   : > { %v694_v52 = vadd.f32 %v693_v42, %v640_v41 }
  0xf6   : > { %v731_v53 = vadd.f32 %v730_v43, %v641_v46 }
  0xf8   : > { %v1208_v6 = vpop.f32.mrf.mxu2 }
  0xf9   : > { %v1210_v7 = vpop.f32.mrf.mxu3 }
  0xfa   : > { %v404_v62 = vpop.f32.mrf.mxu0 }
  0xfb   : > { %v493_v0 = vpop.f32.mrf.mxu1  ;;  %v642_v10 = vmul.f32 %v404_v62, %v404_v62  ;;  %v557_v16 = vadd.f32 %v556_v48, %v404_v62 }
  0xfc   : > { %v643_v11 = vmul.f32 %v493_v0, %v493_v0  ;;  %v594_v20 = vadd.f32 %v593_v49, %v493_v0 }
  0xfd   : > { %v695_v22 = vadd.f32 %v694_v52, %v642_v10 }
  0xfe   : > { %v732_v60 = vadd.f32 %v731_v53, %v643_v11  ;;  %v655_v53 = vmul.f32 %v1174_v3, %v1174_v3 }
 0x100   : > { %v1212_v12 = vpop.f32.mrf.mxu2 }
 0x101   : > { %v1214_v17 = vpop.f32.mrf.mxu3 }
 0x102   : > { %v406_v4 = vpop.f32.mrf.mxu0 }
 0x103   : > { %v495_v5 = vpop.f32.mrf.mxu1  ;;  %v644_v18 = vmul.f32 %v406_v4, %v406_v4  ;;  %v558_v57 = vadd.f32 %v557_v16, %v406_v4 }
 0x104   : > { %v645_v56 = vmul.f32 %v495_v5, %v495_v5  ;;  %v595_v27 = vadd.f32 %v594_v20, %v495_v5 }
 0x105   : > { %v696_v61 = vadd.f32 %v695_v22, %v644_v18 }
 0x106   : > { %v733_v33 = vadd.f32 %v732_v60, %v645_v56 }
 0x108   : > { %v1216_v13 = vpop.f32.mrf.mxu2 }
 0x109   : > { %v1218_v19 = vpop.f32.mrf.mxu3 }
 0x10a   : > { %v409_v8 = vpop.f32.mrf.mxu0 }
 0x10b   : > { %v498_v9 = vpop.f32.mrf.mxu1  ;;  %v646_v23 = vmul.f32 %v409_v8, %v409_v8  ;;  %v559_v30 = vadd.f32 %v558_v57, %v409_v8 }
 0x10c   : > { %v647_v29 = vmul.f32 %v498_v9, %v498_v9  ;;  %v596_v36 = vadd.f32 %v595_v27, %v498_v9 }
 0x10d   : > { %v697_v38 = vadd.f32 %v696_v61, %v646_v23  ;;  %v657_v23 = vmul.f32 %v1178_v15, %v1178_v15 }
 0x10e   : > { %v734_v41 = vadd.f32 %v733_v33, %v647_v29 }
 0x110   : > { %v1220_v10 = vpop.f32.mrf.mxu2 }
 0x111   : > { %v1222_v11 = vpop.f32.mrf.mxu3 }
 0x112   : > { %v411_v28 = vpop.f32.mrf.mxu0 }
 0x113   : > { %v500_v32 = vpop.f32.mrf.mxu1  ;;  %v648_v31 = vmul.f32 %v411_v28, %v411_v28  ;;  %v560_v37 = vadd.f32 %v559_v30, %v411_v28 }
 0x114   : > { %v649_v62 = vmul.f32 %v500_v32, %v500_v32  ;;  %v597_v0 = vadd.f32 %v596_v36, %v500_v32  ;;  %v654_v32 = vmul.f32 %v1172_v2, %v1172_v2 }
 0x115   : > { %v698_v40 = vadd.f32 %v697_v38, %v648_v31  ;;  %v662_v38 = vmul.f32 %v1188_v45, %v1188_v45 }
 0x116   : > { %v735_v4 = vadd.f32 %v734_v41, %v649_v62  ;;  %v663_v41 = vmul.f32 %v1190_v47, %v1190_v47 }
 0x11a   : > { %v414_v21 = vpop.f32.mrf.mxu0 }
 0x11b   : > { %v503_v26 = vpop.f32.mrf.mxu1  ;;  %v650_v39 = vmul.f32 %v414_v21, %v414_v21  ;;  %v561_v46 = vadd.f32 %v560_v37, %v414_v21  ;;  %v656_v21 = vmul.f32 %v1176_v14, %v1176_v14 }
 0x11c   : > { %v651_v44 = vmul.f32 %v503_v26, %v503_v26  ;;  %v598_v42 = vadd.f32 %v597_v0, %v503_v26 }
 0x11d   : > { %v699_v5 = vadd.f32 %v698_v40, %v650_v39  ;;  %v540_v39 = vpop.f32.mrf.mxu3 }
 0x11e   : > { %v736_v9 = vadd.f32 %v735_v4, %v651_v44  ;;  %v664_v44 = vmul.f32 %v1192_v50, %v1192_v50 }
 0x122   : > { %v416_v48 = vpop.f32.mrf.mxu0 }
 0x123   : > { %v562_v43 = vadd.f32 %v561_v46, %v416_v48  ;;  %v652_v8 = vmul.f32 %v416_v48, %v416_v48  ;;  %v505_v49 = vpop.f32.mrf.mxu1  ;;  %v665_v46 = vmul.f32 %v1194_v51, %v1194_v51 }
 0x124   : > { %v599_v52 = vadd.f32 %v598_v42, %v505_v49  ;;  %v653_v28 = vmul.f32 %v505_v49, %v505_v49  ;;  %v666_v42 = vmul.f32 %v1196_v54, %v1196_v54 }
 0x125   : > { %v563_v16 = vadd.f32 %v562_v43, %v1172_v2  ;;  %v700_v18 = vadd.f32 %v699_v5, %v652_v8  ;;  %v658_v2 = vmul.f32 %v1180_v24, %v1180_v24 }
 0x126   : > { %v600_v20 = vadd.f32 %v599_v52, %v1174_v3  ;;  %v737_v56 = vadd.f32 %v736_v9, %v653_v28  ;;  %v659_v3 = vmul.f32 %v1182_v25, %v1182_v25 }
 0x127   : > { %v564_v22 = vadd.f32 %v563_v16, %v1176_v14  ;;  %v701_v57 = vadd.f32 %v700_v18, %v654_v32  ;;  %v660_v14 = vmul.f32 %v1184_v34, %v1184_v34 }
 0x128   : > { %v601_v26 = vadd.f32 %v600_v20, %v1178_v15  ;;  %v738_v60 = vadd.f32 %v737_v56, %v655_v53  ;;  %v661_v15 = vmul.f32 %v1186_v35, %v1186_v35  ;;  %v672_v20 = vmul.f32 %v1208_v6, %v1208_v6 }
 0x129   : > { %v565_v27 = vadd.f32 %v564_v22, %v1180_v24  ;;  %v702_v29 = vadd.f32 %v701_v57, %v656_v21  ;;  %v451_v24 = vpop.f32.mrf.mxu2  ;;  %v543_v21 = vpop.f32.mrf.mxu3  ;;  %v673_v22 = vmul.f32 %v1210_v7, %v1210_v7 }
 0x12a   : > { %v602_v61 = vadd.f32 %v601_v26, %v1182_v25  ;;  %v739_v30 = vadd.f32 %v738_v60, %v657_v23  ;;  %v674_v23 = vmul.f32 %v1212_v12, %v1212_v12  ;;  %v675_v60 = vmul.f32 %v1214_v17, %v1214_v17 }
 0x12b   : > { %v566_v31 = vadd.f32 %v565_v27, %v1184_v34  ;;  %v703_v33 = vadd.f32 %v702_v29, %v658_v2  ;;  %v676_v27 = vmul.f32 %v1216_v13, %v1216_v13 }
 0x12c   : > { %v603_v36 = vadd.f32 %v602_v61, %v1186_v35  ;;  %v740_v62 = vadd.f32 %v739_v30, %v659_v3 }
 0x12d   : > { %v567_v37 = vadd.f32 %v566_v31, %v1188_v45  ;;  %v704_v25 = vadd.f32 %v703_v33, %v660_v14  ;;  %v678_v14 = vmul.f32 %v1220_v10, %v1220_v10  ;;  %v679_v33 = vmul.f32 %v1222_v11, %v1222_v11 }
 0x12e   : > { %v604_v34 = vadd.f32 %v603_v36, %v1190_v47  ;;  %v741_v0 = vadd.f32 %v740_v62, %v661_v15  ;;  %v667_v47 = vmul.f32 %v1198_v55, %v1198_v55  ;;  %v680_v62 = vmul.f32 %v451_v24, %v451_v24 }
 0x12f   : > { %v568_v35 = vadd.f32 %v567_v37, %v1192_v50  ;;  %v705_v40 = vadd.f32 %v704_v25, %v662_v38  ;;  %v668_v50 = vmul.f32 %v1200_v58, %v1200_v58  ;;  %v681_v25 = vmul.f32 %v540_v39, %v540_v39 }
 0x130   : > { %v605_v4 = vadd.f32 %v604_v34, %v1194_v51  ;;  %v742_v45 = vadd.f32 %v741_v0, %v663_v41  ;;  %v669_v51 = vmul.f32 %v1202_v59, %v1202_v59 }
 0x131   : > { %v706_v48 = vadd.f32 %v705_v40, %v664_v44  ;;  %v569_v5 = vadd.f32 %v568_v35, %v1196_v54  ;;  %v670_v54 = vmul.f32 %v1204_v63, %v1204_v63  ;;  %v545_v44 = vpop.f32.mrf.mxu3  ;;  %v683_v40 = vmul.f32 %v543_v21, %v543_v21 }
 0x132   : > { %v743_v43 = vadd.f32 %v742_v45, %v665_v46  ;;  %v606_v8 = vadd.f32 %v605_v4, %v1198_v55  ;;  %v671_v55 = vmul.f32 %v1206_v1, %v1206_v1 }
 0x133   : > { %v570_v49 = vadd.f32 %v569_v5, %v1200_v58  ;;  %v707_v9 = vadd.f32 %v706_v48, %v666_v42  ;;  %v454_v58 = vpop.f32.mrf.mxu2  ;;  %v685_v48 = vmul.f32 %v545_v44, %v545_v44 }
 0x134   : > { %v607_v52 = vadd.f32 %v606_v8, %v1202_v59  ;;  %v744_v28 = vadd.f32 %v743_v43, %v667_v47  ;;  %v682_v0 = vmul.f32 %v454_v58, %v454_v58 }
 0x135   : > { %v571_v32 = vadd.f32 %v570_v49, %v1204_v63  ;;  %v708_v16 = vadd.f32 %v707_v9, %v668_v50 }
 0x136   : > { %v608_v18 = vadd.f32 %v607_v52, %v1206_v1  ;;  %v745_v53 = vadd.f32 %v744_v28, %v669_v51 }
 0x137   : > { %v572_v56 = vadd.f32 %v571_v32, %v1208_v6  ;;  %v709_v59 = vadd.f32 %v708_v16, %v670_v54 }
 0x138   : > { %v609_v63 = vadd.f32 %v608_v18, %v1210_v7  ;;  %v746_v57 = vadd.f32 %v745_v53, %v671_v55  ;;  %v677_v7 = vmul.f32 %v1218_v19, %v1218_v19 }
 0x139   : > { %v573_v1 = vadd.f32 %v572_v56, %v1212_v12  ;;  %v710_v26 = vadd.f32 %v709_v59, %v672_v20 }
 0x13a   : > { %v610_v2 = vadd.f32 %v609_v63, %v1214_v17  ;;  %v747_v6 = vadd.f32 %v746_v57, %v673_v22 }
 0x13b   : > { %v574_v29 = vadd.f32 %v573_v1, %v1216_v13  ;;  %v711_v3 = vadd.f32 %v710_v26, %v674_v23 }
 0x13c   : > { %v611_v61 = vadd.f32 %v610_v2, %v1218_v19  ;;  %v748_v30 = vadd.f32 %v747_v6, %v675_v60  ;;  %v456_v19 = vpop.f32.mrf.mxu2 }
 0x13d   : > { %v575_v12 = vadd.f32 %v574_v29, %v1220_v10  ;;  %v712_v31 = vadd.f32 %v711_v3, %v676_v27  ;;  %v684_v45 = vmul.f32 %v456_v19, %v456_v19 }
 0x13e   : > { %v612_v17 = vadd.f32 %v611_v61, %v1222_v11  ;;  %v749_v15 = vadd.f32 %v748_v30, %v677_v7 }
 0x13f   : > { %v713_v13 = vadd.f32 %v712_v31, %v678_v14  ;;  %v576_v36 = vadd.f32 %v575_v12, %v451_v24 }
 0x140   : > { %v750_v38 = vadd.f32 %v749_v15, %v679_v33  ;;  %v613_v37 = vadd.f32 %v612_v17, %v540_v39 }
 0x141   : > { %v714_v41 = vadd.f32 %v713_v13, %v680_v62  ;;  %v577_v34 = vadd.f32 %v576_v36, %v454_v58 }
 0x142   : > { %v751_v35 = vadd.f32 %v750_v38, %v681_v25  ;;  %v614_v10 = vadd.f32 %v613_v37, %v543_v21 }
 0x143   : > { %v715_v46 = vadd.f32 %v714_v41, %v682_v0  ;;  %v578_v4 = vadd.f32 %v577_v34, %v456_v19 }
 0x144   : > { %v752_v11 = vadd.f32 %v751_v35, %v683_v40  ;;  %v615_v42 = vadd.f32 %v614_v10, %v545_v44 }
 0x145   : > { %v579_v5 = vrot.slane %v578_v4, 4  ;;  %v716_v24 = vadd.f32 %v715_v46, %v684_v45 }
 0x146   : > { %v616_v47 = vrot.slane %v615_v42, 4  ;;  %v753_v43 = vadd.f32 %v752_v11, %v685_v48 }
 0x147   : > { %v580_v39 = vadd.f32 %v579_v5, %v578_v4  ;;  %v717_v8 = vrot.slane %v716_v24, 4 }
 0x148   : > { %v617_v50 = vadd.f32 %v616_v47, %v615_v42  ;;  %v754_v49 = vrot.slane %v753_v43, 4 }
 0x149   : > { %v581_v9 = vrot.slane %v580_v39, 2  ;;  %v718_v51 = vadd.f32 %v717_v8, %v716_v24 }
 0x14a   : > { %v618_v52 = vrot.slane %v617_v50, 2  ;;  %v755_v28 = vadd.f32 %v754_v49, %v753_v43 }
 0x14b   : > { %v582_v54 = vadd.f32 %v581_v9, %v580_v39  ;;  %v719_v32 = vrot.slane %v718_v51, 2 }
 0x14c   : > { %v619_v16 = vadd.f32 %v618_v52, %v617_v50  ;;  %v756_v55 = vrot.slane %v755_v28, 2 }
 0x14d   : > { %v583_v18 = vrot.slane %v582_v54, 1  ;;  %v720_v53 = vadd.f32 %v719_v32, %v718_v51 }
 0x14e   : > { %v620_v58 = vrot.slane %v619_v16, 1  ;;  %v757_v20 = vadd.f32 %v756_v55, %v755_v28 }
 0x14f   : > { %v721_v56 = vrot.slane %v720_v53, 1  ;;  %v584_v21 = vadd.f32 %v583_v18, %v582_v54 }
 0x150   : > { %v758_v59 = vrot.slane %v757_v20, 1  ;;  %v621_v63 = vadd.f32 %v620_v58, %v619_v16 }
 0x151   : > { %v722_v22 = vadd.f32 %v721_v56, %v720_v53 }
 0x152   : > { %v759_v57 = vadd.f32 %v758_v59, %v757_v20 }
 0x153   : > { %v761_v23 = vsel %vm760_vm0, %v584_v21, %v722_v22 }
 0x154   : > { %v762_v1 = vsel %vm760_vm0, %v621_v63, %v759_v57 }
 0x155   : > { %v765_v26 = vrot.slane %v762_v1, 6 }
 0x157   : > { %v767_v60 = vsel %vm766_vm1, %v761_v23, %v765_v26 }
 0x158   : > { %769 = vst [vmem:[%s145_s3] sm:$0xf] %v767_v60 }
 0x159 PF: > { %s12_s9 = sadd.s32 1, %s1027_s9  }
 0x15a   : > { %p9_p5 = scmp.ge.s32.totalorder %s12_s9, 4  }
 0x15c   :  { %11 = sbr.rel (!%p9_p5) target bundleno = 1 (0x1), region = 58 }

// kernel: tile.38
= control target key start
LH: loop header
LB: loop body
LE: loop exit
PB: predicated region body
PF: predicated region fallthrough
CT: control target
= control target key end

     0   :  { %s40_s0 = inlined_call_operand.vmem [shape: f32[4], index: 0, kind: input, shape index: {}]   ;;  %s41_s1 = inlined_call_operand.vmem [shape: f32[32,4], index: 1, kind: output, shape index: {}]  }
   0x1   :  { %v4_v0 = vld [vmem:[%s40_s0] ss:$0 sm:$0xff] }
   0x2   :  { %5 = vst [vmem:[%s41_s1] sm:$0xff] %v4_v0 }
   0x3   :  { %12 = vst [vmem:[%s41_s1 + $0x8] sm:$0xff] %v4_v0 }
   0x4   :  { %13 = vst [vmem:[%s41_s1 + $0x10] sm:$0xff] %v4_v0 }
   0x5   :  { %14 = vst [vmem:[%s41_s1 + $0x18] sm:$0xff] %v4_v0 }

// kernel: tile.39
= control target key start
LH: loop header
LB: loop body
LE: loop exit
PB: predicated region body
PF: predicated region fallthrough
CT: control target
= control target key end

     0   :  { %s259_s10 = smov 124   ;;  %s260_s11 = smov 116   ;;  %vm3_vm0 = vcmask 31744   ;;  %vm9_vm1 = vcmask 1048544   ;;  %vm15_vm2 = vcmask 1015744   ;;  %vm21_vm3 = vcmask 982944   ;;  %s399_s0 = inlined_call_operand.vmem [shape: f32[32,4], index: 0, kind: input, shape index: {}]   ;;  %s400_s1 = inlined_call_operand.vmem [shape: f32[1,128], index: 1, kind: output, shape index: {}]  }
   0x1   :  { %v197_v0 = vld [vmem:[%s399_s0 + $0x1f] sm:$0x1]   ;;  %v199_v1 = vld [vmem:[%s399_s0 + $0x1d] sm:$0x1]   ;;  %v201_v2 = vld [vmem:[%s399_s0 + $0x1b] sm:$0x1]  }
   0x2   :  { %7 = vrot.lane.b32.xlu0 %v197_v0, %s259_s10  ;;  %19 = vrot.lane.b32.xlu1 %v199_v1, %s260_s11  ;;  %s261_s14 = smov 108   ;;  %v198_v3 = vld [vmem:[%s399_s0 + $0x1e] sm:$0x1]   ;;  %v200_v4 = vld [vmem:[%s399_s0 + $0x1c] sm:$0x1]   ;;  %s262_s19 = smov 120  }
   0x3   :  { %31 = vrot.lane.b32.xlu2 %v201_v2, %s261_s14  ;;  %s263_s20 = smov 112   ;;  %v202_v5 = vld [vmem:[%s399_s0 + $0x1a] sm:$0x1]   ;;  %s264_s23 = smov 104   ;;  %v203_v6 = vld [vmem:[%s399_s0 + $0x19] sm:$0x1]  }
   0x4   :  { %v204_v7 = vld [vmem:[%s399_s0 + $0x18] sm:$0x1]   ;;  %s265_s28 = smov 100   ;;  %s266_s29 = smov 96   ;;  %v205_v8 = vld [vmem:[%s399_s0 + $0x17] sm:$0x1]  }
   0x5   :  { %s267_s3 = smov 92   ;;  %v206_v9 = vld [vmem:[%s399_s0 + $0x16] sm:$0x1]   ;;  %v207_v10 = vld [vmem:[%s399_s0 + $0x15] sm:$0x1]   ;;  %s268_s8 = smov 88  }
   0x6   :  { %s269_s9 = smov 84   ;;  %v208_v11 = vld [vmem:[%s399_s0 + $0x14] sm:$0x1]   ;;  %s270_s12 = smov 80   ;;  %v209_v12 = vld [vmem:[%s399_s0 + $0x13] sm:$0x1]  }
   0x7   :  { %v210_v13 = vld [vmem:[%s399_s0 + $0x12] sm:$0x1]   ;;  %s271_s17 = smov 76   ;;  %s272_s18 = smov 72   ;;  %v211_v14 = vld [vmem:[%s399_s0 + $0x11] sm:$0x1]  }
   0x8   :  { %s273_s21 = smov 68   ;;  %v212_v15 = vld [vmem:[%s399_s0 + $0x10] sm:$0x1]   ;;  %v213_v16 = vld [vmem:[%s399_s0 + $0xf] sm:$0x1]   ;;  %s274_s26 = smov 64  }
   0x9   :  { %s275_s27 = smov 60   ;;  %v214_v17 = vld [vmem:[%s399_s0 + $0xe] sm:$0x1]   ;;  %s276_s30 = smov 56   ;;  %v215_v18 = vld [vmem:[%s399_s0 + $0xd] sm:$0x1]  }
   0xa   :  { %13 = vrot.lane.b32.xlu0 %v198_v3, %s262_s19  ;;  %25 = vrot.lane.b32.xlu1 %v200_v4, %s263_s20  ;;  %v216_v19 = vld [vmem:[%s399_s0 + $0xc] sm:$0x1]   ;;  %s277_s6 = smov 52   ;;  %s278_s7 = smov 48   ;;  %v217_v20 = vld [vmem:[%s399_s0 + $0xb] sm:$0x1]  }
   0xb   :  { %37 = vrot.lane.b32.xlu2 %v202_v5, %s264_s23  ;;  %s279_s10 = smov 44   ;;  %v218_v21 = vld [vmem:[%s399_s0 + $0xa] sm:$0x1]   ;;  %v219_v22 = vld [vmem:[%s399_s0 + $0x9] sm:$0x1]   ;;  %s280_s15 = smov 40  }
   0xc   :  { %s281_s16 = smov 36   ;;  %v220_v23 = vld [vmem:[%s399_s0 + $0x8] sm:$0x1]   ;;  %s282_s19 = smov 32   ;;  %v221_v24 = vld [vmem:[%s399_s0 + $0x7] sm:$0x1]  }
   0xd   :  { %v222_v25 = vld [vmem:[%s399_s0 + $0x6] sm:$0x1]   ;;  %s283_s24 = smov 28   ;;  %s284_s25 = smov 24   ;;  %v223_v26 = vld [vmem:[%s399_s0 + $0x5] sm:$0x1]  }
   0xe   :  { %v224_v27 = vld [vmem:[%s399_s0 + $0x4] sm:$0x1]   ;;  %v225_v28 = vld [vmem:[%s399_s0 + $0x3] sm:$0x1]   ;;  %s286_s4 = smov 16   ;;  %s287_s5 = smov 12  }
   0xf   :  { %v226_v29 = vld [vmem:[%s399_s0 + $0x2] sm:$0x1]   ;;  %v227_v30 = vld [vmem:[%s399_s0 + $0x1] sm:$0x1]   ;;  %s289_s11 = smov 4   ;;  %vm27_vm4 = vcmask 950144  }
  0x10   :  { %v2_v31 = vld [vmem:[%s399_s0] sm:$0x1]   ;;  %vm33_vm5 = vcmask 917344   ;;  %vm39_vm6 = vcmask 884544   ;;  %vm45_vm7 = vcmask 851744   ;;  %vm51_vm8 = vcmask 818944  }
  0x11   :  { %4 = vst.msk [vmem:[#allocation0] sm:$0x1] %vm3_vm0, %v2_v31   ;;  %vm57_vm9 = vcmask 786144   ;;  %vm63_vm10 = vcmask 753344   ;;  %vm69_vm11 = vcmask 720544   ;;  %vm75_vm12 = vcmask 687744  }
  0x12   :  { %43 = vrot.lane.b32.xlu0 %v203_v6, %s265_s28  ;;  %49 = vrot.lane.b32.xlu1 %v204_v7, %s266_s29  ;;  %s285_s28 = smov 20   ;;  %vm81_vm13 = vcmask 654944   ;;  %vm87_vm14 = vcmask 622144   ;;  %vm93_vm15 = vcmask 589344   ;;  %vm99_vm0 = vcmask 556544  }
  0x13   :  { %55 = vrot.lane.b32.xlu2 %v205_v8, %s267_s3 }
  0x1a   :  { %61 = vrot.lane.b32.xlu0 %v206_v9, %s268_s8  ;;  %67 = vrot.lane.b32.xlu1 %v207_v10, %s269_s9  ;;  %s288_s8 = smov 8  }
  0x1b   :  { %73 = vrot.lane.b32.xlu2 %v208_v11, %s270_s12 }
  0x22   :  { %79 = vrot.lane.b32.xlu0 %v209_v12, %s271_s17  ;;  %85 = vrot.lane.b32.xlu1 %v210_v13, %s272_s18 }
  0x23   :  { %91 = vrot.lane.b32.xlu2 %v211_v14, %s273_s21 }
  0x2a   :  { %97 = vrot.lane.b32.xlu0 %v212_v15, %s274_s26  ;;  %103 = vrot.lane.b32.xlu1 %v213_v16, %s275_s27 }
  0x2b   :  { %109 = vrot.lane.b32.xlu2 %v214_v17, %s276_s30 }
  0x32   :  { %115 = vrot.lane.b32.xlu0 %v215_v18, %s277_s6  ;;  %121 = vrot.lane.b32.xlu1 %v216_v19, %s278_s7 }
  0x33   :  { %127 = vrot.lane.b32.xlu2 %v217_v20, %s279_s10 }
  0x3a   :  { %133 = vrot.lane.b32.xlu0 %v218_v21, %s280_s15  ;;  %139 = vrot.lane.b32.xlu1 %v219_v22, %s281_s16 }
  0x3b   :  { %145 = vrot.lane.b32.xlu2 %v220_v23, %s282_s19 }
  0x42   :  { %151 = vrot.lane.b32.xlu0 %v221_v24, %s283_s24  ;;  %157 = vrot.lane.b32.xlu1 %v222_v25, %s284_s25 }
  0x43   :  { %163 = vrot.lane.b32.xlu2 %v223_v26, %s285_s28 }
  0x4a   :  { %169 = vrot.lane.b32.xlu0 %v224_v27, %s286_s4  ;;  %175 = vrot.lane.b32.xlu1 %v225_v28, %s287_s5 }
  0x4b   :  { %181 = vrot.lane.b32.xlu2 %v226_v29, %s288_s8 }
  0x52   :  { %187 = vrot.lane.b32.xlu0 %v227_v30, %s289_s11 }
  0x5d   :  { %v32_v32 = vpop.permute.xlu2 %31  }
  0x65   :  { %v38_v33 = vpop.permute.xlu2 %37  }
  0x6d   :  { %v56_v34 = vpop.permute.xlu2 %55  }
  0x74   :  { %v8_v35 = vpop.permute.xlu0 %7   ;;  %v20_v36 = vpop.permute.xlu1 %19  }
  0x75   :  { %10 = vst.msk [vmem:[#allocation0] sm:$0x1] %vm9_vm1, %v8_v35   ;;  %v74_v37 = vpop.permute.xlu2 %73   ;;  %vm105_vm1 = vcmask 523744  }
  0x7c   :  { %v14_v38 = vpop.permute.xlu0 %13   ;;  %v26_v39 = vpop.permute.xlu1 %25  }
  0x7d   :  { %16 = vst.msk [vmem:[#allocation0] sm:$0x1] %vm15_vm2, %v14_v38   ;;  %v92_v40 = vpop.permute.xlu2 %91   ;;  %vm111_vm2 = vcmask 490944  }
  0x7e   :  { %22 = vst.msk [vmem:[#allocation0] sm:$0x1] %vm21_vm3, %v20_v36   ;;  %vm117_vm3 = vcmask 458144  }
  0x7f   :  { %28 = vst.msk [vmem:[#allocation0] sm:$0x1] %vm27_vm4, %v26_v39   ;;  %vm123_vm4 = vcmask 425344  }
  0x80   :  { %34 = vst.msk [vmem:[#allocation0] sm:$0x1] %vm33_vm5, %v32_v32   ;;  %vm129_vm5 = vcmask 392544  }
  0x81   :  { %40 = vst.msk [vmem:[#allocation0] sm:$0x1] %vm39_vm6, %v38_v33   ;;  %vm135_vm6 = vcmask 359744  }
  0x84   :  { %v44_v41 = vpop.permute.xlu0 %43   ;;  %v50_v42 = vpop.permute.xlu1 %49  }
  0x85   :  { %46 = vst.msk [vmem:[#allocation0] sm:$0x1] %vm45_vm7, %v44_v41   ;;  %v110_v43 = vpop.permute.xlu2 %109   ;;  %vm141_vm7 = vcmask 326944  }
  0x86   :  { %52 = vst.msk [vmem:[#allocation0] sm:$0x1] %vm51_vm8, %v50_v42   ;;  %vm147_vm8 = vcmask 294144  }
  0x87   :  { %58 = vst.msk [vmem:[#allocation0] sm:$0x1] %vm57_vm9, %v56_v34   ;;  %vm153_vm9 = vcmask 261344  }
  0x8c   :  { %v62_v44 = vpop.permute.xlu0 %61   ;;  %v68_v45 = vpop.permute.xlu1 %67  }
  0x8d   :  { %64 = vst.msk [vmem:[#allocation0] sm:$0x1] %vm63_vm10, %v62_v44   ;;  %v128_v46 = vpop.permute.xlu2 %127   ;;  %vm159_vm10 = vcmask 228544  }
  0x8e   :  { %70 = vst.msk [vmem:[#allocation0] sm:$0x1] %vm69_vm11, %v68_v45   ;;  %vm165_vm11 = vcmask 195744  }
  0x8f   :  { %76 = vst.msk [vmem:[#allocation0] sm:$0x1] %vm75_vm12, %v74_v37   ;;  %vm171_vm12 = vcmask 162944  }
  0x94   :  { %v80_v47 = vpop.permute.xlu0 %79   ;;  %v86_v48 = vpop.permute.xlu1 %85  }
  0x95   :  { %82 = vst.msk [vmem:[#allocation0] sm:$0x1] %vm81_vm13, %v80_v47   ;;  %v146_v49 = vpop.permute.xlu2 %145   ;;  %vm177_vm13 = vcmask 130144  }
  0x96   :  { %88 = vst.msk [vmem:[#allocation0] sm:$0x1] %vm87_vm14, %v86_v48   ;;  %vm183_vm14 = vcmask 97344  }
  0x97   :  { %94 = vst.msk [vmem:[#allocation0] sm:$0x1] %vm93_vm15, %v92_v40   ;;  %vm189_vm15 = vcmask 64544  }
  0x9c   :  { %v98_v50 = vpop.permute.xlu0 %97   ;;  %v104_v51 = vpop.permute.xlu1 %103  }
  0x9d   :  { %100 = vst.msk [vmem:[#allocation0] sm:$0x1] %vm99_vm0, %v98_v50   ;;  %v164_v52 = vpop.permute.xlu2 %163  }
  0x9e   :  { %106 = vst.msk [vmem:[#allocation0] sm:$0x1] %vm105_vm1, %v104_v51  }
  0x9f   :  { %112 = vst.msk [vmem:[#allocation0] sm:$0x1] %vm111_vm2, %v110_v43  }
  0xa4   :  { %v116_v53 = vpop.permute.xlu0 %115   ;;  %v122_v54 = vpop.permute.xlu1 %121  }
  0xa5   :  { %118 = vst.msk [vmem:[#allocation0] sm:$0x1] %vm117_vm3, %v116_v53   ;;  %v182_v55 = vpop.permute.xlu2 %181  }
  0xa6   :  { %124 = vst.msk [vmem:[#allocation0] sm:$0x1] %vm123_vm4, %v122_v54  }
  0xa7   :  { %130 = vst.msk [vmem:[#allocation0] sm:$0x1] %vm129_vm5, %v128_v46  }
  0xac   :  { %v134_v56 = vpop.permute.xlu0 %133   ;;  %v140_v57 = vpop.permute.xlu1 %139  }
  0xad   :  { %136 = vst.msk [vmem:[#allocation0] sm:$0x1] %vm135_vm6, %v134_v56  }
  0xae   :  { %142 = vst.msk [vmem:[#allocation0] sm:$0x1] %vm141_vm7, %v140_v57  }
  0xaf   :  { %148 = vst.msk [vmem:[#allocation0] sm:$0x1] %vm147_vm8, %v146_v49  }
  0xb4   :  { %v152_v58 = vpop.permute.xlu0 %151   ;;  %v158_v59 = vpop.permute.xlu1 %157  }
  0xb5   :  { %154 = vst.msk [vmem:[#allocation0] sm:$0x1] %vm153_vm9, %v152_v58  }
  0xb6   :  { %160 = vst.msk [vmem:[#allocation0] sm:$0x1] %vm159_vm10, %v158_v59  }
  0xb7   :  { %166 = vst.msk [vmem:[#allocation0] sm:$0x1] %vm165_vm11, %v164_v52  }
  0xbc   :  { %v170_v60 = vpop.permute.xlu0 %169   ;;  %v176_v61 = vpop.permute.xlu1 %175  }
  0xbd   :  { %172 = vst.msk [vmem:[#allocation0] sm:$0x1] %vm171_vm12, %v170_v60  }
  0xbe   :  { %178 = vst.msk [vmem:[#allocation0] sm:$0x1] %vm177_vm13, %v176_v61  }
  0xbf   :  { %184 = vst.msk [vmem:[#allocation0] sm:$0x1] %vm183_vm14, %v182_v55  }
  0xc4   :  { %v188_v62 = vpop.permute.xlu0 %187  }
  0xc5   :  { %190 = vst.msk [vmem:[#allocation0] sm:$0x1] %vm189_vm15, %v188_v62  }
  0xcc   :  { %v193_v63 = vld [vmem:[#allocation0] sm:$0x1] }
  0xcd   :  { %196 = vst [vmem:[%s400_s1] sm:$0x1] %v193_v63 }

// kernel: basic_block_forward.5
= control target key start
LH: loop header
LB: loop body
LE: loop exit
PB: predicated region body
PF: predicated region fallthrough
CT: control target
= control target key end

     0   :  { %s865_s15 = smov 0   ;;  %s1037_s0 = inlined_call_operand.vmem [shape: bf16[512,128], index: 0, kind: input, shape index: {}]   ;;  %s1038_s1 = inlined_call_operand.vmem [shape: bf16[512,128], index: 1, kind: input, shape index: {}]   ;;  %s1039_s2 = inlined_call_operand.vmem [shape: f32[1,128], index: 2, kind: input, shape index: {}]   ;;  %s1040_s3 = inlined_call_operand.vmem [shape: f32[1,128], index: 3, kind: input, shape index: {}]   ;;  %s1041_s4 = inlined_call_operand.vmem [shape: f32[512,128], index: 4, kind: output, shape index: {}]  }
   0x1 LB: > { %s651_s16 = sadd.s32 4294967295, %s838_s15   ;;  %p655_p0 = scmp.ge.s32.totalorder %s838_s15, 1  ;;  %s838_s15 = sphi %s865_s15, %s14_s15  }
   0x2   : > { %p174_p1 = scmp.lt.s32.totalorder %s838_s15, 3 }
   0x4   : > { %p175_p2 = pnand %p655_p0, %p174_p1 }
   0x5   : > { %s656_s17 = sshll.u32 (!%p175_p2), %s651_s16, 5 }
   0x6   : > { %178 = sbr.rel (%p175_p2) target bundleno = 84 (0x54), region = 36  ;;  %p206_p3 = scmp.lt.s32.totalorder (!%p175_p2), %s656_s17, 63 }
   0xb   : > { %s1043_s17 = smov (!%p206_p3, %s656_s17), 63  ;;  %v889_v0 = vld [vmem:[%s1039_s2] ss:$0 sm:$0xff] }
   0xc   : > { %s657_s18 = sshll.u32 %s1043_s17, 2  ;;  %v894_v1 = vld [vmem:[%s1040_s3] ss:$0 sm:$0xff]  ;;  %s661_s29 = sshll.u32 %s1043_s17, 3 }
   0xd   : > { %s879_s21 = scalar_lea.vmem %s1037_s0, %s657_s18  ;;  %s884_s24 = scalar_lea.vmem %s1038_s1, %s657_s18 }
   0xe   : > { %v665_v2 = vld [vmem:[%s884_s24] sm:$0xff]   ;;  %v792_v4 = vld [vmem:[%s884_s24 + $0x8] sm:$0xff]   ;;  %v793_v9 = vld [vmem:[%s884_s24 + $0x10] sm:$0xff]   ;;  %s921_s6 = scalar_lea.vmem %s1041_s4, %s661_s29 }
   0xf   : > { %v729_v3 = vld [vmem:[%s879_s21] sm:$0xff]   ;;  %v666_v5 = vunpack.c.l.bf16 %v665_v2  ;;  %v667_v7 = vunpack.c.h.bf16 %v665_v2  ;;  %v807_v8 = vld [vmem:[%s879_s21 + $0x8] sm:$0xff]   ;;  %v902_v10 = vld [vmem:[%s879_s21 + $0x10] sm:$0xff]   ;;  %v670_v12 = vunpack.c.l.bf16 %v792_v4  ;;  %v671_v14 = vunpack.c.h.bf16 %v792_v4 }
  0x10   : > { %v730_v6 = vunpack.c.l.bf16 %v729_v3  ;;  %v731_v11 = vunpack.c.h.bf16 %v729_v3  ;;  %v734_v13 = vunpack.c.l.bf16 %v807_v8  ;;  %v735_v17 = vunpack.c.h.bf16 %v807_v8  ;;  %v794_v19 = vld [vmem:[%s884_s24 + $0x18] sm:$0xff]   ;;  %v795_v45 = vld [vmem:[%s884_s24 + $0x20] sm:$0xff]   ;;  %v796_v57 = vld [vmem:[%s884_s24 + $0x28] sm:$0xff]  }
  0x11   : > { %v291_v15 = vmul.f32 %v889_v0, %v666_v5  ;;  %v292_v16 = vmul.f32 %v889_v0, %v667_v7  ;;  %v674_v18 = vunpack.c.l.bf16 %v793_v9  ;;  %v293_v20 = vmul.f32 %v889_v0, %v670_v12  ;;  %v809_v44 = vld [vmem:[%s879_s21 + $0x18] sm:$0xff]   ;;  %v810_v52 = vld [vmem:[%s879_s21 + $0x20] sm:$0xff]  }
  0x12   : > { %v294_v21 = vmul.f32 %v889_v0, %v671_v14  ;;  %v738_v22 = vunpack.c.l.bf16 %v902_v10  ;;  %v675_v23 = vunpack.c.h.bf16 %v793_v9  ;;  %v739_v27 = vunpack.c.h.bf16 %v902_v10  ;;  %v811_v10 = vld [vmem:[%s879_s21 + $0x28] sm:$0xff]  }
  0x13   : > { %v327_v24 = vadd.f32 %v894_v1, %v291_v15  ;;  %v328_v25 = vadd.f32 %v894_v1, %v292_v16  ;;  %v295_v26 = vmul.f32 %v889_v0, %v674_v18  ;;  %v329_v28 = vadd.f32 %v894_v1, %v293_v20 }
  0x14   : > { %v330_v29 = vadd.f32 %v894_v1, %v294_v21  ;;  %v296_v30 = vmul.f32 %v889_v0, %v675_v23  ;;  %v678_v31 = vunpack.c.l.bf16 %v794_v19  ;;  %v679_v51 = vunpack.c.h.bf16 %v794_v19 }
  0x15   : > { %vm359_vm0 = vcmp.gt.f32.partialorder %v327_v24, 0.0  ;;  %v391_v32 = vmul.f32 0.1, %v327_v24  ;;  %vm360_vm1 = vcmp.gt.f32.partialorder %v328_v25, 0.0  ;;  %v392_v33 = vmul.f32 0.1, %v328_v25 }
  0x16   : > { %vm361_vm2 = vcmp.gt.f32.partialorder %v329_v28, 0.0  ;;  %v393_v34 = vmul.f32 0.1, %v329_v28  ;;  %vm362_vm3 = vcmp.gt.f32.partialorder %v330_v29, 0.0  ;;  %v394_v35 = vmul.f32 0.1, %v330_v29 }
  0x17   : > { %v423_v36 = vsel %vm359_vm0, %v327_v24, %v391_v32  ;;  %v424_v37 = vsel %vm360_vm1, %v328_v25, %v392_v33  ;;  %v331_v38 = vadd.f32 %v894_v1, %v295_v26  ;;  %v332_v39 = vadd.f32 %v894_v1, %v296_v30 }
  0x18   : > { %v519_v40 = vadd.f32 %v730_v6, %v423_v36  ;;  %v520_v41 = vadd.f32 %v731_v11, %v424_v37  ;;  %v425_v42 = vsel %vm361_vm2, %v329_v28, %v393_v34  ;;  %v426_v43 = vsel %vm362_vm3, %v330_v29, %v394_v35  ;;  %v812_v29 = vld [vmem:[%s879_s21 + $0x30] sm:$0xff]   ;;  %v798_v34 = vld [vmem:[%s884_s24 + $0x38] sm:$0xff]  }
  0x19   : > { %v521_v46 = vadd.f32 %v734_v13, %v425_v42  ;;  %v522_v47 = vadd.f32 %v735_v17, %v426_v43  ;;  %vm363_vm4 = vcmp.gt.f32.partialorder %v331_v38, 0.0  ;;  %v395_v48 = vmul.f32 0.1, %v331_v38  ;;  %v799_v43 = vld [vmem:[%s884_s24 + $0x40] sm:$0xff]  }
  0x1a   : > { %551 = vst [vmem:[%s921_s6] sm:$0xff] %v519_v40  ;;  %vm364_vm5 = vcmp.gt.f32.partialorder %v332_v39, 0.0  ;;  %v396_v49 = vmul.f32 0.1, %v332_v39  ;;  %v297_v50 = vmul.f32 %v889_v0, %v678_v31  ;;  %v742_v54 = vunpack.c.l.bf16 %v809_v44 }
  0x1b   : > { %552 = vst [vmem:[%s921_s6 + $0x8] sm:$0xff] %v520_v41  ;;  %v427_v53 = vsel %vm363_vm4, %v331_v38, %v395_v48  ;;  %v743_v55 = vunpack.c.h.bf16 %v809_v44  ;;  %v682_v56 = vunpack.c.l.bf16 %v795_v45  ;;  %v298_v61 = vmul.f32 %v889_v0, %v679_v51  ;;  %v813_v38 = vld [vmem:[%s879_s21 + $0x38] sm:$0xff]  }
  0x1c   : > { %553 = vst [vmem:[%s921_s6 + $0x10] sm:$0xff] %v521_v46  ;;  %v523_v58 = vadd.f32 %v738_v22, %v427_v53  ;;  %v428_v59 = vsel %vm364_vm5, %v332_v39, %v396_v49  ;;  %v333_v60 = vadd.f32 %v894_v1, %v297_v50  ;;  %v746_v2 = vunpack.c.l.bf16 %v810_v52  ;;  %v797_v22 = vld [vmem:[%s884_s24 + $0x30] sm:$0xff]  }
  0x1d   : > { %554 = vst [vmem:[%s921_s6 + $0x18] sm:$0xff] %v522_v47  ;;  %v524_v62 = vadd.f32 %v739_v27, %v428_v59  ;;  %v299_v63 = vmul.f32 %v889_v0, %v682_v56  ;;  %v683_v3 = vunpack.c.h.bf16 %v795_v45  ;;  %v334_v5 = vadd.f32 %v894_v1, %v298_v61  ;;  %v814_v56 = vld [vmem:[%s879_s21 + $0x40] sm:$0xff]  }
  0x1e   : > { %555 = vst [vmem:[%s921_s6 + $0x20] sm:$0xff] %v523_v58  ;;  %vm365_vm6 = vcmp.gt.f32.partialorder %v333_v60, 0.0  ;;  %v397_v4 = vmul.f32 0.1, %v333_v60  ;;  %v686_v6 = vunpack.c.l.bf16 %v796_v57  ;;  %v747_v9 = vunpack.c.h.bf16 %v810_v52 }
  0x1f   : > { %556 = vst [vmem:[%s921_s6 + $0x28] sm:$0xff] %v524_v62  ;;  %v335_v7 = vadd.f32 %v894_v1, %v299_v63  ;;  %v300_v8 = vmul.f32 %v889_v0, %v683_v3  ;;  %v687_v11 = vunpack.c.h.bf16 %v796_v57  ;;  %vm366_vm7 = vcmp.gt.f32.partialorder %v334_v5, 0.0  ;;  %v800_v57 = vld [vmem:[%s884_s24 + $0x48] sm:$0xff]  }
  0x20   : > { %v429_v12 = vsel %vm365_vm6, %v333_v60, %v397_v4  ;;  %v398_v13 = vmul.f32 0.1, %v334_v5  ;;  %v301_v14 = vmul.f32 %v889_v0, %v686_v6  ;;  %v750_v20 = vunpack.c.l.bf16 %v811_v10 }
  0x21   : > { %v525_v15 = vadd.f32 %v742_v54, %v429_v12  ;;  %vm367_vm8 = vcmp.gt.f32.partialorder %v335_v7, 0.0  ;;  %v399_v16 = vmul.f32 0.1, %v335_v7  ;;  %v336_v17 = vadd.f32 %v894_v1, %v300_v8 }
  0x22   : > { %v430_v18 = vsel %vm366_vm7, %v334_v5, %v398_v13  ;;  %v337_v19 = vadd.f32 %v894_v1, %v301_v14  ;;  %v302_v21 = vmul.f32 %v889_v0, %v687_v11  ;;  %v751_v31 = vunpack.c.h.bf16 %v811_v10 }
  0x23   : > { %557 = vst [vmem:[%s921_s6 + $0x30] sm:$0xff] %v525_v15  ;;  %v526_v23 = vadd.f32 %v743_v55, %v430_v18  ;;  %v431_v24 = vsel %vm367_vm8, %v335_v7, %v399_v16  ;;  %vm368_vm9 = vcmp.gt.f32.partialorder %v336_v17, 0.0  ;;  %v400_v25 = vmul.f32 0.1, %v336_v17  ;;  %v815_v16 = vld [vmem:[%s879_s21 + $0x48] sm:$0xff]  }
  0x24   : > { %v527_v26 = vadd.f32 %v746_v2, %v431_v24  ;;  %vm369_vm10 = vcmp.gt.f32.partialorder %v337_v19, 0.0  ;;  %v401_v27 = vmul.f32 0.1, %v337_v19  ;;  %v338_v28 = vadd.f32 %v894_v1, %v302_v21 }
  0x25   : > { %558 = vst [vmem:[%s921_s6 + $0x38] sm:$0xff] %v526_v23  ;;  %v432_v30 = vsel %vm368_vm9, %v336_v17, %v400_v25  ;;  %v690_v32 = vunpack.c.l.bf16 %v797_v22  ;;  %v691_v33 = vunpack.c.h.bf16 %v797_v22  ;;  %v754_v41 = vunpack.c.l.bf16 %v812_v29  ;;  %v801_v17 = vld [vmem:[%s884_s24 + $0x50] sm:$0xff]  }
  0x26   : > { %559 = vst [vmem:[%s921_s6 + $0x40] sm:$0xff] %v527_v26  ;;  %v528_v35 = vadd.f32 %v747_v9, %v432_v30  ;;  %v433_v36 = vsel %vm369_vm10, %v337_v19, %v401_v27  ;;  %vm370_vm11 = vcmp.gt.f32.partialorder %v338_v28, 0.0  ;;  %v402_v37 = vmul.f32 0.1, %v338_v28 }
  0x27   : > { %v529_v39 = vadd.f32 %v750_v20, %v433_v36  ;;  %v303_v40 = vmul.f32 %v889_v0, %v690_v32  ;;  %v304_v42 = vmul.f32 %v889_v0, %v691_v33  ;;  %v755_v45 = vunpack.c.h.bf16 %v812_v29  ;;  %v802_v29 = vld [vmem:[%s884_s24 + $0x58] sm:$0xff]  }
  0x28   : > { %560 = vst [vmem:[%s921_s6 + $0x48] sm:$0xff] %v528_v35  ;;  %v434_v44 = vsel %vm370_vm11, %v338_v28, %v402_v37  ;;  %v694_v46 = vunpack.c.l.bf16 %v798_v34  ;;  %v695_v47 = vunpack.c.h.bf16 %v798_v34  ;;  %v758_v51 = vunpack.c.l.bf16 %v813_v38  ;;  %v816_v28 = vld [vmem:[%s879_s21 + $0x50] sm:$0xff]   ;;  %v817_v37 = vld [vmem:[%s879_s21 + $0x58] sm:$0xff]  }
  0x29   : > { %561 = vst [vmem:[%s921_s6 + $0x50] sm:$0xff] %v529_v39  ;;  %v530_v48 = vadd.f32 %v751_v31, %v434_v44  ;;  %v339_v49 = vadd.f32 %v894_v1, %v303_v40  ;;  %v340_v50 = vadd.f32 %v894_v1, %v304_v42  ;;  %v759_v54 = vunpack.c.h.bf16 %v813_v38  ;;  %v803_v42 = vld [vmem:[%s884_s24 + $0x60] sm:$0xff]  }
  0x2a   : > { %v305_v52 = vmul.f32 %v889_v0, %v694_v46  ;;  %v306_v53 = vmul.f32 %v889_v0, %v695_v47  ;;  %v698_v55 = vunpack.c.l.bf16 %v799_v43  ;;  %v699_v59 = vunpack.c.h.bf16 %v799_v43 }
  0x2b   : > { %562 = vst [vmem:[%s921_s6 + $0x58] sm:$0xff] %v530_v48  ;;  %vm371_vm12 = vcmp.gt.f32.partialorder %v339_v49, 0.0  ;;  %v403_v58 = vmul.f32 0.1, %v339_v49  ;;  %vm372_vm13 = vcmp.gt.f32.partialorder %v340_v50, 0.0  ;;  %v762_v3 = vunpack.c.l.bf16 %v814_v56 }
  0x2c   : > { %v404_v60 = vmul.f32 0.1, %v340_v50  ;;  %v341_v61 = vadd.f32 %v894_v1, %v305_v52  ;;  %v342_v62 = vadd.f32 %v894_v1, %v306_v53  ;;  %v307_v63 = vmul.f32 %v889_v0, %v698_v55 }
  0x2d   : > { %v435_v2 = vsel %vm371_vm12, %v339_v49, %v403_v58  ;;  %v308_v4 = vmul.f32 %v889_v0, %v699_v59  ;;  %v702_v5 = vunpack.c.l.bf16 %v800_v57  ;;  %v763_v14 = vunpack.c.h.bf16 %v814_v56 }
  0x2e   : > { %v531_v6 = vadd.f32 %v754_v41, %v435_v2  ;;  %v436_v7 = vsel %vm372_vm13, %v340_v50, %v404_v60  ;;  %vm373_vm14 = vcmp.gt.f32.partialorder %v341_v61, 0.0  ;;  %v405_v8 = vmul.f32 0.1, %v341_v61  ;;  %v818_v60 = vld [vmem:[%s879_s21 + $0x60] sm:$0xff]  }
  0x2f   : > { %v532_v9 = vadd.f32 %v755_v45, %v436_v7  ;;  %vm374_vm15 = vcmp.gt.f32.partialorder %v342_v62, 0.0  ;;  %v406_v10 = vmul.f32 0.1, %v342_v62  ;;  %v343_v11 = vadd.f32 %v894_v1, %v307_v63 }
  0x30   : > { %563 = vst [vmem:[%s921_s6 + $0x60] sm:$0xff] %v531_v6  ;;  %v437_v12 = vsel %vm373_vm14, %v341_v61, %v405_v8  ;;  %v344_v13 = vadd.f32 %v894_v1, %v308_v4  ;;  %v309_v15 = vmul.f32 %v889_v0, %v702_v5  ;;  %v766_v25 = vunpack.c.l.bf16 %v815_v16 }
  0x31   : > { %564 = vst [vmem:[%s921_s6 + $0x68] sm:$0xff] %v532_v9  ;;  %v533_v18 = vadd.f32 %v758_v51, %v437_v12  ;;  %v438_v19 = vsel %vm374_vm15, %v342_v62, %v406_v10  ;;  %vm375_vm0 = vcmp.gt.f32.partialorder %v343_v11, 0.0  ;;  %v407_v20 = vmul.f32 0.1, %v343_v11  ;;  %v804_v10 = vld [vmem:[%s884_s24 + $0x68] sm:$0xff]  }
  0x32   : > { %v534_v21 = vadd.f32 %v759_v54, %v438_v19  ;;  %vm376_vm1 = vcmp.gt.f32.partialorder %v344_v13, 0.0  ;;  %v408_v22 = vmul.f32 0.1, %v344_v13  ;;  %v345_v23 = vadd.f32 %v894_v1, %v309_v15 }
  0x33   : > { %565 = vst [vmem:[%s921_s6 + $0x70] sm:$0xff] %v533_v18  ;;  %v439_v24 = vsel %vm375_vm0, %v343_v11, %v407_v20  ;;  %v703_v26 = vunpack.c.h.bf16 %v800_v57  ;;  %v706_v27 = vunpack.c.l.bf16 %v801_v17  ;;  %v767_v35 = vunpack.c.h.bf16 %v815_v16 }
  0x34   : > { %566 = vst [vmem:[%s921_s6 + $0x78] sm:$0xff] %v534_v21  ;;  %v535_v30 = vadd.f32 %v762_v3, %v439_v24  ;;  %v440_v31 = vsel %vm376_vm1, %v344_v13, %v408_v22  ;;  %vm377_vm2 = vcmp.gt.f32.partialorder %v345_v23, 0.0  ;;  %v409_v32 = vmul.f32 0.1, %v345_v23  ;;  %v805_v21 = vld [vmem:[%s884_s24 + $0x70] sm:$0xff]  }
  0x35   : > { %v536_v33 = vadd.f32 %v763_v14, %v440_v31  ;;  %v310_v34 = vmul.f32 %v889_v0, %v703_v26  ;;  %v311_v36 = vmul.f32 %v889_v0, %v706_v27  ;;  %v770_v39 = vunpack.c.l.bf16 %v816_v28 }
  0x36   : > { %567 = vst [vmem:[%s921_s6 + $0x80] sm:$0xff] %v535_v30  ;;  %v441_v38 = vsel %vm377_vm2, %v345_v23, %v409_v32  ;;  %v707_v40 = vunpack.c.h.bf16 %v801_v17  ;;  %v710_v41 = vunpack.c.l.bf16 %v802_v29  ;;  %v771_v46 = vunpack.c.h.bf16 %v816_v28 }
  0x37   : > { %568 = vst [vmem:[%s921_s6 + $0x88] sm:$0xff] %v536_v33  ;;  %v537_v43 = vadd.f32 %v766_v25, %v441_v38  ;;  %v346_v44 = vadd.f32 %v894_v1, %v310_v34  ;;  %v347_v45 = vadd.f32 %v894_v1, %v311_v36  ;;  %v774_v49 = vunpack.c.l.bf16 %v817_v37  ;;  %v819_v25 = vld [vmem:[%s879_s21 + $0x68] sm:$0xff]  }
  0x38   : > { %v312_v47 = vmul.f32 %v889_v0, %v707_v40  ;;  %v313_v48 = vmul.f32 %v889_v0, %v710_v41  ;;  %v711_v50 = vunpack.c.h.bf16 %v802_v29  ;;  %v714_v52 = vunpack.c.l.bf16 %v803_v42  ;;  %v806_v29 = vld [vmem:[%s884_s24 + $0x78] sm:$0xff]  }
  0x39   : > { %569 = vst [vmem:[%s921_s6 + $0x90] sm:$0xff] %v537_v43  ;;  %vm378_vm3 = vcmp.gt.f32.partialorder %v346_v44, 0.0  ;;  %v410_v51 = vmul.f32 0.1, %v346_v44  ;;  %vm379_vm4 = vcmp.gt.f32.partialorder %v347_v45, 0.0  ;;  %v775_v58 = vunpack.c.h.bf16 %v817_v37 }
  0x3a   : > { %v411_v53 = vmul.f32 0.1, %v347_v45  ;;  %v348_v54 = vadd.f32 %v894_v1, %v312_v47  ;;  %v349_v55 = vadd.f32 %v894_v1, %v313_v48  ;;  %v314_v56 = vmul.f32 %v889_v0, %v711_v50 }
  0x3b   : > { %v442_v57 = vsel %vm378_vm3, %v346_v44, %v410_v51  ;;  %v315_v59 = vmul.f32 %v889_v0, %v714_v52  ;;  %v715_v61 = vunpack.c.h.bf16 %v803_v42  ;;  %v778_v8 = vunpack.c.l.bf16 %v818_v60  ;;  %v821_v51 = vld [vmem:[%s879_s21 + $0x78] sm:$0xff]  }
  0x3c   : > { %v538_v62 = vadd.f32 %v767_v35, %v442_v57  ;;  %v443_v63 = vsel %vm379_vm4, %v347_v45, %v411_v53  ;;  %vm380_vm5 = vcmp.gt.f32.partialorder %v348_v54, 0.0  ;;  %v412_v2 = vmul.f32 0.1, %v348_v54 }
  0x3d   : > { %v539_v3 = vadd.f32 %v770_v39, %v443_v63  ;;  %vm381_vm6 = vcmp.gt.f32.partialorder %v349_v55, 0.0  ;;  %v413_v4 = vmul.f32 0.1, %v349_v55  ;;  %v350_v5 = vadd.f32 %v894_v1, %v314_v56  ;;  %v820_v39 = vld [vmem:[%s879_s21 + $0x70] sm:$0xff]  }
  0x3e   : > { %570 = vst [vmem:[%s921_s6 + $0x98] sm:$0xff] %v538_v62  ;;  %v444_v6 = vsel %vm380_vm5, %v348_v54, %v412_v2  ;;  %v351_v7 = vadd.f32 %v894_v1, %v315_v59  ;;  %v316_v9 = vmul.f32 %v889_v0, %v715_v61  ;;  %v779_v18 = vunpack.c.h.bf16 %v818_v60 }
  0x3f   : > { %571 = vst [vmem:[%s921_s6 + $0xa0] sm:$0xff] %v539_v3  ;;  %v540_v11 = vadd.f32 %v771_v46, %v444_v6  ;;  %v445_v12 = vsel %vm381_vm6, %v349_v55, %v413_v4  ;;  %vm382_vm7 = vcmp.gt.f32.partialorder %v350_v5, 0.0  ;;  %v414_v13 = vmul.f32 0.1, %v350_v5 }
  0x40   : > { %v541_v14 = vadd.f32 %v774_v49, %v445_v12  ;;  %vm383_vm8 = vcmp.gt.f32.partialorder %v351_v7, 0.0  ;;  %v415_v15 = vmul.f32 0.1, %v351_v7  ;;  %v352_v16 = vadd.f32 %v894_v1, %v316_v9 }
  0x41   : > { %572 = vst [vmem:[%s921_s6 + $0xa8] sm:$0xff] %v540_v11  ;;  %v446_v17 = vsel %vm382_vm7, %v350_v5, %v414_v13  ;;  %v718_v19 = vunpack.c.l.bf16 %v804_v10  ;;  %v719_v20 = vunpack.c.h.bf16 %v804_v10  ;;  %v722_v31 = vunpack.c.l.bf16 %v805_v21 }
  0x42   : > { %573 = vst [vmem:[%s921_s6 + $0xb0] sm:$0xff] %v541_v14  ;;  %v542_v22 = vadd.f32 %v775_v58, %v446_v17  ;;  %v447_v23 = vsel %vm383_vm8, %v351_v7, %v415_v15  ;;  %vm384_vm9 = vcmp.gt.f32.partialorder %v352_v16, 0.0  ;;  %v416_v24 = vmul.f32 0.1, %v352_v16 }
  0x43   : > { %v543_v26 = vadd.f32 %v778_v8, %v447_v23  ;;  %v317_v27 = vmul.f32 %v889_v0, %v718_v19  ;;  %v318_v28 = vmul.f32 %v889_v0, %v719_v20  ;;  %v723_v32 = vunpack.c.h.bf16 %v805_v21 }
  0x44   : > { %574 = vst [vmem:[%s921_s6 + $0xb8] sm:$0xff] %v542_v22  ;;  %v448_v30 = vsel %vm384_vm9, %v352_v16, %v416_v24  ;;  %v782_v35 = vunpack.c.l.bf16 %v819_v25  ;;  %v783_v37 = vunpack.c.h.bf16 %v819_v25  ;;  %v319_v38 = vmul.f32 %v889_v0, %v722_v31 }
  0x45   : > { %575 = vst [vmem:[%s921_s6 + $0xc0] sm:$0xff] %v543_v26  ;;  %v544_v33 = vadd.f32 %v779_v18, %v448_v30  ;;  %v353_v34 = vadd.f32 %v894_v1, %v317_v27  ;;  %v354_v36 = vadd.f32 %v894_v1, %v318_v28  ;;  %v320_v40 = vmul.f32 %v889_v0, %v723_v32 }
  0x46   : > { %v726_v41 = vunpack.c.l.bf16 %v806_v29  ;;  %v727_v43 = vunpack.c.h.bf16 %v806_v29  ;;  %v355_v45 = vadd.f32 %v894_v1, %v319_v38  ;;  %v786_v49 = vunpack.c.l.bf16 %v820_v39 }
  0x47   : > { %576 = vst [vmem:[%s921_s6 + $0xc8] sm:$0xff] %v544_v33  ;;  %vm385_vm10 = vcmp.gt.f32.partialorder %v353_v34, 0.0  ;;  %v417_v42 = vmul.f32 0.1, %v353_v34  ;;  %vm386_vm11 = vcmp.gt.f32.partialorder %v354_v36, 0.0  ;;  %v356_v46 = vadd.f32 %v894_v1, %v320_v40 }
  0x48   : > { %v418_v44 = vmul.f32 0.1, %v354_v36  ;;  %v321_v47 = vmul.f32 %v889_v0, %v726_v41  ;;  %v787_v50 = vunpack.c.h.bf16 %v820_v39  ;;  %v322_v52 = vmul.f32 %v889_v0, %v727_v43 }
  0x49   : > { %v449_v48 = vsel %vm385_vm10, %v353_v34, %v417_v42  ;;  %vm387_vm12 = vcmp.gt.f32.partialorder %v355_v45, 0.0  ;;  %v419_v55 = vmul.f32 0.1, %v355_v45  ;;  %vm388_vm13 = vcmp.gt.f32.partialorder %v356_v46, 0.0 }
  0x4a   : > { %v545_v53 = vadd.f32 %v782_v35, %v449_v48  ;;  %v450_v54 = vsel %vm386_vm11, %v354_v36, %v418_v44  ;;  %v420_v57 = vmul.f32 0.1, %v356_v46  ;;  %v357_v58 = vadd.f32 %v894_v1, %v321_v47 }
  0x4b   : > { %v546_v56 = vadd.f32 %v783_v37, %v450_v54  ;;  %v451_v59 = vsel %vm387_vm12, %v355_v45, %v419_v55  ;;  %v790_v60 = vunpack.c.l.bf16 %v821_v51  ;;  %v358_v61 = vadd.f32 %v894_v1, %v322_v52 }
  0x4c   : > { %577 = vst [vmem:[%s921_s6 + $0xd0] sm:$0xff] %v545_v53  ;;  %v791_v62 = vunpack.c.h.bf16 %v821_v51  ;;  %v547_v0 = vadd.f32 %v786_v49, %v451_v59  ;;  %v452_v63 = vsel %vm388_vm13, %v356_v46, %v420_v57  ;;  %vm389_vm14 = vcmp.gt.f32.partialorder %v357_v58, 0.0 }
  0x4d   : > { %578 = vst [vmem:[%s921_s6 + $0xd8] sm:$0xff] %v546_v56  ;;  %v421_v2 = vmul.f32 0.1, %v357_v58  ;;  %v548_v3 = vadd.f32 %v787_v50, %v452_v63  ;;  %vm390_vm15 = vcmp.gt.f32.partialorder %v358_v61, 0.0  ;;  %v422_v4 = vmul.f32 0.1, %v358_v61 }
  0x4e   : > { %579 = vst [vmem:[%s921_s6 + $0xe0] sm:$0xff] %v547_v0 }
  0x4f   : > { %v453_v5 = vsel %vm389_vm14, %v357_v58, %v421_v2  ;;  %580 = vst [vmem:[%s921_s6 + $0xe8] sm:$0xff] %v548_v3  ;;  %v454_v7 = vsel %vm390_vm15, %v358_v61, %v422_v4 }
  0x50   : > { %v549_v6 = vadd.f32 %v790_v60, %v453_v5  ;;  %v550_v8 = vadd.f32 %v791_v62, %v454_v7 }
  0x52   : > { %581 = vst [vmem:[%s921_s6 + $0xf0] sm:$0xff] %v549_v6 }
  0x53   : > { %582 = vst [vmem:[%s921_s6 + $0xf8] sm:$0xff] %v550_v8 }
  0x54 PF: > { %s14_s15 = sadd.s32 1, %s838_s15  }
  0x55   : > { %p11_p4 = scmp.ge.s32.totalorder %s14_s15, 4  }
  0x57   :  { %13 = sbr.rel (!%p11_p4) target bundleno = 1 (0x1), region = 69 }

// kernel: basic_block_forward.4
= control target key start
LH: loop header
LB: loop body
LE: loop exit
PB: predicated region body
PF: predicated region fallthrough
CT: control target
= control target key end

     0   :  { %s3796_s21 = smov 0   ;;  %s4711_s0 = inlined_call_operand.vmem [shape: bf16[512,128], index: 0, kind: input, shape index: {}]   ;;  %s4712_s1 = inlined_call_operand.vmem [shape: bf16[128,256], index: 1, kind: input, shape index: {}]   ;;  %s4713_s2 = inlined_call_operand.vmem [shape: f32[1,256], index: 2, kind: input, shape index: {}]   ;;  %s4714_s3 = inlined_call_operand.vmem [shape: f32[1,256], index: 3, kind: input, shape index: {}]   ;;  %s4715_s4 = inlined_call_operand.vmem [shape: bf16[3,256,128], index: 4, kind: input, shape index: {}]   ;;  %s4716_s5 = inlined_call_operand.vmem [shape: f32[2,2,128], index: 5, kind: output, shape index: {0}]   ;;  %s4717_s6 = inlined_call_operand.vmem [shape: bf16[512,128], index: 6, kind: output, shape index: {1}]  }
   0x1 LB: > { %s3802_s22 = sadd.s32 4294967295, %s3759_s21   ;;  %p3178_p0 = scmp.ge.s32.totalorder %s3759_s21, 1  ;;  %s3759_s21 = sphi %s3796_s21, %s17_s21  }
   0x2   : > { %p216_p1 = scmp.lt.s32.totalorder %s3759_s21, 3 }
   0x4   : > { %p217_p2 = pnand %p3178_p0, %p216_p1 }
   0x6   : > { %220 = sbr.rel (%p217_p2) target bundleno = 848 (0x350), region = 40 }
   0xb   : > { %v3306_v0 = vld [vmem:[%s4712_s1 + $0x70] sm:$0xf]  ;;  %v3601_v1 = vld [vmem:[%s4712_s1 + $0x74] sm:$0xf0]  ;;  %v3600_v2 = vld [vmem:[%s4712_s1 + $0x74] sm:$0xf] }
   0xc   : > { %v3307_v3 = vor.u32 %v3601_v1, %v3306_v0  ;;  %v3308_v4 = vld [vmem:[%s4712_s1 + $0x78] sm:$0xf0]  ;;  %v3298_v5 = vld [vmem:[%s4712_s1 + $0x60] sm:$0xf]  ;;  %v3599_v6 = vld [vmem:[%s4712_s1 + $0x64] sm:$0xf0] }
   0xd   : > { %v3311_v7 = vor.u32 %v3600_v2, %v3308_v4  ;;  %v3598_v8 = vld [vmem:[%s4712_s1 + $0x64] sm:$0xf]  ;;  %v3300_v9 = vld [vmem:[%s4712_s1 + $0x68] sm:$0xf0]  ;;  %v3299_v10 = vor.u32 %v3599_v6, %v3298_v5  ;;  %v3290_v12 = vld [vmem:[%s4712_s1 + $0x50] sm:$0xf] }
   0xe   : > { %490 = vmatpush.bf16.msra.mxu0 %v3307_v3  ;;  %v3303_v11 = vor.u32 %v3598_v8, %v3300_v9  ;;  %v3597_v13 = vld [vmem:[%s4712_s1 + $0x54] sm:$0xf0]  ;;  %v3596_v14 = vld [vmem:[%s4712_s1 + $0x54] sm:$0xf]  ;;  %v3292_v15 = vld [vmem:[%s4712_s1 + $0x58] sm:$0xf0] }
   0xf   : > { %579 = vmatpush.bf16.msra.mxu1 %v3311_v7  ;;  %v3291_v16 = vor.u32 %v3597_v13, %v3290_v12  ;;  %v3295_v17 = vor.u32 %v3596_v14, %v3292_v15  ;;  %v3282_v18 = vld [vmem:[%s4712_s1 + $0x40] sm:$0xf]  ;;  %v3595_v19 = vld [vmem:[%s4712_s1 + $0x44] sm:$0xf0]  ;;  %v3594_v20 = vld [vmem:[%s4712_s1 + $0x44] sm:$0xf] }
  0x10   : > { %v3284_v21 = vld [vmem:[%s4712_s1 + $0x48] sm:$0xf0]  ;;  %v3283_v22 = vor.u32 %v3595_v19, %v3282_v18  ;;  %v3274_v24 = vld [vmem:[%s4712_s1 + $0x30] sm:$0xf]  ;;  %v3593_v25 = vld [vmem:[%s4712_s1 + $0x34] sm:$0xf0] }
  0x11   : > { %v3287_v23 = vor.u32 %v3594_v20, %v3284_v21  ;;  %v3592_v26 = vld [vmem:[%s4712_s1 + $0x34] sm:$0xf]  ;;  %v3276_v27 = vld [vmem:[%s4712_s1 + $0x38] sm:$0xf0]  ;;  %s3179_s17 = sshll.u32 %s3802_s22, 5  ;;  %v3275_v28 = vor.u32 %v3593_v25, %v3274_v24  ;;  %v3607_v58 = vld [vmem:[%s4715_s4 + $0x28] sm:$0xff] }
  0x12   : > { %491 = vmatpush.bf16.msra.mxu0 %v3299_v10  ;;  %v3279_v29 = vor.u32 %v3592_v26, %v3276_v27  ;;  %v3266_v30 = vld [vmem:[%s4712_s1 + $0x20] sm:$0xf]  ;;  %v3591_v31 = vld [vmem:[%s4712_s1 + $0x24] sm:$0xf0]  ;;  %p251_p3 = scmp.lt.s32.totalorder %s3179_s17, 63  ;;  %v3609_v54 = vld [vmem:[%s4715_s4 + $0x38] sm:$0xff] }
  0x13   : > { %580 = vmatpush.bf16.msra.mxu1 %v3303_v11  ;;  %v3590_v32 = vld [vmem:[%s4712_s1 + $0x24] sm:$0xf]  ;;  %v3268_v33 = vld [vmem:[%s4712_s1 + $0x28] sm:$0xf0]  ;;  %v3267_v34 = vor.u32 %v3591_v31, %v3266_v30  ;;  %v3258_v36 = vld [vmem:[%s4712_s1 + $0x10] sm:$0xf]  ;;  %1160 = vmatpush.bf16.msra.mxu2 %v3609_v54 }
  0x14   : > { %v3271_v35 = vor.u32 %v3590_v32, %v3268_v33  ;;  %v3589_v37 = vld [vmem:[%s4712_s1 + $0x14] sm:$0xf0]  ;;  %s4739_s17 = smov (!%p251_p3, %s3179_s17), 63  ;;  %v3588_v38 = vld [vmem:[%s4712_s1 + $0x14] sm:$0xf]  ;;  %v3615_v59 = vld [vmem:[%s4715_s4 + $0x68] sm:$0xff] }
  0x15   : > { %v3260_v39 = vld [vmem:[%s4712_s1 + $0x18] sm:$0xf0]  ;;  %v3259_v40 = vor.u32 %v3589_v37, %v3258_v36  ;;  %v3250_v42 = vld [vmem:[%s4712_s1] sm:$0xf]  ;;  %v3587_v43 = vld [vmem:[%s4712_s1 + $0x4] sm:$0xf0] }
  0x16   : > { %492 = vmatpush.bf16.msra.mxu0 %v3291_v16  ;;  %v3263_v41 = vor.u32 %v3588_v38, %v3260_v39  ;;  %s3180_s16 = sshll.u32 %s4739_s17, 2  ;;  %v3586_v44 = vld [vmem:[%s4712_s1 + $0x4] sm:$0xf]  ;;  %v3252_v45 = vld [vmem:[%s4712_s1 + $0x8] sm:$0xf0]  ;;  %v3251_v46 = vor.u32 %v3587_v43, %v3250_v42  ;;  %v3617_v55 = vld [vmem:[%s4715_s4 + $0x78] sm:$0xff] }
  0x17   : > { %581 = vmatpush.bf16.msra.mxu1 %v3295_v17  ;;  %s3911_s26 = scalar_lea.vmem %s4711_s0, %s3180_s16  ;;  %v3255_v47 = vor.u32 %v3586_v44, %v3252_v45  ;;  %v3608_v56 = vld [vmem:[%s4715_s4 + $0x30] sm:$0xff]  ;;  %1249 = vmatpush.bf16.msra.mxu3 %v3617_v55  ;;  %v3606_v60 = vld [vmem:[%s4715_s4 + $0x20] sm:$0xff]  ;;  %v3605_v63 = vld [vmem:[%s4715_s4 + $0x18] sm:$0xff]  ;;  %s4511_s9 = scalar_lea.vmem %s4717_s6, %s3180_s16 }
  0x18   : > { %v3570_v48 = vld [vmem:[%s3911_s26] sm:$0xff]  ;;  %v3571_v49 = vld [vmem:[%s3911_s26 + $0x8] sm:$0xff]  ;;  %v3572_v50 = vld [vmem:[%s3911_s26 + $0x10] sm:$0xff]  ;;  %1161 = vmatpush.bf16.msra.mxu2 %v3608_v56  ;;  %p256_p4 = scmp.lt.s32.totalorder %s3802_s22, 1 }
  0x19   : > { %v3573_v51 = vld [vmem:[%s3911_s26 + $0x18] sm:$0xff]  ;;  %v3574_v52 = vld [vmem:[%s3911_s26 + $0x20] sm:$0xff]  ;;  %v3575_v53 = vld [vmem:[%s3911_s26 + $0x28] sm:$0xff] }
  0x1a   : > { %493 = vmatpush.bf16.msra.mxu0 %v3283_v22  ;;  %v3616_v57 = vld [vmem:[%s4715_s4 + $0x70] sm:$0xff]  ;;  %v3614_v61 = vld [vmem:[%s4715_s4 + $0x60] sm:$0xff]  ;;  %v3613_v0 = vld [vmem:[%s4715_s4 + $0x58] sm:$0xff]  ;;  %s4741_s22 = smov (!%p256_p4, %s3802_s22), 1 }
  0x1b   : > { %582 = vmatpush.bf16.msra.mxu1 %v3287_v23  ;;  %1250 = vmatpush.bf16.msra.mxu3 %v3616_v57  ;;  %v3576_v62 = vld [vmem:[%s3911_s26 + $0x30] sm:$0xff]  ;;  %v3603_v3 = vld [vmem:[%s4715_s4 + $0x8] sm:$0xff]  ;;  %v3602_v5 = vld [vmem:[%s4715_s4] sm:$0xff]  ;;  %s3181_s17 = sshll.u32 %s4741_s22, 1 }
  0x1c   : > { %1162 = vmatpush.bf16.msra.mxu2 %v3607_v58  ;;  %v3604_v1 = vld [vmem:[%s4715_s4 + $0x10] sm:$0xff]  ;;  %v3611_v4 = vld [vmem:[%s4715_s4 + $0x48] sm:$0xff]  ;;  %v3610_v6 = vld [vmem:[%s4715_s4 + $0x40] sm:$0xff]  ;;  %s259_s11 = scalar_lea.vmem %s4716_s5, %s3181_s17 }
  0x1d   : > { %v3612_v2 = vld [vmem:[%s4715_s4 + $0x50] sm:$0xff]  ;;  %v3577_v7 = vld [vmem:[%s3911_s26 + $0x38] sm:$0xff]  ;;  %v668_v12 = vld [vmem:[%s4713_s2] sm:$0x3] }
  0x1e   : > { %494 = vmatpush.bf16.msra.mxu0 %v3275_v28  ;;  %v3625_v8 = vld [vmem:[%s4715_s4 + $0xb8] sm:$0xff]  ;;  %v3984_v13 = vperm.slane %v668_v12, 0  ;;  %v3578_v14 = vld [vmem:[%s3911_s26 + $0x40] sm:$0xff]  ;;  %v3990_v17 = vperm.slane %v668_v12, 1  ;;  %v3579_v37 = vld [vmem:[%s3911_s26 + $0x48] sm:$0xff] }
  0x1f   : > { %583 = vmatpush.bf16.msra.mxu1 %v3279_v29  ;;  %1251 = vmatpush.bf16.msra.mxu3 %v3615_v59  ;;  %v3641_v9 = vld [vmem:[%s4715_s4 + $0x138] sm:$0xff]  ;;  %v738_v16 = vld [vmem:[%s4714_s3] sm:$0x3] }
  0x20   : > { %1163 = vmatpush.bf16.msra.mxu2 %v3606_v60  ;;  %v3649_v10 = vld [vmem:[%s4715_s4 + $0x178] sm:$0xff]  ;;  %v3993_v20 = vperm.slane %v738_v16, 0  ;;  %v3996_v22 = vperm.slane %v738_v16, 1 }
  0x21   : > { %v3633_v11 = vld [vmem:[%s4715_s4 + $0xf8] sm:$0xff] }
  0x22   : > { %495 = vmatpush.bf16.msra.mxu0 %v3267_v34 }
  0x23   : > { %584 = vmatpush.bf16.msra.mxu1 %v3271_v35  ;;  %1252 = vmatpush.bf16.msra.mxu3 %v3614_v61 }
  0x24   : > { %1164 = vmatpush.bf16.msra.mxu2 %v3605_v63 }
  0x26   : > { %496 = vmatpush.bf16.msra.mxu0 %v3259_v40 }
  0x27   : > { %585 = vmatpush.bf16.msra.mxu1 %v3263_v41  ;;  %1253 = vmatpush.bf16.msra.mxu3 %v3613_v0  ;;  %v3580_v0 = vld [vmem:[%s3911_s26 + $0x50] sm:$0xff] }
  0x28   : > { %1165 = vmatpush.bf16.msra.mxu2 %v3604_v1 }
  0x2a   : > { %497 = vmatpush.bf16.msra.mxu0 %v3251_v46  ;;  %v3624_v46 = vld [vmem:[%s4715_s4 + $0xb0] sm:$0xff] }
  0x2b   : > { %586 = vmatpush.bf16.msra.mxu1 %v3255_v47  ;;  %1254 = vmatpush.bf16.msra.mxu3 %v3612_v2  ;;  %v3640_v47 = vld [vmem:[%s4715_s4 + $0x130] sm:$0xff] }
  0x2c   : > { %1166 = vmatpush.bf16.msra.mxu2 %v3603_v3 }
  0x2d   : > { %498 = vmatmul.bf16.vlgmr.msra.gmra.mxu0 %v3570_v48 }
  0x2e   : > { %587 = vmatmul.bf16.vlgmr.msra.gmra.mxu1 %v3570_v48  ;;  %1500 = vmatpush.bf16.msrb.mxu0 %v3641_v9  ;;  %v3648_v48 = vld [vmem:[%s4715_s4 + $0x170] sm:$0xff] }
  0x2f   : > { %1255 = vmatpush.bf16.msra.mxu3 %v3611_v4  ;;  %1589 = vmatpush.bf16.msrb.mxu1 %v3649_v10 }
  0x30   : > { %1167 = vmatpush.bf16.msra.mxu2 %v3602_v5 }
  0x32   : > { %1501 = vmatpush.bf16.msrb.mxu0 %v3640_v47 }
  0x33   : > { %1256 = vmatpush.bf16.msra.mxu3 %v3610_v6  ;;  %1590 = vmatpush.bf16.msrb.mxu1 %v3648_v48 }
  0x34   : > { %2577 = vmatpush.bf16.msrb.mxu2 %v3625_v8 }
  0x37   : > { %2666 = vmatpush.bf16.msrb.mxu3 %v3633_v11 }
  0x38   : > { %2578 = vmatpush.bf16.msrb.mxu2 %v3624_v46 }
  0x3d   : > { %503 = vmatmul.bf16.gmra.mxu0 %v3571_v49 }
  0x3e   : > { %592 = vmatmul.bf16.gmra.mxu1 %v3571_v49 }
  0x4d   : > { %508 = vmatmul.bf16.gmra.mxu0 %v3572_v50 }
  0x4e   : > { %597 = vmatmul.bf16.gmra.mxu1 %v3572_v50  ;;  %v3632_v50 = vld [vmem:[%s4715_s4 + $0xf0] sm:$0xff] }
  0x4f   : > { %2667 = vmatpush.bf16.msrb.mxu3 %v3632_v50 }
  0x5d   : > { %513 = vmatmul.bf16.gmra.mxu0 %v3573_v51 }
  0x5e   : > { %602 = vmatmul.bf16.gmra.mxu1 %v3573_v51 }
  0x6d   : > { %518 = vmatmul.bf16.gmra.mxu0 %v3574_v52 }
  0x6e   : > { %607 = vmatmul.bf16.gmra.mxu1 %v3574_v52 }
  0x7d   : > { %523 = vmatmul.bf16.gmra.mxu0 %v3575_v53 }
  0x7e   : > { %612 = vmatmul.bf16.gmra.mxu1 %v3575_v53 }
  0x8d   : > { %528 = vmatmul.bf16.gmra.mxu0 %v3576_v62 }
  0x8e   : > { %617 = vmatmul.bf16.gmra.mxu1 %v3576_v62 }
  0x9d   : > { %533 = vmatmul.bf16.gmra.mxu0 %v3577_v7 }
  0x9e   : > { %622 = vmatmul.bf16.gmra.mxu1 %v3577_v7 }
  0xaa   : > { %v499_v15 = vpop.f32.mrf.mxu0 }
  0xab   : > { %v588_v18 = vpop.f32.mrf.mxu1  ;;  %v674_v19 = vmul.f32 %v3984_v13, %v499_v15 }
  0xac   : > { %v675_v21 = vmul.f32 %v3990_v17, %v588_v18 }
  0xad   : > { %538 = vmatmul.bf16.gmra.mxu0 %v3578_v14  ;;  %v744_v23 = vadd.f32 %v3993_v20, %v674_v19 }
  0xae   : > { %627 = vmatmul.bf16.gmra.mxu1 %v3578_v14  ;;  %v745_v24 = vadd.f32 %v3996_v22, %v675_v21 }
  0xaf   : > { %v872_v29 = vmul.f32 0.1, %v744_v23  ;;  %vm808_vm0 = vcmp.gt.f32.partialorder %v744_v23, 0.0 }
  0xb0   : > { %v873_v31 = vmul.f32 0.1, %v745_v24  ;;  %vm809_vm1 = vcmp.gt.f32.partialorder %v745_v24, 0.0 }
  0xb1   : > { %v936_v35 = vsel %vm808_vm0, %v744_v23, %v872_v29 }
  0xb2   : > { %v501_v25 = vpop.f32.mrf.mxu0  ;;  %v937_v40 = vsel %vm809_vm1, %v745_v24, %v873_v31 }
  0xb3   : > { %v676_v26 = vmul.f32 %v3984_v13, %v501_v25  ;;  %v590_v27 = vpop.f32.mrf.mxu1 }
  0xb4   : > { %v677_v28 = vmul.f32 %v3990_v17, %v590_v27  ;;  %v3581_v27 = vld [vmem:[%s3911_s26 + $0x58] sm:$0xff] }
  0xb5   : > { %v746_v30 = vadd.f32 %v3993_v20, %v676_v26 }
  0xb6   : > { %v747_v32 = vadd.f32 %v3996_v22, %v677_v28 }
  0xb7   : > { %v874_v33 = vmul.f32 0.1, %v746_v30  ;;  %vm810_vm2 = vcmp.gt.f32.partialorder %v746_v30, 0.0 }
  0xb8   : > { %v875_v34 = vmul.f32 0.1, %v747_v32  ;;  %vm811_vm3 = vcmp.gt.f32.partialorder %v747_v32, 0.0 }
  0xb9   : > { %v938_v36 = vsel %vm810_vm2, %v746_v30, %v874_v33 }
  0xba   : > { %v504_v38 = vpop.f32.mrf.mxu0  ;;  %v4005_v39 = vpack.c.bf16 %v938_v36, %v936_v35  ;;  %v939_v41 = vsel %vm811_vm3, %v747_v32, %v875_v34  ;;  %v3623_v36 = vld [vmem:[%s4715_s4 + $0xa8] sm:$0xff] }
  0xbb   : > { %v593_v42 = vpop.f32.mrf.mxu1  ;;  %v4007_v43 = vpack.c.bf16 %v939_v41, %v937_v40  ;;  %v678_v44 = vmul.f32 %v3984_v13, %v504_v38  ;;  %v3647_v38 = vld [vmem:[%s4715_s4 + $0x168] sm:$0xff]  ;;  %2579 = vmatpush.bf16.msrb.mxu2 %v3623_v36  ;;  %v3622_v36 = vld [vmem:[%s4715_s4 + $0xa0] sm:$0xff] }
  0xbc   : > { %1168 = vmatmul.bf16.vlgmr.msra.gmra.mxu2 %v4005_v39  ;;  %v679_v45 = vmul.f32 %v3990_v17, %v593_v42  ;;  %v3631_v41 = vld [vmem:[%s4715_s4 + $0xe8] sm:$0xff]  ;;  %1591 = vmatpush.bf16.msrb.mxu1 %v3647_v38 }
  0xbd   : > { %1257 = vmatmul.bf16.vlgmr.msra.gmra.mxu3 %v4007_v43  ;;  %543 = vmatmul.bf16.gmra.mxu0 %v3579_v37  ;;  %v748_v49 = vadd.f32 %v3993_v20, %v678_v44 }
  0xbe   : > { %632 = vmatmul.bf16.gmra.mxu1 %v3579_v37  ;;  %v749_v51 = vadd.f32 %v3996_v22, %v679_v45  ;;  %v3639_v37 = vld [vmem:[%s4715_s4 + $0x128] sm:$0xff]  ;;  %2668 = vmatpush.bf16.msrb.mxu3 %v3631_v41  ;;  %v3644_v41 = vld [vmem:[%s4715_s4 + $0x150] sm:$0xff] }
  0xbf   : > { %v876_v56 = vmul.f32 0.1, %v748_v49  ;;  %vm812_vm4 = vcmp.gt.f32.partialorder %v748_v49, 0.0  ;;  %1502 = vmatpush.bf16.msrb.mxu0 %v3639_v37  ;;  %v3630_v37 = vld [vmem:[%s4715_s4 + $0xe0] sm:$0xff]  ;;  %2580 = vmatpush.bf16.msrb.mxu2 %v3622_v36 }
  0xc0   : > { %v877_v58 = vmul.f32 0.1, %v749_v51  ;;  %vm813_vm5 = vcmp.gt.f32.partialorder %v749_v51, 0.0 }
  0xc1   : > { %v940_v62 = vsel %vm812_vm4, %v748_v49, %v876_v56  ;;  %v3582_v56 = vld [vmem:[%s3911_s26 + $0x60] sm:$0xff] }
  0xc2   : > { %v506_v52 = vpop.f32.mrf.mxu0  ;;  %v941_v3 = vsel %vm813_vm5, %v749_v51, %v877_v58  ;;  %2669 = vmatpush.bf16.msrb.mxu3 %v3630_v37 }
  0xc3   : > { %v680_v53 = vmul.f32 %v3984_v13, %v506_v52  ;;  %v595_v54 = vpop.f32.mrf.mxu1 }
  0xc4   : > { %v681_v55 = vmul.f32 %v3990_v17, %v595_v54 }
  0xc5   : > { %v750_v57 = vadd.f32 %v3993_v20, %v680_v53 }
  0xc6   : > { %v751_v59 = vadd.f32 %v3996_v22, %v681_v55 }
  0xc7   : > { %v878_v60 = vmul.f32 0.1, %v750_v57  ;;  %vm814_vm6 = vcmp.gt.f32.partialorder %v750_v57, 0.0 }
  0xc8   : > { %v879_v61 = vmul.f32 0.1, %v751_v59  ;;  %vm815_vm7 = vcmp.gt.f32.partialorder %v751_v59, 0.0 }
  0xc9   : > { %v942_v63 = vsel %vm814_vm6, %v750_v57, %v878_v60 }
  0xca   : > { %v509_v1 = vpop.f32.mrf.mxu0  ;;  %v4032_v2 = vpack.c.bf16 %v942_v63, %v940_v62  ;;  %v943_v4 = vsel %vm815_vm7, %v751_v59, %v879_v61 }
  0xcb   : > { %v598_v5 = vpop.f32.mrf.mxu1  ;;  %v4034_v6 = vpack.c.bf16 %v943_v4, %v941_v3  ;;  %v682_v7 = vmul.f32 %v3984_v13, %v509_v1 }
  0xcc   : > { %1173 = vmatmul.bf16.gmra.mxu2 %v4032_v2  ;;  %v683_v8 = vmul.f32 %v3990_v17, %v598_v5 }
  0xcd   : > { %1262 = vmatmul.bf16.gmra.mxu3 %v4034_v6  ;;  %548 = vmatmul.bf16.gmra.mxu0 %v3580_v0  ;;  %v752_v9 = vadd.f32 %v3993_v20, %v682_v7 }
  0xce   : > { %637 = vmatmul.bf16.gmra.mxu1 %v3580_v0  ;;  %v753_v10 = vadd.f32 %v3996_v22, %v683_v8 }
  0xcf   : > { %v880_v16 = vmul.f32 0.1, %v752_v9  ;;  %vm816_vm8 = vcmp.gt.f32.partialorder %v752_v9, 0.0 }
  0xd0   : > { %v881_v19 = vmul.f32 0.1, %v753_v10  ;;  %vm817_vm9 = vcmp.gt.f32.partialorder %v753_v10, 0.0 }
  0xd1   : > { %v944_v25 = vsel %vm816_vm8, %v752_v9, %v880_v16 }
  0xd2   : > { %v511_v11 = vpop.f32.mrf.mxu0  ;;  %v945_v30 = vsel %vm817_vm9, %v753_v10, %v881_v19  ;;  %v3583_v19 = vld [vmem:[%s3911_s26 + $0x68] sm:$0xff] }
  0xd3   : > { %v684_v12 = vmul.f32 %v3984_v13, %v511_v11  ;;  %v600_v14 = vpop.f32.mrf.mxu1 }
  0xd4   : > { %v685_v15 = vmul.f32 %v3990_v17, %v600_v14 }
  0xd5   : > { %v754_v18 = vadd.f32 %v3993_v20, %v684_v12 }
  0xd6   : > { %v755_v21 = vadd.f32 %v3996_v22, %v685_v15 }
  0xd7   : > { %v882_v23 = vmul.f32 0.1, %v754_v18  ;;  %vm818_vm10 = vcmp.gt.f32.partialorder %v754_v18, 0.0 }
  0xd8   : > { %v883_v24 = vmul.f32 0.1, %v755_v21  ;;  %vm819_vm11 = vcmp.gt.f32.partialorder %v755_v21, 0.0 }
  0xd9   : > { %v946_v26 = vsel %vm818_vm10, %v754_v18, %v882_v23  ;;  %v3646_v23 = vld [vmem:[%s4715_s4 + $0x160] sm:$0xff] }
  0xda   : > { %v514_v28 = vpop.f32.mrf.mxu0  ;;  %v4047_v29 = vpack.c.bf16 %v946_v26, %v944_v25  ;;  %v947_v31 = vsel %vm819_vm11, %v755_v21, %v883_v24  ;;  %v3638_v21 = vld [vmem:[%s4715_s4 + $0x120] sm:$0xff]  ;;  %1592 = vmatpush.bf16.msrb.mxu1 %v3646_v23 }
  0xdb   : > { %v603_v32 = vpop.f32.mrf.mxu1  ;;  %v4049_v33 = vpack.c.bf16 %v947_v31, %v945_v30  ;;  %v686_v34 = vmul.f32 %v3984_v13, %v514_v28  ;;  %1503 = vmatpush.bf16.msrb.mxu0 %v3638_v21 }
  0xdc   : > { %1178 = vmatmul.bf16.gmra.mxu2 %v4047_v29  ;;  %v687_v35 = vmul.f32 %v3990_v17, %v603_v32  ;;  %v3637_v32 = vld [vmem:[%s4715_s4 + $0x118] sm:$0xff] }
  0xdd   : > { %1267 = vmatmul.bf16.gmra.mxu3 %v4049_v33  ;;  %553 = vmatmul.bf16.gmra.mxu0 %v3581_v27  ;;  %v756_v40 = vadd.f32 %v3993_v20, %v686_v34  ;;  %v3645_v34 = vld [vmem:[%s4715_s4 + $0x158] sm:$0xff] }
  0xde   : > { %642 = vmatmul.bf16.gmra.mxu1 %v3581_v27  ;;  %v757_v42 = vadd.f32 %v3996_v22, %v687_v35 }
  0xdf   : > { %v884_v48 = vmul.f32 0.1, %v756_v40  ;;  %vm820_vm12 = vcmp.gt.f32.partialorder %v756_v40, 0.0  ;;  %1504 = vmatpush.bf16.msrb.mxu0 %v3637_v32  ;;  %1593 = vmatpush.bf16.msrb.mxu1 %v3645_v34 }
  0xe0   : > { %v885_v50 = vmul.f32 0.1, %v757_v42  ;;  %vm821_vm13 = vcmp.gt.f32.partialorder %v757_v42, 0.0 }
  0xe1   : > { %v948_v54 = vsel %vm820_vm12, %v756_v40, %v884_v48  ;;  %v3636_v40 = vld [vmem:[%s4715_s4 + $0x110] sm:$0xff] }
  0xe2   : > { %v516_v44 = vpop.f32.mrf.mxu0  ;;  %v949_v59 = vsel %vm821_vm13, %v757_v42, %v885_v50  ;;  %v3635_v50 = vld [vmem:[%s4715_s4 + $0x108] sm:$0xff] }
  0xe3   : > { %v688_v45 = vmul.f32 %v3984_v13, %v516_v44  ;;  %v605_v46 = vpop.f32.mrf.mxu1  ;;  %1505 = vmatpush.bf16.msrb.mxu0 %v3636_v40  ;;  %1594 = vmatpush.bf16.msrb.mxu1 %v3644_v41  ;;  %v3621_v41 = vld [vmem:[%s4715_s4 + $0x98] sm:$0xff] }
  0xe4   : > { %v689_v47 = vmul.f32 %v3990_v17, %v605_v46  ;;  %2581 = vmatpush.bf16.msrb.mxu2 %v3621_v41 }
  0xe5   : > { %v758_v49 = vadd.f32 %v3993_v20, %v688_v45 }
  0xe6   : > { %v759_v51 = vadd.f32 %v3996_v22, %v689_v47 }
  0xe7   : > { %v886_v52 = vmul.f32 0.1, %v758_v49  ;;  %vm822_vm14 = vcmp.gt.f32.partialorder %v758_v49, 0.0  ;;  %1506 = vmatpush.bf16.msrb.mxu0 %v3635_v50 }
  0xe8   : > { %v887_v53 = vmul.f32 0.1, %v759_v51  ;;  %vm823_vm15 = vcmp.gt.f32.partialorder %v759_v51, 0.0 }
  0xe9   : > { %v950_v55 = vsel %vm822_vm14, %v758_v49, %v886_v52 }
  0xea   : > { %v519_v57 = vpop.f32.mrf.mxu0  ;;  %v4074_v58 = vpack.c.bf16 %v950_v55, %v948_v54  ;;  %v951_v60 = vsel %vm823_vm15, %v759_v51, %v887_v53  ;;  %v3643_v51 = vld [vmem:[%s4715_s4 + $0x148] sm:$0xff] }
  0xeb   : > { %v608_v61 = vpop.f32.mrf.mxu1  ;;  %v4076_v62 = vpack.c.bf16 %v951_v60, %v949_v59  ;;  %v690_v63 = vmul.f32 %v3984_v13, %v519_v57  ;;  %1595 = vmatpush.bf16.msrb.mxu1 %v3643_v51  ;;  %v3584_v59 = vld [vmem:[%s3911_s26 + $0x70] sm:$0xff]  ;;  %v3634_v60 = vld [vmem:[%s4715_s4 + $0x100] sm:$0xff] }
  0xec   : > { %1183 = vmatmul.bf16.gmra.mxu2 %v4074_v58  ;;  %v691_v0 = vmul.f32 %v3990_v17, %v608_v61  ;;  %v3642_v61 = vld [vmem:[%s4715_s4 + $0x140] sm:$0xff]  ;;  %1507 = vmatpush.bf16.msrb.mxu0 %v3634_v60 }
  0xed   : > { %1272 = vmatmul.bf16.gmra.mxu3 %v4076_v62  ;;  %558 = vmatmul.bf16.gmra.mxu0 %v3582_v56  ;;  %v760_v1 = vadd.f32 %v3993_v20, %v690_v63 }
  0xee   : > { %647 = vmatmul.bf16.gmra.mxu1 %v3582_v56  ;;  %v761_v3 = vadd.f32 %v3996_v22, %v691_v0 }
  0xef   : > { %v888_v9 = vmul.f32 0.1, %v760_v1  ;;  %vm824_vm0 = vcmp.gt.f32.partialorder %v760_v1, 0.0  ;;  %1596 = vmatpush.bf16.msrb.mxu1 %v3642_v61 }
  0xf0   : > { %v889_v11 = vmul.f32 0.1, %v761_v3  ;;  %vm825_vm1 = vcmp.gt.f32.partialorder %v761_v3, 0.0 }
  0xf1   : > { %v952_v16 = vsel %vm824_vm0, %v760_v1, %v888_v9 }
  0xf2   : > { %v521_v4 = vpop.f32.mrf.mxu0  ;;  %v953_v26 = vsel %vm825_vm1, %v761_v3, %v889_v11 }
  0xf3   : > { %v692_v5 = vmul.f32 %v3984_v13, %v521_v4  ;;  %v610_v7 = vpop.f32.mrf.mxu1 }
  0xf4   : > { %v693_v8 = vmul.f32 %v3990_v17, %v610_v7 }
  0xf5   : > { %v762_v10 = vadd.f32 %v3993_v20, %v692_v5 }
  0xf6   : > { %v763_v12 = vadd.f32 %v3996_v22, %v693_v8 }
  0xf7   : > { %v890_v14 = vmul.f32 0.1, %v762_v10  ;;  %vm826_vm2 = vcmp.gt.f32.partialorder %v762_v10, 0.0 }
  0xf8   : > { %v891_v15 = vmul.f32 0.1, %v763_v12  ;;  %vm827_vm3 = vcmp.gt.f32.partialorder %v763_v12, 0.0 }
  0xf9   : > { %v954_v18 = vsel %vm826_vm2, %v762_v10, %v890_v14 }
  0xfa   : > { %v524_v24 = vpop.f32.mrf.mxu0  ;;  %v4095_v25 = vpack.c.bf16 %v954_v18, %v952_v16  ;;  %v955_v27 = vsel %vm827_vm3, %v763_v12, %v891_v15 }
  0xfb   : > { %v613_v28 = vpop.f32.mrf.mxu1  ;;  %v4097_v30 = vpack.c.bf16 %v955_v27, %v953_v26  ;;  %v694_v31 = vmul.f32 %v3984_v13, %v524_v24 }
  0xfc   : > { %1188 = vmatmul.bf16.gmra.mxu2 %v4095_v25  ;;  %v695_v35 = vmul.f32 %v3990_v17, %v613_v28  ;;  %v3585_v28 = vld [vmem:[%s3911_s26 + $0x78] sm:$0xff] }
  0xfd   : > { %1277 = vmatmul.bf16.gmra.mxu3 %v4097_v30  ;;  %563 = vmatmul.bf16.gmra.mxu0 %v3583_v19  ;;  %v764_v38 = vadd.f32 %v3993_v20, %v694_v31 }
  0xfe   : > { %652 = vmatmul.bf16.gmra.mxu1 %v3583_v19  ;;  %v765_v42 = vadd.f32 %v3996_v22, %v695_v35 }
  0xff   : > { %v892_v48 = vmul.f32 0.1, %v764_v38  ;;  %vm828_vm4 = vcmp.gt.f32.partialorder %v764_v38, 0.0 }
 0x100   : > { %v893_v52 = vmul.f32 0.1, %v765_v42  ;;  %vm829_vm5 = vcmp.gt.f32.partialorder %v765_v42, 0.0 }
 0x101   : > { %v956_v56 = vsel %vm828_vm4, %v764_v38, %v892_v48 }
 0x102   : > { %v526_v44 = vpop.f32.mrf.mxu0  ;;  %v957_v1 = vsel %vm829_vm5, %v765_v42, %v893_v52  ;;  %v3629_v42 = vld [vmem:[%s4715_s4 + $0xd8] sm:$0xff] }
 0x103   : > { %v696_v45 = vmul.f32 %v3984_v13, %v526_v44  ;;  %v615_v46 = vpop.f32.mrf.mxu1  ;;  %2670 = vmatpush.bf16.msrb.mxu3 %v3629_v42 }
 0x104   : > { %v697_v47 = vmul.f32 %v3990_v17, %v615_v46 }
 0x105   : > { %v766_v49 = vadd.f32 %v3993_v20, %v696_v45 }
 0x106   : > { %v767_v53 = vadd.f32 %v3996_v22, %v697_v47 }
 0x107   : > { %v894_v54 = vmul.f32 0.1, %v766_v49  ;;  %vm830_vm6 = vcmp.gt.f32.partialorder %v766_v49, 0.0 }
 0x108   : > { %v895_v55 = vmul.f32 0.1, %v767_v53  ;;  %vm831_vm7 = vcmp.gt.f32.partialorder %v767_v53, 0.0 }
 0x109   : > { %v958_v57 = vsel %vm830_vm6, %v766_v49, %v894_v54 }
 0x10a   : > { %v529_v63 = vpop.f32.mrf.mxu0  ;;  %v4140_v0 = vpack.c.bf16 %v958_v57, %v956_v56  ;;  %v959_v3 = vsel %vm831_vm7, %v767_v53, %v895_v55 }
 0x10b   : > { %v618_v4 = vpop.f32.mrf.mxu1  ;;  %v4142_v5 = vpack.c.bf16 %v959_v3, %v957_v1  ;;  %v698_v7 = vmul.f32 %v3984_v13, %v529_v63 }
 0x10c   : > { %1193 = vmatmul.bf16.gmra.mxu2 %v4140_v0  ;;  %v699_v8 = vmul.f32 %v3990_v17, %v618_v4 }
 0x10d   : > { %1282 = vmatmul.bf16.gmra.mxu3 %v4142_v5  ;;  %568 = vmatmul.bf16.gmra.mxu0 %v3584_v59  ;;  %v768_v9 = vadd.f32 %v3993_v20, %v698_v7 }
 0x10e   : > { %657 = vmatmul.bf16.gmra.mxu1 %v3584_v59  ;;  %v769_v10 = vadd.f32 %v3996_v22, %v699_v8 }
 0x10f   : > { %v896_v16 = vmul.f32 0.1, %v768_v9  ;;  %vm832_vm8 = vcmp.gt.f32.partialorder %v768_v9, 0.0 }
 0x110   : > { %v897_v19 = vmul.f32 0.1, %v769_v10  ;;  %vm833_vm9 = vcmp.gt.f32.partialorder %v769_v10, 0.0 }
 0x111   : > { %v960_v26 = vsel %vm832_vm8, %v768_v9, %v896_v16  ;;  %vm1710_vm8 = vcmask 1040384  }
 0x112   : > { %v531_v11 = vpop.f32.mrf.mxu0  ;;  %v961_v34 = vsel %vm833_vm9, %v769_v10, %v897_v19 }
 0x113   : > { %v700_v12 = vmul.f32 %v3984_v13, %v531_v11  ;;  %v620_v14 = vpop.f32.mrf.mxu1 }
 0x114   : > { %v701_v15 = vmul.f32 %v3990_v17, %v620_v14 }
 0x115   : > { %v770_v18 = vadd.f32 %v3993_v20, %v700_v12 }
 0x116   : > { %v771_v21 = vadd.f32 %v3996_v22, %v701_v15 }
 0x117   : > { %v898_v23 = vmul.f32 0.1, %v770_v18  ;;  %vm834_vm10 = vcmp.gt.f32.partialorder %v770_v18, 0.0 }
 0x118   : > { %v899_v24 = vmul.f32 0.1, %v771_v21  ;;  %vm835_vm11 = vcmp.gt.f32.partialorder %v771_v21, 0.0 }
 0x119   : > { %v962_v27 = vsel %vm834_vm10, %v770_v18, %v898_v23 }
 0x11a   : > { %v534_v31 = vpop.f32.mrf.mxu0  ;;  %v4155_v32 = vpack.c.bf16 %v962_v27, %v960_v26  ;;  %v963_v35 = vsel %vm835_vm11, %v771_v21, %v899_v24 }
 0x11b   : > { %v623_v36 = vpop.f32.mrf.mxu1  ;;  %v4157_v37 = vpack.c.bf16 %v963_v35, %v961_v34  ;;  %v702_v38 = vmul.f32 %v3984_v13, %v534_v31 }
 0x11c   : > { %1198 = vmatmul.bf16.gmra.mxu2 %v4155_v32  ;;  %v703_v40 = vmul.f32 %v3990_v17, %v623_v36 }
 0x11d   : > { %1287 = vmatmul.bf16.gmra.mxu3 %v4157_v37  ;;  %573 = vmatmul.bf16.gmra.mxu0 %v3585_v28  ;;  %v772_v44 = vadd.f32 %v3993_v20, %v702_v38 }
 0x11e   : > { %662 = vmatmul.bf16.gmra.mxu1 %v3585_v28  ;;  %v773_v45 = vadd.f32 %v3996_v22, %v703_v40 }
 0x11f   : > { %v900_v50 = vmul.f32 0.1, %v772_v44  ;;  %vm836_vm12 = vcmp.gt.f32.partialorder %v772_v44, 0.0 }
 0x120   : > { %v901_v52 = vmul.f32 0.1, %v773_v45  ;;  %vm837_vm13 = vcmp.gt.f32.partialorder %v773_v45, 0.0 }
 0x121   : > { %v964_v56 = vsel %vm836_vm12, %v772_v44, %v900_v50  ;;  %v3620_v44 = vld [vmem:[%s4715_s4 + $0x90] sm:$0xff] }
 0x122   : > { %v536_v46 = vpop.f32.mrf.mxu0  ;;  %v965_v61 = vsel %vm837_vm13, %v773_v45, %v901_v52  ;;  %v3628_v45 = vld [vmem:[%s4715_s4 + $0xd0] sm:$0xff]  ;;  %2582 = vmatpush.bf16.msrb.mxu2 %v3620_v44 }
 0x123   : > { %v704_v47 = vmul.f32 %v3984_v13, %v536_v46  ;;  %v625_v48 = vpop.f32.mrf.mxu1  ;;  %2671 = vmatpush.bf16.msrb.mxu3 %v3628_v45 }
 0x124   : > { %v705_v49 = vmul.f32 %v3990_v17, %v625_v48 }
 0x125   : > { %v774_v51 = vadd.f32 %v3993_v20, %v704_v47 }
 0x126   : > { %v775_v53 = vadd.f32 %v3996_v22, %v705_v49 }
 0x127   : > { %v902_v54 = vmul.f32 0.1, %v774_v51  ;;  %vm838_vm14 = vcmp.gt.f32.partialorder %v774_v51, 0.0 }
 0x128   : > { %v903_v55 = vmul.f32 0.1, %v775_v53  ;;  %vm839_vm15 = vcmp.gt.f32.partialorder %v775_v53, 0.0 }
 0x129   : > { %v966_v57 = vsel %vm838_vm14, %v774_v51, %v902_v54 }
 0x12a   : > { %v539_v59 = vpop.f32.mrf.mxu0  ;;  %v4175_v60 = vpack.c.bf16 %v966_v57, %v964_v56  ;;  %v967_v63 = vsel %vm839_vm15, %v775_v53, %v903_v55 }
 0x12b   : > { %v628_v1 = vpop.f32.mrf.mxu1  ;;  %v4177_v3 = vpack.c.bf16 %v967_v63, %v965_v61  ;;  %v706_v4 = vmul.f32 %v3984_v13, %v539_v59 }
 0x12c   : > { %1203 = vmatmul.bf16.gmra.mxu2 %v4175_v60  ;;  %v707_v7 = vmul.f32 %v3990_v17, %v628_v1 }
 0x12d   : > { %1292 = vmatmul.bf16.gmra.mxu3 %v4177_v3  ;;  %1508 = vmatmul.bf16.vlgmr.msrb.gmra.mxu0 %v4005_v39  ;;  %v776_v8 = vadd.f32 %v3993_v20, %v706_v4 }
 0x12e   : > { %1597 = vmatmul.bf16.vlgmr.msrb.gmra.mxu1 %v4007_v43  ;;  %v777_v9 = vadd.f32 %v3996_v22, %v707_v7 }
 0x12f   : > { %v904_v15 = vmul.f32 0.1, %v776_v8  ;;  %vm840_vm0 = vcmp.gt.f32.partialorder %v776_v8, 0.0 }
 0x130   : > { %v905_v18 = vmul.f32 0.1, %v777_v9  ;;  %vm841_vm1 = vcmp.gt.f32.partialorder %v777_v9, 0.0 }
 0x131   : > { %v968_v24 = vsel %vm840_vm0, %v776_v8, %v904_v15 }
 0x132   : > { %v541_v10 = vpop.f32.mrf.mxu0  ;;  %v969_v31 = vsel %vm841_vm1, %v777_v9, %v905_v18 }
 0x133   : > { %v708_v11 = vmul.f32 %v3984_v13, %v541_v10  ;;  %v630_v12 = vpop.f32.mrf.mxu1 }
 0x134   : > { %v709_v14 = vmul.f32 %v3990_v17, %v630_v12 }
 0x135   : > { %v778_v16 = vadd.f32 %v3993_v20, %v708_v11 }
 0x136   : > { %v779_v19 = vadd.f32 %v3996_v22, %v709_v14 }
 0x137   : > { %v906_v21 = vmul.f32 0.1, %v778_v16  ;;  %vm842_vm2 = vcmp.gt.f32.partialorder %v778_v16, 0.0 }
 0x138   : > { %v907_v23 = vmul.f32 0.1, %v779_v19  ;;  %vm843_vm3 = vcmp.gt.f32.partialorder %v779_v19, 0.0 }
 0x139   : > { %v970_v26 = vsel %vm842_vm2, %v778_v16, %v906_v21 }
 0x13a   : > { %v544_v27 = vpop.f32.mrf.mxu0  ;;  %v4191_v28 = vpack.c.bf16 %v970_v26, %v968_v24  ;;  %v971_v34 = vsel %vm843_vm3, %v779_v19, %v907_v23 }
 0x13b   : > { %v633_v35 = vpop.f32.mrf.mxu1  ;;  %v4193_v36 = vpack.c.bf16 %v971_v34, %v969_v31  ;;  %v710_v38 = vmul.f32 %v3984_v13, %v544_v27 }
 0x13c   : > { %1208 = vmatmul.bf16.gmra.mxu2 %v4191_v28  ;;  %v711_v40 = vmul.f32 %v3990_v17, %v633_v35 }
 0x13d   : > { %1297 = vmatmul.bf16.gmra.mxu3 %v4193_v36  ;;  %1513 = vmatmul.bf16.gmra.mxu0 %v4032_v2  ;;  %v780_v46 = vadd.f32 %v3993_v20, %v710_v38 }
 0x13e   : > { %1602 = vmatmul.bf16.gmra.mxu1 %v4034_v6  ;;  %v781_v48 = vadd.f32 %v3996_v22, %v711_v40 }
 0x13f   : > { %v1169_v41 = vpop.f32.mrf.mxu2  ;;  %v908_v53 = vmul.f32 0.1, %v780_v46  ;;  %vm844_vm4 = vcmp.gt.f32.partialorder %v780_v46, 0.0 }
 0x140   : > { %v1258_v42 = vpop.f32.mrf.mxu3  ;;  %v909_v55 = vmul.f32 0.1, %v781_v48  ;;  %vm845_vm5 = vcmp.gt.f32.partialorder %v781_v48, 0.0 }
 0x141   : > { %v4208_v47 = vadd.f32 %v1258_v42, %v1169_v41  ;;  %v972_v4 = vsel %vm844_vm4, %v780_v46, %v908_v53 }
 0x142   : > { %v546_v49 = vpop.f32.mrf.mxu0  ;;  %v973_v10 = vsel %vm845_vm5, %v781_v48, %v909_v55 }
 0x143   : > { %v712_v50 = vmul.f32 %v3984_v13, %v546_v49  ;;  %v635_v51 = vpop.f32.mrf.mxu1  ;;  %v4718_v12 = vrot.slane %v4208_v47, 7 }
 0x144   : > { %v713_v52 = vmul.f32 %v3990_v17, %v635_v51 }
 0x145   : > { %v782_v54 = vadd.f32 %v3993_v20, %v712_v50 }
 0x146   : > { %v783_v56 = vadd.f32 %v3996_v22, %v713_v52 }
 0x147   : > { %v910_v57 = vmul.f32 0.1, %v782_v54  ;;  %v1171_v59 = vpop.f32.mrf.mxu2  ;;  %vm846_vm6 = vcmp.gt.f32.partialorder %v782_v54, 0.0 }
 0x148   : > { %v911_v61 = vmul.f32 0.1, %v783_v56  ;;  %v1260_v63 = vpop.f32.mrf.mxu3  ;;  %vm847_vm7 = vcmp.gt.f32.partialorder %v783_v56, 0.0 }
 0x149   : > { %v1261_v1 = vadd.f32 %v1260_v63, %v1171_v59  ;;  %v974_v7 = vsel %vm846_vm6, %v782_v54, %v910_v57 }
 0x14a   : > { %v549_v8 = vpop.f32.mrf.mxu0  ;;  %v4215_v9 = vpack.c.bf16 %v974_v7, %v972_v4  ;;  %v975_v11 = vsel %vm847_vm7, %v783_v56, %v911_v61 }
 0x14b   : > { %v1712_v14 = vrot.slane %v1261_v1, 7  ;;  %v638_v15 = vpop.f32.mrf.mxu1  ;;  %v4218_v16 = vpack.c.bf16 %v975_v11, %v973_v10  ;;  %v714_v18 = vmul.f32 %v3984_v13, %v549_v8 }
 0x14c   : > { %1213 = vmatmul.bf16.gmra.mxu2 %v4215_v9  ;;  %v715_v21 = vmul.f32 %v3990_v17, %v638_v15  ;;  %v3619_v15 = vld [vmem:[%s4715_s4 + $0x88] sm:$0xff] }
 0x14d   : > { %1302 = vmatmul.bf16.gmra.mxu3 %v4218_v16  ;;  %1518 = vmatmul.bf16.gmra.mxu0 %v4047_v29  ;;  %v4227_v19 = vsel %vm1710_vm8, %v4718_v12, %v1712_v14  ;;  %v784_v26 = vadd.f32 %v3993_v20, %v714_v18  ;;  %v3627_v18 = vld [vmem:[%s4715_s4 + $0xc8] sm:$0xff] }
 0x14e   : > { %1607 = vmatmul.bf16.gmra.mxu1 %v4049_v33  ;;  %v785_v31 = vadd.f32 %v3996_v22, %v715_v21  ;;  %2583 = vmatpush.bf16.msrb.mxu2 %v3619_v15 }
 0x14f   : > { %v1174_v23 = vpop.f32.mrf.mxu2  ;;  %v912_v42 = vmul.f32 0.1, %v784_v26  ;;  %vm848_vm9 = vcmp.gt.f32.partialorder %v784_v26, 0.0  ;;  %2672 = vmatpush.bf16.msrb.mxu3 %v3627_v18 }
 0x150   : > { %v1263_v24 = vpop.f32.mrf.mxu3  ;;  %v913_v46 = vmul.f32 0.1, %v785_v31  ;;  %vm849_vm10 = vcmp.gt.f32.partialorder %v785_v31, 0.0 }
 0x151   : > { %v1264_v27 = vadd.f32 %v1263_v24, %v1174_v23  ;;  %v976_v54 = vsel %vm848_vm9, %v784_v26, %v912_v42 }
 0x152   : > { %v551_v34 = vpop.f32.mrf.mxu0  ;;  %v977_v59 = vsel %vm849_vm10, %v785_v31, %v913_v46 }
 0x153   : > { %v1714_v35 = vrot.slane %v1264_v27, 7  ;;  %v716_v38 = vmul.f32 %v3984_v13, %v551_v34  ;;  %v640_v40 = vpop.f32.mrf.mxu1 }
 0x154   : > { %v717_v41 = vmul.f32 %v3990_v17, %v640_v40 }
 0x155   : > { %v786_v44 = vadd.f32 %v3993_v20, %v716_v38  ;;  %v4237_v45 = vsel %vm1710_vm8, %v1712_v14, %v1714_v35 }
 0x156   : > { %v787_v48 = vadd.f32 %v3996_v22, %v717_v41 }
 0x157   : > { %v914_v49 = vmul.f32 0.1, %v786_v44  ;;  %v1176_v50 = vpop.f32.mrf.mxu2  ;;  %vm850_vm11 = vcmp.gt.f32.partialorder %v786_v44, 0.0 }
 0x158   : > { %v915_v51 = vmul.f32 0.1, %v787_v48  ;;  %v1265_v52 = vpop.f32.mrf.mxu3  ;;  %vm851_vm12 = vcmp.gt.f32.partialorder %v787_v48, 0.0 }
 0x159   : > { %v1266_v53 = vadd.f32 %v1265_v52, %v1176_v50  ;;  %v978_v55 = vsel %vm850_vm11, %v786_v44, %v914_v49 }
 0x15a   : > { %v554_v56 = vpop.f32.mrf.mxu0  ;;  %v4240_v57 = vpack.c.bf16 %v978_v55, %v976_v54  ;;  %v979_v61 = vsel %vm851_vm12, %v787_v48, %v915_v51 }
 0x15b   : > { %v1716_v63 = vrot.slane %v1266_v53, 7  ;;  %v643_v1 = vpop.f32.mrf.mxu1  ;;  %v4242_v4 = vpack.c.bf16 %v979_v61, %v977_v59  ;;  %v718_v7 = vmul.f32 %v3984_v13, %v554_v56 }
 0x15c   : > { %1218 = vmatmul.bf16.gmra.mxu2 %v4240_v57  ;;  %v719_v10 = vmul.f32 %v3990_v17, %v643_v1 }
 0x15d   : > { %1307 = vmatmul.bf16.gmra.mxu3 %v4242_v4  ;;  %1523 = vmatmul.bf16.gmra.mxu0 %v4074_v58  ;;  %v4249_v8 = vsel %vm1710_vm8, %v1714_v35, %v1716_v63  ;;  %v788_v21 = vadd.f32 %v3993_v20, %v718_v7 }
 0x15e   : > { %1612 = vmatmul.bf16.gmra.mxu1 %v4076_v62  ;;  %v789_v24 = vadd.f32 %v3996_v22, %v719_v10 }
 0x15f   : > { %v1179_v11 = vpop.f32.mrf.mxu2  ;;  %v916_v38 = vmul.f32 0.1, %v788_v21  ;;  %vm852_vm13 = vcmp.gt.f32.partialorder %v788_v21, 0.0 }
 0x160   : > { %v1268_v14 = vpop.f32.mrf.mxu3  ;;  %v917_v42 = vmul.f32 0.1, %v789_v24  ;;  %vm853_vm14 = vcmp.gt.f32.partialorder %v789_v24, 0.0 }
 0x161   : > { %v1269_v23 = vadd.f32 %v1268_v14, %v1179_v11  ;;  %v980_v52 = vsel %vm852_vm13, %v788_v21, %v916_v38 }
 0x162   : > { %v556_v26 = vpop.f32.mrf.mxu0  ;;  %v981_v56 = vsel %vm853_vm14, %v789_v24, %v917_v42 }
 0x163   : > { %v1718_v27 = vrot.slane %v1269_v23, 7  ;;  %v720_v31 = vmul.f32 %v3984_v13, %v556_v26  ;;  %v645_v34 = vpop.f32.mrf.mxu1 }
 0x164   : > { %v721_v35 = vmul.f32 %v3990_v17, %v645_v34 }
 0x165   : > { %v790_v40 = vadd.f32 %v3993_v20, %v720_v31  ;;  %v4265_v41 = vsel %vm1710_vm8, %v1716_v63, %v1718_v27 }
 0x166   : > { %v791_v44 = vadd.f32 %v3996_v22, %v721_v35 }
 0x167   : > { %v918_v46 = vmul.f32 0.1, %v790_v40  ;;  %v1181_v48 = vpop.f32.mrf.mxu2  ;;  %vm854_vm15 = vcmp.gt.f32.partialorder %v790_v40, 0.0 }
 0x168   : > { %v919_v49 = vmul.f32 0.1, %v791_v44  ;;  %v1270_v50 = vpop.f32.mrf.mxu3  ;;  %vm855_vm0 = vcmp.gt.f32.partialorder %v791_v44, 0.0 }
 0x169   : > { %v1271_v51 = vadd.f32 %v1270_v50, %v1181_v48  ;;  %v982_v53 = vsel %vm854_vm15, %v790_v40, %v918_v46 }
 0x16a   : > { %v559_v54 = vpop.f32.mrf.mxu0  ;;  %v4268_v55 = vpack.c.bf16 %v982_v53, %v980_v52  ;;  %v983_v59 = vsel %vm855_vm0, %v791_v44, %v919_v49 }
 0x16b   : > { %v1720_v61 = vrot.slane %v1271_v51, 7  ;;  %v648_v63 = vpop.f32.mrf.mxu1  ;;  %v4270_v1 = vpack.c.bf16 %v983_v59, %v981_v56  ;;  %v722_v7 = vmul.f32 %v3984_v13, %v559_v54 }
 0x16c   : > { %1223 = vmatmul.bf16.gmra.mxu2 %v4268_v55  ;;  %v723_v11 = vmul.f32 %v3990_v17, %v648_v63 }
 0x16d   : > { %1312 = vmatmul.bf16.gmra.mxu3 %v4270_v1  ;;  %1528 = vmatmul.bf16.gmra.mxu0 %v4095_v25  ;;  %v4277_v10 = vsel %vm1710_vm8, %v1718_v27, %v1720_v61  ;;  %v792_v18 = vadd.f32 %v3993_v20, %v722_v7 }
 0x16e   : > { %1617 = vmatmul.bf16.gmra.mxu1 %v4097_v30  ;;  %v793_v23 = vadd.f32 %v3996_v22, %v723_v11 }
 0x16f   : > { %v1184_v14 = vpop.f32.mrf.mxu2  ;;  %v920_v27 = vmul.f32 0.1, %v792_v18  ;;  %vm856_vm1 = vcmp.gt.f32.partialorder %v792_v18, 0.0 }
 0x170   : > { %v1273_v15 = vpop.f32.mrf.mxu3  ;;  %v921_v42 = vmul.f32 0.1, %v793_v23  ;;  %vm857_vm2 = vcmp.gt.f32.partialorder %v793_v23, 0.0 }
 0x171   : > { %v1274_v21 = vadd.f32 %v1273_v15, %v1184_v14  ;;  %v984_v52 = vsel %vm856_vm1, %v792_v18, %v920_v27 }
 0x172   : > { %v561_v24 = vpop.f32.mrf.mxu0  ;;  %v985_v59 = vsel %vm857_vm2, %v793_v23, %v921_v42  ;;  %vm1839_vm2 = vcmask 1046528  }
 0x173   : > { %v1722_v26 = vrot.slane %v1274_v21, 7  ;;  %v724_v31 = vmul.f32 %v3984_v13, %v561_v24  ;;  %v650_v34 = vpop.f32.mrf.mxu1  ;;  %v3618_v24 = vld [vmem:[%s4715_s4 + $0x80] sm:$0xff] }
 0x174   : > { %v725_v35 = vmul.f32 %v3990_v17, %v650_v34  ;;  %2584 = vmatpush.bf16.msrb.mxu2 %v3618_v24 }
 0x175   : > { %v794_v38 = vadd.f32 %v3993_v20, %v724_v31  ;;  %v4287_v40 = vsel %vm1710_vm8, %v1720_v61, %v1722_v26  ;;  %v3626_v31 = vld [vmem:[%s4715_s4 + $0xc0] sm:$0xff] }
 0x176   : > { %v795_v44 = vadd.f32 %v3996_v22, %v725_v35  ;;  %2673 = vmatpush.bf16.msrb.mxu3 %v3626_v31 }
 0x177   : > { %v922_v46 = vmul.f32 0.1, %v794_v38  ;;  %v1186_v48 = vpop.f32.mrf.mxu2  ;;  %vm858_vm3 = vcmp.gt.f32.partialorder %v794_v38, 0.0 }
 0x178   : > { %v923_v49 = vmul.f32 0.1, %v795_v44  ;;  %v1275_v50 = vpop.f32.mrf.mxu3  ;;  %vm859_vm4 = vcmp.gt.f32.partialorder %v795_v44, 0.0 }
 0x179   : > { %v1276_v51 = vadd.f32 %v1275_v50, %v1186_v48  ;;  %v986_v53 = vsel %vm858_vm3, %v794_v38, %v922_v46 }
 0x17a   : > { %v564_v54 = vpop.f32.mrf.mxu0  ;;  %v4290_v56 = vpack.c.bf16 %v986_v53, %v984_v52  ;;  %v987_v61 = vsel %vm859_vm4, %v795_v44, %v923_v49 }
 0x17b   : > { %v1724_v63 = vrot.slane %v1276_v51, 7  ;;  %v653_v7 = vpop.f32.mrf.mxu1  ;;  %v4292_v11 = vpack.c.bf16 %v987_v61, %v985_v59  ;;  %v726_v14 = vmul.f32 %v3984_v13, %v564_v54 }
 0x17c   : > { %1228 = vmatmul.bf16.gmra.mxu2 %v4290_v56  ;;  %v727_v18 = vmul.f32 %v3990_v17, %v653_v7 }
 0x17d   : > { %1317 = vmatmul.bf16.gmra.mxu3 %v4292_v11  ;;  %1533 = vmatmul.bf16.gmra.mxu0 %v4140_v0  ;;  %v4299_v15 = vsel %vm1710_vm8, %v1722_v26, %v1724_v63  ;;  %v796_v34 = vadd.f32 %v3993_v20, %v726_v14 }
 0x17e   : > { %1622 = vmatmul.bf16.gmra.mxu1 %v4142_v5  ;;  %v797_v26 = vadd.f32 %v3996_v22, %v727_v18 }
 0x17f   : > { %v1189_v21 = vpop.f32.mrf.mxu2  ;;  %v924_v48 = vmul.f32 0.1, %v796_v34  ;;  %vm860_vm5 = vcmp.gt.f32.partialorder %v796_v34, 0.0 }
 0x180   : > { %v1278_v23 = vpop.f32.mrf.mxu3  ;;  %v925_v51 = vmul.f32 0.1, %v797_v26  ;;  %vm861_vm6 = vcmp.gt.f32.partialorder %v797_v26, 0.0 }
 0x181   : > { %v1279_v35 = vadd.f32 %v1278_v23, %v1189_v21  ;;  %v988_v14 = vsel %vm860_vm5, %v796_v34, %v924_v48 }
 0x182   : > { %v566_v27 = vpop.f32.mrf.mxu0  ;;  %v989_v24 = vsel %vm861_vm6, %v797_v26, %v925_v51 }
 0x183   : > { %v1726_v38 = vrot.slane %v1279_v35, 7  ;;  %v728_v42 = vmul.f32 %v3984_v13, %v566_v27  ;;  %v655_v44 = vpop.f32.mrf.mxu1 }
 0x184   : > { %v729_v46 = vmul.f32 %v3990_v17, %v655_v44 }
 0x185   : > { %v798_v49 = vadd.f32 %v3993_v20, %v728_v42  ;;  %v4315_v50 = vsel %vm1710_vm8, %v1724_v63, %v1726_v38 }
 0x186   : > { %v799_v52 = vadd.f32 %v3996_v22, %v729_v46 }
 0x187   : > { %v926_v53 = vmul.f32 0.1, %v798_v49  ;;  %v1191_v54 = vpop.f32.mrf.mxu2  ;;  %vm862_vm7 = vcmp.gt.f32.partialorder %v798_v49, 0.0 }
 0x188   : > { %v927_v59 = vmul.f32 0.1, %v799_v52  ;;  %v1280_v61 = vpop.f32.mrf.mxu3  ;;  %vm863_vm9 = vcmp.gt.f32.partialorder %v799_v52, 0.0 }
 0x189   : > { %v1281_v7 = vadd.f32 %v1280_v61, %v1191_v54  ;;  %v990_v18 = vsel %vm862_vm7, %v798_v49, %v926_v53 }
 0x18a   : > { %v569_v21 = vpop.f32.mrf.mxu0  ;;  %v4318_v23 = vpack.c.bf16 %v990_v18, %v988_v14  ;;  %v991_v63 = vsel %vm863_vm9, %v799_v52, %v927_v59 }
 0x18b   : > { %v1728_v31 = vrot.slane %v1281_v7, 7  ;;  %v658_v35 = vpop.f32.mrf.mxu1  ;;  %v4320_v27 = vpack.c.bf16 %v991_v63, %v989_v24  ;;  %v730_v42 = vmul.f32 %v3984_v13, %v569_v21 }
 0x18c   : > { %1233 = vmatmul.bf16.gmra.mxu2 %v4318_v23  ;;  %v731_v44 = vmul.f32 %v3990_v17, %v658_v35 }
 0x18d   : > { %1322 = vmatmul.bf16.gmra.mxu3 %v4320_v27  ;;  %1538 = vmatmul.bf16.gmra.mxu0 %v4155_v32  ;;  %v4327_v34 = vsel %vm1710_vm8, %v1726_v38, %v1728_v31  ;;  %v800_v48 = vadd.f32 %v3993_v20, %v730_v42 }
 0x18e   : > { %1627 = vmatmul.bf16.gmra.mxu1 %v4157_v37  ;;  %v801_v51 = vadd.f32 %v3996_v22, %v731_v44 }
 0x18f   : > { %v1194_v26 = vpop.f32.mrf.mxu2  ;;  %v928_v38 = vmul.f32 0.1, %v800_v48  ;;  %vm864_vm10 = vcmp.gt.f32.partialorder %v800_v48, 0.0 }
 0x190   : > { %v1283_v46 = vpop.f32.mrf.mxu3  ;;  %v929_v18 = vmul.f32 0.1, %v801_v51  ;;  %vm865_vm11 = vcmp.gt.f32.partialorder %v801_v51, 0.0 }
 0x191   : > { %v1284_v49 = vadd.f32 %v1283_v46, %v1194_v26  ;;  %v992_v26 = vsel %vm864_vm10, %v800_v48, %v928_v38 }
 0x192   : > { %v571_v52 = vpop.f32.mrf.mxu0 }
 0x193   : > { %v1730_v53 = vrot.slane %v1284_v49, 7  ;;  %v732_v54 = vmul.f32 %v3984_v13, %v571_v52  ;;  %v660_v59 = vpop.f32.mrf.mxu1 }
 0x194   : > { %v733_v61 = vmul.f32 %v3990_v17, %v660_v59 }
 0x195   : > { %v802_v7 = vadd.f32 %v3993_v20, %v732_v54  ;;  %v4337_v14 = vsel %vm1710_vm8, %v1728_v31, %v1730_v53  ;;  %v993_v54 = vsel %vm865_vm11, %v801_v51, %v929_v18 }
 0x196   : > { %4720 = vst [vmem:[#allocation2_spill] sm:$0xff] %v4337_v14  ;;  %v803_v21 = vadd.f32 %v3996_v22, %v733_v61 }
 0x197   : > { %v930_v24 = vmul.f32 0.1, %v802_v7  ;;  %v1196_v63 = vpop.f32.mrf.mxu2  ;;  %vm866_vm12 = vcmp.gt.f32.partialorder %v802_v7, 0.0 }
 0x198   : > { %v931_v35 = vmul.f32 0.1, %v803_v21  ;;  %v1285_v42 = vpop.f32.mrf.mxu3  ;;  %vm867_vm13 = vcmp.gt.f32.partialorder %v803_v21, 0.0 }
 0x199   : > { %v1286_v44 = vadd.f32 %v1285_v42, %v1196_v63  ;;  %v994_v46 = vsel %vm866_vm12, %v802_v7, %v930_v24 }
 0x19a   : > { %v574_v49 = vpop.f32.mrf.mxu0  ;;  %v4340_v52 = vpack.c.bf16 %v994_v46, %v992_v26  ;;  %v995_v31 = vsel %vm867_vm13, %v803_v21, %v931_v35 }
 0x19b   : > { %v1732_v59 = vrot.slane %v1286_v44, 7  ;;  %v663_v12 = vpop.f32.mrf.mxu1  ;;  %v4342_v14 = vpack.c.bf16 %v995_v31, %v993_v54  ;;  %v734_v61 = vmul.f32 %v3984_v13, %v574_v49 }
 0x19c   : > { %1238 = vmatmul.bf16.gmra.mxu2 %v4340_v52  ;;  %v735_v38 = vmul.f32 %v3990_v17, %v663_v12 }
 0x19d   : > { %1327 = vmatmul.bf16.gmra.mxu3 %v4342_v14  ;;  %1543 = vmatmul.bf16.gmra.mxu0 %v4175_v60  ;;  %v4349_v48 = vsel %vm1710_vm8, %v1730_v53, %v1732_v59  ;;  %v804_v18 = vadd.f32 %v3993_v20, %v734_v61 }
 0x19e   : > { %1632 = vmatmul.bf16.gmra.mxu1 %v4177_v3  ;;  %v805_v24 = vadd.f32 %v3996_v22, %v735_v38 }
 0x19f   : > { %v1199_v51 = vpop.f32.mrf.mxu2  ;;  %v932_v53 = vmul.f32 0.1, %v804_v18  ;;  %vm868_vm14 = vcmp.gt.f32.partialorder %v804_v18, 0.0 }
 0x1a0   : > { %v1288_v7 = vpop.f32.mrf.mxu3  ;;  %v933_v49 = vmul.f32 0.1, %v805_v24  ;;  %vm869_vm15 = vcmp.gt.f32.partialorder %v805_v24, 0.0 }
 0x1a1   : > { %v1289_v21 = vadd.f32 %v1288_v7, %v1199_v51  ;;  %v996_v7 = vsel %vm868_vm14, %v804_v18, %v932_v53 }
 0x1a2   : > { %v576_v63 = vpop.f32.mrf.mxu0 }
 0x1a3   : > { %v1734_v35 = vrot.slane %v1289_v21, 7  ;;  %v736_v42 = vmul.f32 %v3984_v13, %v576_v63  ;;  %v665_v44 = vpop.f32.mrf.mxu1 }
 0x1a4   : > { %v737_v26 = vmul.f32 %v3990_v17, %v665_v44 }
 0x1a5   : > { %v806_v46 = vadd.f32 %v3993_v20, %v736_v42  ;;  %v4359_v12 = vsel %vm1710_vm8, %v1732_v59, %v1734_v35  ;;  %v997_v20 = vsel %vm869_vm15, %v805_v24, %v933_v49 }
 0x1a6   : > { %4721 = vst [vmem:[#allocation3_spill] sm:$0xff] %v4359_v12  ;;  %v807_v54 = vadd.f32 %v3996_v22, %v737_v26 }
 0x1a7   : > { %v934_v31 = vmul.f32 0.1, %v806_v46  ;;  %v1201_v61 = vpop.f32.mrf.mxu2  ;;  %vm870_vm0 = vcmp.gt.f32.partialorder %v806_v46, 0.0 }
 0x1a8   : > { %v935_v38 = vmul.f32 0.1, %v807_v54  ;;  %v1290_v51 = vpop.f32.mrf.mxu3  ;;  %vm871_vm1 = vcmp.gt.f32.partialorder %v807_v54, 0.0 }
 0x1a9   : > { %v1291_v13 = vadd.f32 %v1290_v51, %v1201_v61  ;;  %v998_v17 = vsel %vm870_vm0, %v806_v46, %v934_v31 }
 0x1aa   : > { %v1509_v21 = vpop.f32.mrf.mxu0  ;;  %v4362_v63 = vpack.c.bf16 %v998_v17, %v996_v7  ;;  %v999_v59 = vsel %vm871_vm1, %v807_v54, %v935_v38 }
 0x1ab   : > { %v1736_v42 = vrot.slane %v1291_v13, 7  ;;  %v1598_v44 = vpop.f32.mrf.mxu1  ;;  %v4364_v12 = vpack.c.bf16 %v999_v59, %v997_v20 }
 0x1ac   : > { %v1599_v22 = vadd.f32 %v1598_v44, %v1509_v21  ;;  %1243 = vmatmul.bf16.gmra.mxu2 %v4362_v63 }
 0x1ad   : > { %1332 = vmatmul.bf16.gmra.mxu3 %v4364_v12  ;;  %1548 = vmatmul.bf16.gmra.mxu0 %v4191_v28  ;;  %v4370_v26 = vsel %vm1710_vm8, %v1734_v35, %v1736_v42 }
 0x1ae   : > { %1637 = vmatmul.bf16.gmra.mxu1 %v4193_v36  ;;  %v1840_v38 = vrot.slane %v1599_v22, 1 }
 0x1af   : > { %v1204_v18 = vpop.f32.mrf.mxu2 }
 0x1b0   : > { %v1293_v53 = vpop.f32.mrf.mxu3 }
 0x1b1   : > { %v1294_v24 = vadd.f32 %v1293_v53, %v1204_v18 }
 0x1b2   : > { %v1511_v46 = vpop.f32.mrf.mxu0 }
 0x1b3   : > { %v1738_v49 = vrot.slane %v1294_v24, 7  ;;  %v1600_v54 = vpop.f32.mrf.mxu1 }
 0x1b4   : > { %v1601_v31 = vadd.f32 %v1600_v54, %v1511_v46 }
 0x1b5   : > { %v4374_v61 = vsel %vm1710_vm8, %v1736_v42, %v1738_v49 }
 0x1b6   : > { %v1841_v51 = vrot.slane %v1601_v31, 1 }
 0x1b7   : > { %v1206_v13 = vpop.f32.mrf.mxu2 }
 0x1b8   : > { %v1295_v7 = vpop.f32.mrf.mxu3  ;;  %v4377_v35 = vsel %vm1839_vm2, %v1840_v38, %v1841_v51 }
 0x1b9   : > { %v1296_v17 = vadd.f32 %v1295_v7, %v1206_v13 }
 0x1ba   : > { %v1514_v21 = vpop.f32.mrf.mxu0 }
 0x1bb   : > { %v1740_v20 = vrot.slane %v1296_v17, 7  ;;  %v1603_v59 = vpop.f32.mrf.mxu1 }
 0x1bc   : > { %v1604_v44 = vadd.f32 %v1603_v59, %v1514_v21  ;;  %2585 = vmatmul.bf16.vlgmr.msrb.gmra.mxu2 %v4005_v39 }
 0x1bd   : > { %2674 = vmatmul.bf16.vlgmr.msrb.gmra.mxu3 %v4007_v43  ;;  %1553 = vmatmul.bf16.gmra.mxu0 %v4215_v9  ;;  %v4383_v42 = vsel %vm1710_vm8, %v1738_v49, %v1740_v20 }
 0x1be   : > { %4722 = vst [vmem:[#allocation4_spill] sm:$0xff] %v4383_v42  ;;  %v1843_v22 = vrot.slane %v1604_v44, 1  ;;  %1642 = vmatmul.bf16.gmra.mxu1 %v4218_v16 }
 0x1bf   : > { %v1209_v18 = vpop.f32.mrf.mxu2 }
 0x1c0   : > { %v4387_v53 = vsel %vm1839_vm2, %v1841_v51, %v1843_v22  ;;  %v1298_v24 = vpop.f32.mrf.mxu3 }
 0x1c1   : > { %v1299_v46 = vadd.f32 %v1298_v24, %v1209_v18 }
 0x1c2   : > { %v1516_v54 = vpop.f32.mrf.mxu0 }
 0x1c3   : > { %v1742_v31 = vrot.slane %v1299_v46, 7  ;;  %v1605_v38 = vpop.f32.mrf.mxu1 }
 0x1c4   : > { %v1606_v39 = vadd.f32 %v1605_v38, %v1516_v54 }
 0x1c5   : > { %v4390_v43 = vsel %vm1710_vm8, %v1740_v20, %v1742_v31 }
 0x1c6   : > { %4723 = vst [vmem:[#allocation5_spill] sm:$0xff] %v4390_v43  ;;  %v1845_v13 = vrot.slane %v1606_v39, 1 }
 0x1c7   : > { %v1211_v7 = vpop.f32.mrf.mxu2 }
 0x1c8   : > { %v1300_v49 = vpop.f32.mrf.mxu3  ;;  %v4393_v17 = vsel %vm1839_vm2, %v1843_v22, %v1845_v13 }
 0x1c9   : > { %v1301_v21 = vadd.f32 %v1300_v49, %v1211_v7 }
 0x1ca   : > { %v1519_v59 = vpop.f32.mrf.mxu0 }
 0x1cb   : > { %v1744_v44 = vrot.slane %v1301_v21, 7  ;;  %v1608_v51 = vpop.f32.mrf.mxu1 }
 0x1cc   : > { %v1609_v42 = vadd.f32 %v1608_v51, %v1519_v59  ;;  %2590 = vmatmul.bf16.gmra.mxu2 %v4032_v2 }
 0x1cd   : > { %2679 = vmatmul.bf16.gmra.mxu3 %v4034_v6  ;;  %1558 = vmatmul.bf16.gmra.mxu0 %v4240_v57  ;;  %v4399_v20 = vsel %vm1710_vm8, %v1742_v31, %v1744_v44 }
 0x1ce   : > { %4724 = vst [vmem:[#allocation6_spill] sm:$0xff] %v4399_v20  ;;  %v1847_v18 = vrot.slane %v1609_v42, 1  ;;  %1647 = vmatmul.bf16.gmra.mxu1 %v4242_v4 }
 0x1cf   : > { %v1214_v24 = vpop.f32.mrf.mxu2 }
 0x1d0   : > { %v4403_v22 = vsel %vm1839_vm2, %v1845_v13, %v1847_v18  ;;  %v1303_v46 = vpop.f32.mrf.mxu3 }
 0x1d1   : > { %v1304_v54 = vadd.f32 %v1303_v46, %v1214_v24 }
 0x1d2   : > { %v1521_v38 = vpop.f32.mrf.mxu0 }
 0x1d3   : > { %v1746_v39 = vrot.slane %v1304_v54, 7  ;;  %v1610_v7 = vpop.f32.mrf.mxu1 }
 0x1d4   : > { %v1611_v2 = vadd.f32 %v1610_v7, %v1521_v38 }
 0x1d5   : > { %v4406_v6 = vsel %vm1710_vm8, %v1744_v44, %v1746_v39 }
 0x1d6   : > { %v1849_v49 = vrot.slane %v1611_v2, 1 }
 0x1d7   : > { %v1216_v21 = vpop.f32.mrf.mxu2 }
 0x1d8   : > { %v1305_v31 = vpop.f32.mrf.mxu3  ;;  %v4409_v42 = vsel %vm1839_vm2, %v1847_v18, %v1849_v49 }
 0x1d9   : > { %v1306_v59 = vadd.f32 %v1305_v31, %v1216_v21 }
 0x1da   : > { %v1524_v51 = vpop.f32.mrf.mxu0 }
 0x1db   : > { %v1748_v20 = vrot.slane %v1306_v59, 7  ;;  %v1613_v13 = vpop.f32.mrf.mxu1 }
 0x1dc   : > { %v1614_v43 = vadd.f32 %v1613_v13, %v1524_v51  ;;  %2595 = vmatmul.bf16.gmra.mxu2 %v4047_v29 }
 0x1dd   : > { %2684 = vmatmul.bf16.gmra.mxu3 %v4049_v33  ;;  %1563 = vmatmul.bf16.gmra.mxu0 %v4268_v55  ;;  %v4415_v44 = vsel %vm1710_vm8, %v1746_v39, %v1748_v20 }
 0x1de   : > { %v1851_v24 = vrot.slane %v1614_v43, 1  ;;  %1652 = vmatmul.bf16.gmra.mxu1 %v4270_v1 }
 0x1df   : > { %v1219_v46 = vpop.f32.mrf.mxu2 }
 0x1e0   : > { %v4419_v18 = vsel %vm1839_vm2, %v1849_v49, %v1851_v24  ;;  %v1308_v54 = vpop.f32.mrf.mxu3 }
 0x1e1   : > { %v1309_v38 = vadd.f32 %v1308_v54, %v1219_v46 }
 0x1e2   : > { %v1526_v7 = vpop.f32.mrf.mxu0 }
 0x1e3   : > { %v1750_v2 = vrot.slane %v1309_v38, 7  ;;  %v1615_v21 = vpop.f32.mrf.mxu1 }
 0x1e4   : > { %v4421_v29 = vadd.f32 %v1615_v21, %v1526_v7 }
 0x1e5   : > { %v4424_v33 = vsel %vm1710_vm8, %v1748_v20, %v1750_v2 }
 0x1e6   : > { %v4719_v39 = vrot.slane %v4421_v29, 1 }
 0x1e7   : > { %v1221_v31 = vpop.f32.mrf.mxu2 }
 0x1e8   : > { %v1310_v43 = vpop.f32.mrf.mxu3  ;;  %v4430_v59 = vsel %vm1839_vm2, %v1851_v24, %v4719_v39 }
 0x1e9   : > { %v1311_v49 = vadd.f32 %v1310_v43, %v1221_v31 }
 0x1eb   : > { %v1752_v51 = vrot.slane %v1311_v49, 7 }
 0x1ec   : > { %2600 = vmatmul.bf16.gmra.mxu2 %v4074_v58 }
 0x1ed   : > { %2689 = vmatmul.bf16.gmra.mxu3 %v4076_v62  ;;  %1568 = vmatmul.bf16.gmra.mxu0 %v4290_v56  ;;  %v4436_v20 = vsel %vm1710_vm8, %v1750_v2, %v1752_v51 }
 0x1ee   : > { %1657 = vmatmul.bf16.gmra.mxu1 %v4292_v11 }
 0x1ef   : > { %v1224_v13 = vpop.f32.mrf.mxu2 }
 0x1f0   : > { %v1313_v46 = vpop.f32.mrf.mxu3 }
 0x1f1   : > { %v1314_v54 = vadd.f32 %v1313_v46, %v1224_v13 }
 0x1f3   : > { %v1754_v38 = vrot.slane %v1314_v54, 7 }
 0x1f5   : > { %v4440_v24 = vsel %vm1710_vm8, %v1752_v51, %v1754_v38 }
 0x1f7   : > { %v1226_v7 = vpop.f32.mrf.mxu2 }
 0x1f8   : > { %v1315_v21 = vpop.f32.mrf.mxu3 }
 0x1f9   : > { %v1316_v31 = vadd.f32 %v1315_v21, %v1226_v7 }
 0x1fb   : > { %v1756_v58 = vrot.slane %v1316_v31, 7 }
 0x1fc   : > { %2605 = vmatmul.bf16.gmra.mxu2 %v4095_v25 }
 0x1fd   : > { %2694 = vmatmul.bf16.gmra.mxu3 %v4097_v30  ;;  %1573 = vmatmul.bf16.gmra.mxu0 %v4318_v23  ;;  %v4446_v62 = vsel %vm1710_vm8, %v1754_v38, %v1756_v58 }
 0x1fe   : > { %1662 = vmatmul.bf16.gmra.mxu1 %v4320_v27 }
 0x1ff   : > { %v1229_v2 = vpop.f32.mrf.mxu2 }
 0x200   : > { %v1318_v43 = vpop.f32.mrf.mxu3 }
 0x201   : > { %v1319_v49 = vadd.f32 %v1318_v43, %v1229_v2 }
 0x203   : > { %v1758_v51 = vrot.slane %v1319_v49, 7 }
 0x205   : > { %v4450_v13 = vsel %vm1710_vm8, %v1756_v58, %v1758_v51 }
 0x207   : > { %v1231_v46 = vpop.f32.mrf.mxu2 }
 0x208   : > { %v1320_v54 = vpop.f32.mrf.mxu3 }
 0x209   : > { %v1321_v7 = vadd.f32 %v1320_v54, %v1231_v46 }
 0x20b   : > { %v1760_v25 = vrot.slane %v1321_v7, 7 }
 0x20c   : > { %2610 = vmatmul.bf16.gmra.mxu2 %v4140_v0 }
 0x20d   : > { %2699 = vmatmul.bf16.gmra.mxu3 %v4142_v5  ;;  %1578 = vmatmul.bf16.gmra.mxu0 %v4340_v52  ;;  %v4456_v30 = vsel %vm1710_vm8, %v1758_v51, %v1760_v25 }
 0x20e   : > { %1667 = vmatmul.bf16.gmra.mxu1 %v4342_v14 }
 0x20f   : > { %v1234_v38 = vpop.f32.mrf.mxu2 }
 0x210   : > { %v1323_v21 = vpop.f32.mrf.mxu3 }
 0x211   : > { %v1324_v31 = vadd.f32 %v1323_v21, %v1234_v38 }
 0x213   : > { %v1762_v58 = vrot.slane %v1324_v31, 7 }
 0x215   : > { %v4460_v2 = vsel %vm1710_vm8, %v1760_v25, %v1762_v58 }
 0x217   : > { %v1236_v43 = vpop.f32.mrf.mxu2 }
 0x218   : > { %v1325_v49 = vpop.f32.mrf.mxu3 }
 0x219   : > { %v1326_v46 = vadd.f32 %v1325_v49, %v1236_v43 }
 0x21b   : > { %v1764_v0 = vrot.slane %v1326_v46, 7  ;;  %v1936_v46 = vlaneseq }
 0x21c   : > { %2615 = vmatmul.bf16.gmra.mxu2 %v4155_v32 }
 0x21d   : > { %2704 = vmatmul.bf16.gmra.mxu3 %v4157_v37  ;;  %1583 = vmatmul.bf16.gmra.mxu0 %v4362_v63  ;;  %v4466_v5 = vsel %vm1710_vm8, %v1762_v58, %v1764_v0 }
 0x21e   : > { %1672 = vmatmul.bf16.gmra.mxu1 %v4364_v12 }
 0x21f   : > { %v1239_v51 = vpop.f32.mrf.mxu2 }
 0x220   : > { %v1328_v54 = vpop.f32.mrf.mxu3 }
 0x221   : > { %v1329_v7 = vadd.f32 %v1328_v54, %v1239_v51  ;;  %v4477_v54 = vshrl.u32 %v1936_v46, 7 }
 0x223   : > { %v1766_v25 = vrot.slane %v1329_v7, 7 }
 0x225   : > { %v4470_v38 = vsel %vm1710_vm8, %v1764_v0, %v1766_v25 }
 0x227   : > { %v1241_v21 = vpop.f32.mrf.mxu2 }
 0x228   : > { %v1330_v31 = vpop.f32.mrf.mxu3 }
 0x229   : > { %v1331_v43 = vadd.f32 %v1330_v31, %v1241_v21  ;;  %v1973_v31 = vand.u32 7, %v4477_v54 }
 0x22b   : > { %v1768_v32 = vrot.slane %v1331_v43, 7  ;;  %vm2353_vm3 = vcmp.eq.s32.totalorder %v1973_v31, 0  ;;  %vm2755_vm4 = vcmp.eq.s32.totalorder %v1973_v31, 7 }
 0x22c   : > { %2620 = vmatmul.bf16.gmra.mxu2 %v4175_v60 }
 0x22d   : > { %2709 = vmatmul.bf16.gmra.mxu3 %v4177_v3  ;;  %v4475_v37 = vsel %vm1710_vm8, %v1766_v25, %v1768_v32  ;;  %v4727_v3 = vrot.slane %v4208_v47, 7 }
 0x22e   : > { %4725 = vst [vmem:[#allocation7_spill] sm:$0xff] %v4475_v37 }
 0x22f   : > { %v1244_v58 = vpop.f32.mrf.mxu2  ;;  %v1806_v25 = vsel %vm1710_vm8, 0.0, %v4727_v3  ;;  %v2851_v3 = vsel %vm2755_vm4, 0.0, %v4377_v35 }
 0x230   : > { %v1333_v49 = vpop.f32.mrf.mxu3  ;;  %v2449_v46 = vsel %vm2353_vm3, 0.0, %v1806_v25 }
 0x231   : > { %v1334_v39 = vadd.f32 %v1333_v49, %v1244_v58  ;;  %v4492_v58 = vpop.f32.mrf.mxu0  ;;  %v4494_v49 = vpop.f32.mrf.mxu1 }
 0x233   : > { %v1770_v51 = vrot.slane %v1334_v39, 7  ;;  %v1938_v39 = vadd.s32 8, %v4477_v54 }
 0x235   : > { %v4480_v0 = vsel %vm1710_vm8, %v1768_v32, %v1770_v51  ;;  %v1980_v47 = vand.u32 7, %v1938_v39 }
 0x236   : > { %4726 = vst [vmem:[#allocation8_spill] sm:$0xff] %v4480_v0 }
 0x237   : > { %v1246_v7 = vpop.f32.mrf.mxu2  ;;  %vm2354_vm5 = vcmp.eq.s32.totalorder %v1980_v47, 0  ;;  %vm2756_vm6 = vcmp.eq.s32.totalorder %v1980_v47, 7 }
 0x238   : > { %v1335_v21 = vpop.f32.mrf.mxu3  ;;  %v2852_v39 = vsel %vm2756_vm6, 0.0, %v4387_v53 }
 0x239   : > { %v1336_v60 = vadd.f32 %v1335_v21, %v1246_v7 }
 0x23b   : > { %v1772_v43 = vrot.slane %v1336_v60, 7 }
 0x23c   : > { %2625 = vmatmul.bf16.gmra.mxu2 %v4191_v28 }
 0x23d   : > { %2714 = vmatmul.bf16.gmra.mxu3 %v4193_v36  ;;  %v4490_v32 = vsel %vm1710_vm8, %v1770_v51, %v1772_v43  ;;  %v1939_v36 = vadd.s32 16, %v4477_v54  ;;  %v2450_v51 = vsel %vm2354_vm5, 0.0, %v4227_v19 }
 0x23e   : > { %4728 = vst [vmem:[#allocation9_spill] sm:$0xff] %v4490_v32  ;;  %v4499_v32 = vpop.f32.mrf.mxu0 }
 0x23f   : > { %v2586_v7 = vpop.f32.mrf.mxu2 }
 0x240   : > { %v2587_v21 = vadd.f32 %v2586_v7, %v2449_v46  ;;  %v2675_v28 = vpop.f32.mrf.mxu3  ;;  %v1987_v46 = vand.u32 7, %v1939_v36  ;;  %v4501_v7 = vpop.f32.mrf.mxu1 }
 0x242   : > { %v2676_v60 = vadd.f32 %v2675_v28, %v2587_v21  ;;  %vm2355_vm7 = vcmp.eq.s32.totalorder %v1987_v46, 0  ;;  %v1940_v21 = vadd.s32 24, %v4477_v54  ;;  %vm2757_vm9 = vcmp.eq.s32.totalorder %v1987_v46, 7 }
 0x243   : > { %v2451_v53 = vsel %vm2355_vm7, 0.0, %v4237_v45 }
 0x244   : > { %v2883_v0 = vadd.f32 %v2851_v3, %v2676_v60 }
 0x246   : > { %v2952_v19 = vmul.f32 %v2883_v0, %v2883_v0 }
 0x247   : > { %v2588_v43 = vpop.f32.mrf.mxu2 }
 0x248   : > { %v2589_v37 = vadd.f32 %v2588_v43, %v2450_v51  ;;  %v2677_v25 = vpop.f32.mrf.mxu3  ;;  %v1994_v51 = vand.u32 7, %v1940_v21  ;;  %v4516_v43 = vpop.f32.mrf.mxu0 }
 0x24a   : > { %v2678_v31 = vadd.f32 %v2677_v25, %v2589_v37  ;;  %vm2356_vm10 = vcmp.eq.s32.totalorder %v1994_v51, 0  ;;  %vm2758_vm11 = vcmp.eq.s32.totalorder %v1994_v51, 7 }
 0x24c   : > { %v2884_v35 = vadd.f32 %v2852_v39, %v2678_v31  ;;  %2630 = vmatmul.bf16.gmra.mxu2 %v4215_v9  ;;  %v4518_v31 = vpop.f32.mrf.mxu1 }
 0x24d   : > { %2719 = vmatmul.bf16.gmra.mxu3 %v4218_v16  ;;  %v2853_v16 = vsel %vm2757_vm9, 0.0, %v4393_v17 }
 0x24e   : > { %v2915_v28 = vadd.f32 %v2884_v35, %v2883_v0  ;;  %v2953_v37 = vmul.f32 %v2884_v35, %v2884_v35  ;;  %v3653_v47 = vpack.c.bf16 %v2884_v35, %v2883_v0  ;;  %v1941_v0 = vadd.s32 32, %v4477_v54 }
 0x24f   : > { %v2591_v60 = vpop.f32.mrf.mxu2 }
 0x250   : > { %v2984_v9 = vadd.f32 %v2953_v37, %v2952_v19  ;;  %3654 = vst [vmem:[%s4511_s9] sm:$0xff] %v3653_v47   ;;  %v2592_v3 = vadd.f32 %v2591_v60, %v2451_v53  ;;  %v2680_v36 = vpop.f32.mrf.mxu3  ;;  %v2452_v19 = vsel %vm2356_vm10, 0.0, %v4249_v8  ;;  %v2001_v21 = vand.u32 7, %v1941_v0 }
 0x252   : > { %v2681_v25 = vadd.f32 %v2680_v36, %v2592_v3  ;;  %v2854_v3 = vsel %vm2758_vm11, 0.0, %v4403_v22  ;;  %v4524_v36 = vpop.f32.mrf.mxu0  ;;  %vm2357_vm12 = vcmp.eq.s32.totalorder %v2001_v21, 0  ;;  %vm2759_vm13 = vcmp.eq.s32.totalorder %v2001_v21, 7 }
 0x254   : > { %v2885_v39 = vadd.f32 %v2853_v16, %v2681_v25  ;;  %v4528_v25 = vpop.f32.mrf.mxu1  ;;  %v2453_v16 = vsel %vm2357_vm12, 0.0, %v4265_v41 }
 0x256   : > { %v2916_v35 = vadd.f32 %v2915_v28, %v2885_v39  ;;  %v2954_v45 = vmul.f32 %v2885_v39, %v2885_v39  ;;  %v1942_v28 = vadd.s32 40, %v4477_v54 }
 0x257   : > { %v2593_v37 = vpop.f32.mrf.mxu2 }
 0x258   : > { %v2985_v47 = vadd.f32 %v2984_v9, %v2954_v45  ;;  %v2594_v53 = vadd.f32 %v2593_v37, %v2452_v19  ;;  %v2682_v46 = vpop.f32.mrf.mxu3  ;;  %v2008_v37 = vand.u32 7, %v1942_v28 }
 0x25a   : > { %v2683_v60 = vadd.f32 %v2682_v46, %v2594_v53  ;;  %v2855_v53 = vsel %vm2759_vm13, 0.0, %v4409_v42  ;;  %vm2358_vm14 = vcmp.eq.s32.totalorder %v2008_v37, 0  ;;  %vm2760_vm15 = vcmp.eq.s32.totalorder %v2008_v37, 7 }
 0x25b   : > { %v2454_v41 = vsel %vm2358_vm14, 0.0, %v4277_v10  ;;  %v2856_v42 = vsel %vm2760_vm15, 0.0, %v4419_v18 }
 0x25c   : > { %v2886_v17 = vadd.f32 %v2854_v3, %v2683_v60  ;;  %2635 = vmatmul.bf16.gmra.mxu2 %v4240_v57  ;;  %v1943_v60 = vadd.s32 48, %v4477_v54  ;;  %v4537_v3 = vpop.f32.mrf.mxu1 }
 0x25d   : > { %2724 = vmatmul.bf16.gmra.mxu3 %v4242_v4  ;;  %v4535_v4 = vpop.f32.mrf.mxu0 }
 0x25e   : > { %v2917_v8 = vadd.f32 %v2916_v35, %v2886_v17  ;;  %v2955_v9 = vmul.f32 %v2886_v17, %v2886_v17  ;;  %v3658_v51 = vpack.c.bf16 %v2886_v17, %v2885_v39  ;;  %v2015_v28 = vand.u32 7, %v1943_v60 }
 0x25f   : > { %v2596_v0 = vpop.f32.mrf.mxu2 }
 0x260   : > { %v2986_v45 = vadd.f32 %v2985_v47, %v2955_v9  ;;  %3730 = vst [vmem:[%s4511_s9 + $0x8] sm:$0xff] %v3658_v51   ;;  %v2597_v22 = vadd.f32 %v2596_v0, %v2453_v16  ;;  %v2685_v19 = vpop.f32.mrf.mxu3  ;;  %v1944_v16 = vadd.s32 56, %v4477_v54  ;;  %vm2359_vm0 = vcmp.eq.s32.totalorder %v2015_v28, 0 }
 0x261   : > { %vm2761_vm1 = vcmp.eq.s32.totalorder %v2015_v28, 7 }
 0x262   : > { %v2686_v57 = vadd.f32 %v2685_v19, %v2597_v22  ;;  %v2022_v37 = vand.u32 7, %v1944_v16 }
 0x264   : > { %v2887_v46 = vadd.f32 %v2855_v53, %v2686_v57  ;;  %v1619_v57 = vadd.f32 %v4494_v49, %v4492_v58  ;;  %vm2360_vm3 = vcmp.eq.s32.totalorder %v2022_v37, 0  ;;  %vm2762_vm4 = vcmp.eq.s32.totalorder %v2022_v37, 7 }
 0x265   : > { %v4547_v53 = vpop.f32.mrf.mxu0  ;;  %v2456_v58 = vsel %vm2360_vm3, 0.0, %v4299_v15  ;;  %v1946_v15 = vadd.s32 72, %v4477_v54 }
 0x266   : > { %v2918_v35 = vadd.f32 %v2917_v8, %v2887_v46  ;;  %v2956_v39 = vmul.f32 %v2887_v46, %v2887_v46 }
 0x267   : > { %v2598_v47 = vpop.f32.mrf.mxu2 }
 0x268   : > { %v2987_v17 = vadd.f32 %v2986_v45, %v2956_v39  ;;  %v2599_v9 = vadd.f32 %v2598_v47, %v2454_v41  ;;  %v2687_v21 = vpop.f32.mrf.mxu3  ;;  %v2455_v45 = vsel %vm2359_vm0, 0.0, %v4287_v40  ;;  %v1855_v40 = vrot.slane %v1619_v57, 1 }
 0x26a   : > { %v2688_v51 = vadd.f32 %v2687_v21, %v2599_v9  ;;  %v4729_v21 = vrot.slane %v4421_v29, 1 }
 0x26c   : > { %v2888_v0 = vadd.f32 %v2856_v42, %v2688_v51  ;;  %2640 = vmatmul.bf16.gmra.mxu2 %v4268_v55  ;;  %v4550_v55 = vpop.f32.mrf.mxu1  ;;  %v1856_v28 = vsel %vm1839_vm2, %v4729_v21, %v1855_v40  ;;  %v1621_v51 = vadd.f32 %v4501_v7, %v4499_v32 }
 0x26d   : > { %2729 = vmatmul.bf16.gmra.mxu3 %v4270_v1 }
 0x26e   : > { %v2919_v8 = vadd.f32 %v2918_v35, %v2888_v0  ;;  %v2957_v10 = vmul.f32 %v2888_v0, %v2888_v0  ;;  %v3663_v22 = vpack.c.bf16 %v2888_v0, %v2887_v46  ;;  %v2857_v35 = vsel %vm2761_vm1, 0.0, %v4430_v59  ;;  %v4560_v0 = vpop.f32.mrf.mxu0 }
 0x26f   : > { %v2601_v19 = vpop.f32.mrf.mxu2  ;;  %v1945_v46 = vadd.s32 64, %v4477_v54 }
 0x270   : > { %v2988_v18 = vadd.f32 %v2987_v17, %v2957_v10  ;;  %3731 = vst [vmem:[%s4511_s9 + $0x10] sm:$0xff] %v3663_v22   ;;  %v2602_v60 = vadd.f32 %v2601_v19, %v2455_v45  ;;  %v2690_v39 = vpop.f32.mrf.mxu3  ;;  %v2858_v22 = vsel %vm2762_vm4, 0.0, %v1856_v28  ;;  %v1857_v45 = vrot.slane %v1621_v51, 1 }
 0x271   : > { %v2029_v17 = vand.u32 7, %v1945_v46 }
 0x272   : > { %v2691_v1 = vadd.f32 %v2690_v39, %v2602_v60  ;;  %v1624_v60 = vadd.f32 %v4518_v31, %v4516_v43 }
 0x273   : > { %vm2361_vm5 = vcmp.eq.s32.totalorder %v2029_v17, 0  ;;  %vm2763_vm6 = vcmp.eq.s32.totalorder %v2029_v17, 7 }
 0x274   : > { %v2889_v41 = vadd.f32 %v2857_v35, %v2691_v1  ;;  %v2457_v37 = vsel %vm2361_vm5, 0.0, %v4315_v50  ;;  %v1858_v35 = vsel %vm1839_vm2, %v1855_v40, %v1857_v45  ;;  %v1626_v40 = vadd.f32 %v4528_v25, %v4524_v36 }
 0x276   : > { %v2920_v47 = vadd.f32 %v2919_v8, %v2889_v41  ;;  %v2958_v9 = vmul.f32 %v2889_v41, %v2889_v41  ;;  %v4562_v8 = vpop.f32.mrf.mxu1 }
 0x277   : > { %v2603_v49 = vpop.f32.mrf.mxu2 }
 0x278   : > { %v2989_v59 = vadd.f32 %v2988_v18, %v2958_v9  ;;  %v2604_v42 = vadd.f32 %v2603_v49, %v2456_v58  ;;  %v2692_v16 = vpop.f32.mrf.mxu3  ;;  %v2036_v18 = vand.u32 7, %v1946_v15  ;;  %v2859_v9 = vsel %vm2763_vm6, 0.0, %v1858_v35 }
 0x279   : > { %v1861_v15 = vrot.slane %v1626_v40, 1 }
 0x27a   : > { %v2693_v10 = vadd.f32 %v2692_v16, %v2604_v42  ;;  %vm2362_vm7 = vcmp.eq.s32.totalorder %v2036_v18, 0  ;;  %vm2764_vm9 = vcmp.eq.s32.totalorder %v2036_v18, 7  ;;  %v1629_v18 = vadd.f32 %v4537_v3, %v4535_v4 }
 0x27b   : > { %v2458_v43 = vsel %vm2362_vm7, 0.0, %v4327_v34  ;;  %v1631_v3 = vadd.f32 %v4550_v55, %v4547_v53 }
 0x27c   : > { %v2890_v19 = vadd.f32 %v2858_v22, %v2693_v10  ;;  %2645 = vmatmul.bf16.gmra.mxu2 %v4290_v56  ;;  %v1948_v22 = vadd.s32 88, %v4477_v54 }
 0x27d   : > { %2734 = vmatmul.bf16.gmra.mxu3 %v4292_v11  ;;  %v1947_v11 = vadd.s32 80, %v4477_v54 }
 0x27e   : > { %v2921_v29 = vadd.f32 %v2920_v47, %v2890_v19  ;;  %v2959_v32 = vmul.f32 %v2890_v19, %v2890_v19  ;;  %v3668_v7 = vpack.c.bf16 %v2890_v19, %v2889_v41  ;;  %v1859_v47 = vrot.slane %v1624_v60, 1  ;;  %v4573_v41 = vpop.f32.mrf.mxu0  ;;  %v4575_v58 = vpop.f32.mrf.mxu1 }
 0x27f   : > { %v2606_v57 = vpop.f32.mrf.mxu2  ;;  %v2043_v21 = vand.u32 7, %v1947_v11 }
 0x280   : > { %v2990_v39 = vadd.f32 %v2989_v59, %v2959_v32  ;;  %3732 = vst [vmem:[%s4511_s9 + $0x18] sm:$0xff] %v3668_v7   ;;  %v2607_v1 = vadd.f32 %v2606_v57, %v2457_v37  ;;  %v2695_v56 = vpop.f32.mrf.mxu3  ;;  %v1860_v59 = vsel %vm1839_vm2, %v1857_v45, %v1859_v47  ;;  %v4730_v45 = vld [vmem:[#allocation2_spill] sm:$0xff]  ;;  %v2050_v57 = vand.u32 7, %v1948_v22  ;;  %v4731_v22 = vld [vmem:[#allocation3_spill] sm:$0xff] }
 0x281   : > { %v2860_v10 = vsel %vm2764_vm9, 0.0, %v1860_v59  ;;  %vm2363_vm10 = vcmp.eq.s32.totalorder %v2043_v21, 0  ;;  %vm2765_vm11 = vcmp.eq.s32.totalorder %v2043_v21, 7 }
 0x282   : > { %v2696_v46 = vadd.f32 %v2695_v56, %v2607_v1  ;;  %v2459_v7 = vsel %vm2363_vm10, 0.0, %v4730_v45  ;;  %v1949_v56 = vadd.s32 96, %v4477_v54  ;;  %vm2364_vm12 = vcmp.eq.s32.totalorder %v2050_v57, 0 }
 0x283   : > { %vm2766_vm13 = vcmp.eq.s32.totalorder %v2050_v57, 7 }
 0x284   : > { %v2891_v50 = vadd.f32 %v2859_v9, %v2696_v46  ;;  %v1863_v46 = vrot.slane %v1629_v18, 1  ;;  %v2057_v4 = vand.u32 7, %v1949_v56  ;;  %v1636_v56 = vadd.f32 %v4575_v58, %v4573_v41 }
 0x286   : > { %v2922_v49 = vadd.f32 %v2921_v29, %v2891_v50  ;;  %v2960_v17 = vmul.f32 %v2891_v50, %v2891_v50  ;;  %v4584_v34 = vpop.f32.mrf.mxu0  ;;  %v4586_v32 = vpop.f32.mrf.mxu1  ;;  %v1864_v21 = vsel %vm1839_vm2, %v1861_v15, %v1863_v46  ;;  %vm2365_vm14 = vcmp.eq.s32.totalorder %v2057_v4, 0 }
 0x287   : > { %v2608_v31 = vpop.f32.mrf.mxu2  ;;  %v2862_v59 = vsel %vm2766_vm13, 0.0, %v1864_v21  ;;  %vm2767_vm15 = vcmp.eq.s32.totalorder %v2057_v4, 7  ;;  %v1952_v4 = vadd.s32 120, %v4477_v54 }
 0x288   : > { %v2991_v28 = vadd.f32 %v2990_v39, %v2960_v17  ;;  %v2609_v51 = vadd.f32 %v2608_v31, %v2458_v43  ;;  %v2697_v42 = vpop.f32.mrf.mxu3 }
 0x28a   : > { %v2698_v16 = vadd.f32 %v2697_v42, %v2609_v51  ;;  %v1865_v42 = vrot.slane %v1631_v3, 1  ;;  %v1869_v3 = vrot.slane %v1636_v56, 1 }
 0x28c   : > { %v2892_v19 = vadd.f32 %v2860_v10, %v2698_v16  ;;  %2650 = vmatmul.bf16.gmra.mxu2 %v4318_v23 }
 0x28d   : > { %2739 = vmatmul.bf16.gmra.mxu3 %v4320_v27  ;;  %v1862_v27 = vsel %vm1839_vm2, %v1859_v47, %v1861_v15  ;;  %v2461_v15 = vsel %vm2365_vm14, 0.0, %v4731_v22 }
 0x28e   : > { %v2923_v36 = vadd.f32 %v2922_v49, %v2892_v19  ;;  %v2961_v25 = vmul.f32 %v2892_v19, %v2892_v19  ;;  %v3673_v29 = vpack.c.bf16 %v2892_v19, %v2891_v50  ;;  %v2861_v35 = vsel %vm2765_vm11, 0.0, %v1862_v27  ;;  %v4597_v43 = vpop.f32.mrf.mxu0 }
 0x28f   : > { %v2611_v37 = vpop.f32.mrf.mxu2  ;;  %v2460_v49 = vsel %vm2364_vm12, 0.0, %v4349_v48  ;;  %v1950_v48 = vadd.s32 104, %v4477_v54 }
 0x290   : > { %v2992_v60 = vadd.f32 %v2991_v28, %v2961_v25  ;;  %3733 = vst [vmem:[%s4511_s9 + $0x20] sm:$0xff] %v3673_v29   ;;  %v2612_v23 = vadd.f32 %v2611_v37, %v2459_v7  ;;  %v2700_v39 = vpop.f32.mrf.mxu3  ;;  %v4600_v28 = vpop.f32.mrf.mxu1  ;;  %v1634_v25 = vadd.f32 %v4562_v8, %v4560_v0  ;;  %v1866_v7 = vsel %vm1839_vm2, %v1863_v46, %v1865_v42 }
 0x291   : > { %v2863_v18 = vsel %vm2767_vm15, 0.0, %v1866_v7  ;;  %v1641_v7 = vadd.f32 %v4600_v28, %v4597_v43 }
 0x292   : > { %v2701_v1 = vadd.f32 %v2700_v39, %v2612_v23  ;;  %v1867_v23 = vrot.slane %v1634_v25, 1 }
 0x294   : > { %v2893_v9 = vadd.f32 %v2861_v35, %v2701_v1 }
 0x296   : > { %v2924_v11 = vadd.f32 %v2923_v36, %v2893_v9  ;;  %v2962_v50 = vmul.f32 %v2893_v9, %v2893_v9  ;;  %v2064_v36 = vand.u32 7, %v1950_v48  ;;  %v4610_v37 = vpop.f32.mrf.mxu0  ;;  %v1639_v48 = vadd.f32 %v4586_v32, %v4584_v34  ;;  %v4732_v34 = vld [vmem:[#allocation4_spill] sm:$0xff] }
 0x297   : > { %v2613_v17 = vpop.f32.mrf.mxu2 }
 0x298   : > { %v2993_v47 = vadd.f32 %v2992_v60, %v2962_v50  ;;  %v2614_v31 = vadd.f32 %v2613_v17, %v2460_v49  ;;  %v2702_v40 = vpop.f32.mrf.mxu3  ;;  %v4612_v57 = vpop.f32.mrf.mxu1  ;;  %v1951_v60 = vadd.s32 112, %v4477_v54  ;;  %vm2366_vm0 = vcmp.eq.s32.totalorder %v2064_v36, 0 }
 0x299   : > { %v2462_v0 = vsel %vm2366_vm0, 0.0, %v4370_v26  ;;  %vm2768_vm1 = vcmp.eq.s32.totalorder %v2064_v36, 7  ;;  %v1871_v22 = vrot.slane %v1639_v48, 1  ;;  %v1644_v28 = vadd.f32 %v4612_v57, %v4610_v37 }
 0x29a   : > { %v2703_v51 = vadd.f32 %v2702_v40, %v2614_v31  ;;  %v2071_v35 = vand.u32 7, %v1951_v60 }
 0x29c   : > { %v2894_v16 = vadd.f32 %v2862_v59, %v2703_v51  ;;  %2655 = vmatmul.bf16.gmra.mxu2 %v4340_v52  ;;  %vm2367_vm3 = vcmp.eq.s32.totalorder %v2071_v35, 0  ;;  %vm2769_vm4 = vcmp.eq.s32.totalorder %v2071_v35, 7  ;;  %v2078_v59 = vand.u32 7, %v1952_v4 }
 0x29d   : > { %2744 = vmatmul.bf16.gmra.mxu3 %v4342_v14  ;;  %v2463_v40 = vsel %vm2367_vm3, 0.0, %v4374_v61 }
 0x29e   : > { %v2925_v53 = vadd.f32 %v2924_v11, %v2894_v16  ;;  %v2963_v55 = vmul.f32 %v2894_v16, %v2894_v16  ;;  %v3678_v10 = vpack.c.bf16 %v2894_v16, %v2893_v9  ;;  %v1868_v11 = vsel %vm1839_vm2, %v1865_v42, %v1867_v23 }
 0x29f   : > { %v2616_v19 = vpop.f32.mrf.mxu2  ;;  %v2864_v17 = vsel %vm2768_vm1, 0.0, %v1868_v11  ;;  %vm2368_vm5 = vcmp.eq.s32.totalorder %v2078_v59, 0  ;;  %vm2770_vm6 = vcmp.eq.s32.totalorder %v2078_v59, 7 }
 0x2a0   : > { %v2994_v29 = vadd.f32 %v2993_v47, %v2963_v55  ;;  %3734 = vst [vmem:[%s4511_s9 + $0x28] sm:$0xff] %v3678_v10   ;;  %v2617_v45 = vadd.f32 %v2616_v19, %v2461_v15  ;;  %v2705_v52 = vpop.f32.mrf.mxu3  ;;  %v4620_v47 = vpop.f32.mrf.mxu0  ;;  %v2464_v32 = vsel %vm2368_vm5, 0.0, %v4732_v34  ;;  %v1956_v34 = vadd.s32 152, %v4477_v54 }
 0x2a1   : > { %v4623_v31 = vpop.f32.mrf.mxu1 }
 0x2a2   : > { %v2706_v14 = vadd.f32 %v2705_v52, %v2617_v45 }
 0x2a4   : > { %v2895_v27 = vadd.f32 %v2863_v18, %v2706_v14  ;;  %v1872_v18 = vsel %vm1839_vm2, %v1869_v3, %v1871_v22 }
 0x2a6   : > { %v2926_v39 = vadd.f32 %v2925_v53, %v2895_v27  ;;  %v2964_v1 = vmul.f32 %v2895_v27, %v2895_v27 }
 0x2a7   : > { %v2618_v8 = vpop.f32.mrf.mxu2 }
 0x2a8   : > { %v2995_v46 = vadd.f32 %v2994_v29, %v2964_v1  ;;  %v2619_v9 = vadd.f32 %v2618_v8, %v2462_v0  ;;  %v2707_v50 = vpop.f32.mrf.mxu3  ;;  %v4632_v61 = vpop.f32.mrf.mxu0  ;;  %v1873_v1 = vrot.slane %v1641_v7, 1 }
 0x2a9   : > { %v4634_v25 = vpop.f32.mrf.mxu1 }
 0x2aa   : > { %v2708_v49 = vadd.f32 %v2707_v50, %v2619_v9  ;;  %v1874_v4 = vsel %vm1839_vm2, %v1871_v22, %v1873_v1 }
 0x2ac   : > { %v2896_v26 = vadd.f32 %v2864_v17, %v2708_v49  ;;  %2660 = vmatmul.bf16.gmra.mxu2 %v4362_v63  ;;  %v1870_v63 = vsel %vm1839_vm2, %v1867_v23, %v1869_v3 }
 0x2ad   : > { %2749 = vmatmul.bf16.gmra.mxu3 %v4364_v12  ;;  %v2865_v10 = vsel %vm2769_vm4, 0.0, %v1870_v63  ;;  %v1953_v12 = vadd.s32 128, %v4477_v54  ;;  %v1646_v63 = vadd.f32 %v4623_v31, %v4620_v47 }
 0x2ae   : > { %v2927_v41 = vadd.f32 %v2926_v39, %v2896_v26  ;;  %v2965_v58 = vmul.f32 %v2896_v26, %v2896_v26  ;;  %v3683_v21 = vpack.c.bf16 %v2896_v26, %v2895_v27  ;;  %v2866_v27 = vsel %vm2770_vm6, 0.0, %v1872_v18 }
 0x2af   : > { %v2621_v51 = vpop.f32.mrf.mxu2  ;;  %v2085_v45 = vand.u32 7, %v1953_v12  ;;  %v1954_v39 = vadd.s32 136, %v4477_v54  ;;  %v1649_v18 = vadd.f32 %v4634_v25, %v4632_v61 }
 0x2b0   : > { %v2996_v42 = vadd.f32 %v2995_v46, %v2965_v58  ;;  %3735 = vst [vmem:[%s4511_s9 + $0x30] sm:$0xff] %v3683_v21   ;;  %v2622_v16 = vadd.f32 %v2621_v51, %v2463_v40  ;;  %v2710_v53 = vpop.f32.mrf.mxu3  ;;  %v4733_v46 = vld [vmem:[#allocation5_spill] sm:$0xff]  ;;  %v1561_v50 = vpop.f32.mrf.mxu0  ;;  %v1955_v21 = vadd.s32 144, %v4477_v54  ;;  %v1875_v40 = vrot.slane %v1644_v28, 1 }
 0x2b1   : > { %vm2369_vm7 = vcmp.eq.s32.totalorder %v2085_v45, 0  ;;  %vm2771_vm9 = vcmp.eq.s32.totalorder %v2085_v45, 7  ;;  %v2092_v43 = vand.u32 7, %v1954_v39  ;;  %v1650_v26 = vpop.f32.mrf.mxu1 }
 0x2b2   : > { %v2711_v55 = vadd.f32 %v2710_v53, %v2622_v16  ;;  %v2465_v9 = vsel %vm2369_vm7, 0.0, %v4733_v46  ;;  %v2867_v58 = vsel %vm2771_vm9, 0.0, %v1874_v4  ;;  %v2099_v57 = vand.u32 7, %v1955_v21 }
 0x2b3   : > { %vm2370_vm10 = vcmp.eq.s32.totalorder %v2092_v43, 0  ;;  %vm2772_vm11 = vcmp.eq.s32.totalorder %v2092_v43, 7  ;;  %v1651_v28 = vadd.f32 %v1650_v26, %v1561_v50  ;;  %v1958_v21 = vadd.s32 168, %v4477_v54 }
 0x2b4   : > { %v2897_v15 = vadd.f32 %v2865_v10, %v2711_v55  ;;  %v1876_v10 = vsel %vm1839_vm2, %v1873_v1, %v1875_v40  ;;  %vm2371_vm12 = vcmp.eq.s32.totalorder %v2099_v57, 0  ;;  %vm2773_vm13 = vcmp.eq.s32.totalorder %v2099_v57, 7 }
 0x2b5   : > { %v2467_v47 = vsel %vm2371_vm12, 0.0, %v4406_v6 }
 0x2b6   : > { %v2928_v19 = vadd.f32 %v2927_v41, %v2897_v15  ;;  %v2966_v36 = vmul.f32 %v2897_v15, %v2897_v15 }
 0x2b7   : > { %v2623_v29 = vpop.f32.mrf.mxu2 }
 0x2b8   : > { %v2997_v52 = vadd.f32 %v2996_v42, %v2966_v36  ;;  %v2624_v14 = vadd.f32 %v2623_v29, %v2464_v32  ;;  %v2712_v60 = vpop.f32.mrf.mxu3  ;;  %v4734_v42 = vld [vmem:[#allocation6_spill] sm:$0xff]  ;;  %v1564_v22 = vpop.f32.mrf.mxu0  ;;  %v2868_v36 = vsel %vm2772_vm11, 0.0, %v1876_v10  ;;  %v1877_v32 = vrot.slane %v1646_v63, 1 }
 0x2b9   : > { %v2466_v16 = vsel %vm2370_vm10, 0.0, %v4734_v42 }
 0x2ba   : > { %v2713_v23 = vadd.f32 %v2712_v60, %v2624_v14  ;;  %v2106_v14 = vand.u32 7, %v1956_v34 }
 0x2bc   : > { %v2898_v0 = vadd.f32 %v2866_v27, %v2713_v23  ;;  %v1878_v27 = vsel %vm1839_vm2, %v1875_v40, %v1877_v32  ;;  %vm2372_vm14 = vcmp.eq.s32.totalorder %v2106_v14, 0  ;;  %vm2774_vm15 = vcmp.eq.s32.totalorder %v2106_v14, 7 }
 0x2bd   : > { %v2468_v43 = vsel %vm2372_vm14, 0.0, %v4415_v44  ;;  %v1881_v40 = vrot.slane %v1651_v28, 1 }
 0x2be   : > { %v2929_v8 = vadd.f32 %v2928_v19, %v2898_v0  ;;  %v2967_v35 = vmul.f32 %v2898_v0, %v2898_v0  ;;  %v3688_v56 = vpack.c.bf16 %v2898_v0, %v2897_v15  ;;  %v1653_v19 = vpop.f32.mrf.mxu1  ;;  %v2869_v0 = vsel %vm2773_vm13, 0.0, %v1878_v27 }
 0x2bf   : > { %v2626_v11 = vpop.f32.mrf.mxu2  ;;  %v1654_v57 = vadd.f32 %v1653_v19, %v1564_v22 }
 0x2c0   : > { %v2998_v49 = vadd.f32 %v2997_v52, %v2967_v35  ;;  %3736 = vst [vmem:[%s4511_s9 + $0x38] sm:$0xff] %v3688_v56   ;;  %v2627_v17 = vadd.f32 %v2626_v11, %v2465_v9  ;;  %v2715_v3 = vpop.f32.mrf.mxu3  ;;  %v1879_v35 = vrot.slane %v1649_v18, 1  ;;  %v1566_v56 = vpop.f32.mrf.mxu0 }
 0x2c1   : > { %v1883_v34 = vrot.slane %v1654_v57, 1  ;;  %v1962_v57 = vadd.s32 200, %v4477_v54 }
 0x2c2   : > { %v2716_v41 = vadd.f32 %v2715_v3, %v2627_v17  ;;  %v1880_v4 = vsel %vm1839_vm2, %v1877_v32, %v1879_v35 }
 0x2c3   : > { %v1884_v14 = vsel %vm1839_vm2, %v1881_v40, %v1883_v34 }
 0x2c4   : > { %v2899_v51 = vadd.f32 %v2867_v58, %v2716_v41  ;;  %v2870_v58 = vsel %vm2774_vm15, 0.0, %v1880_v4 }
 0x2c6   : > { %v2930_v59 = vadd.f32 %v2929_v8, %v2899_v51  ;;  %v2968_v48 = vmul.f32 %v2899_v51, %v2899_v51  ;;  %v1957_v8 = vadd.s32 160, %v4477_v54  ;;  %v1655_v6 = vpop.f32.mrf.mxu1 }
 0x2c7   : > { %v2628_v37 = vpop.f32.mrf.mxu2  ;;  %v1656_v19 = vadd.f32 %v1655_v6, %v1566_v56 }
 0x2c8   : > { %v2999_v53 = vadd.f32 %v2998_v49, %v2968_v48  ;;  %v2629_v55 = vadd.f32 %v2628_v37, %v2466_v16  ;;  %v2717_v12 = vpop.f32.mrf.mxu3  ;;  %v2113_v25 = vand.u32 7, %v1957_v8  ;;  %v2120_v37 = vand.u32 7, %v1958_v21 }
 0x2ca   : > { %v2718_v15 = vadd.f32 %v2717_v12, %v2629_v55  ;;  %vm2373_vm0 = vcmp.eq.s32.totalorder %v2113_v25, 0  ;;  %vm2775_vm1 = vcmp.eq.s32.totalorder %v2113_v25, 7  ;;  %v1882_v55 = vsel %vm1839_vm2, %v1879_v35, %v1881_v40 }
 0x2cb   : > { %v2469_v50 = vsel %vm2373_vm0, 0.0, %v4424_v33  ;;  %vm2374_vm3 = vcmp.eq.s32.totalorder %v2120_v37, 0  ;;  %vm2776_vm4 = vcmp.eq.s32.totalorder %v2120_v37, 7 }
 0x2cc   : > { %v2900_v29 = vadd.f32 %v2868_v36, %v2718_v15  ;;  %v2871_v15 = vsel %vm2775_vm1, 0.0, %v1882_v55  ;;  %v1959_v36 = vadd.s32 176, %v4477_v54  ;;  %v2470_v33 = vsel %vm2374_vm3, 0.0, %v4436_v20 }
 0x2cd   : > { %v2872_v27 = vsel %vm2776_vm4, 0.0, %v1884_v14 }
 0x2ce   : > { %v2931_v45 = vadd.f32 %v2930_v59, %v2900_v29  ;;  %v2969_v7 = vmul.f32 %v2900_v29, %v2900_v29  ;;  %v3693_v52 = vpack.c.bf16 %v2900_v29, %v2899_v51  ;;  %v1569_v59 = vpop.f32.mrf.mxu0  ;;  %v1658_v16 = vpop.f32.mrf.mxu1  ;;  %v2127_v22 = vand.u32 7, %v1959_v36 }
 0x2cf   : > { %v2631_v31 = vpop.f32.mrf.mxu2 }
 0x2d0   : > { %v3000_v60 = vadd.f32 %v2999_v53, %v2969_v7  ;;  %3737 = vst [vmem:[%s4511_s9 + $0x40] sm:$0xff] %v3693_v52   ;;  %v2632_v23 = vadd.f32 %v2631_v31, %v2467_v47  ;;  %v2720_v39 = vpop.f32.mrf.mxu3  ;;  %vm2375_vm5 = vcmp.eq.s32.totalorder %v2127_v22, 0  ;;  %vm2777_vm6 = vcmp.eq.s32.totalorder %v2127_v22, 7 }
 0x2d1   : > { %v2471_v56 = vsel %vm2375_vm5, 0.0, %v4440_v24 }
 0x2d2   : > { %v2721_v1 = vadd.f32 %v2720_v39, %v2632_v23  ;;  %v1960_v39 = vadd.s32 184, %v4477_v54 }
 0x2d4   : > { %v2901_v46 = vadd.f32 %v2869_v0, %v2721_v1  ;;  %v1885_v1 = vrot.slane %v1656_v19, 1  ;;  %v2134_v6 = vand.u32 7, %v1960_v39 }
 0x2d6   : > { %v2932_v9 = vadd.f32 %v2931_v45, %v2901_v46  ;;  %v2970_v11 = vmul.f32 %v2901_v46, %v2901_v46  ;;  %v1571_v52 = vpop.f32.mrf.mxu0  ;;  %vm2376_vm7 = vcmp.eq.s32.totalorder %v2134_v6, 0  ;;  %vm2778_vm9 = vcmp.eq.s32.totalorder %v2134_v6, 7 }
 0x2d7   : > { %v2633_v61 = vpop.f32.mrf.mxu2  ;;  %v2472_v40 = vsel %vm2376_vm7, 0.0, %v4446_v62 }
 0x2d8   : > { %v3001_v49 = vadd.f32 %v3000_v60, %v2970_v11  ;;  %v2634_v17 = vadd.f32 %v2633_v61, %v2468_v43  ;;  %v2722_v3 = vpop.f32.mrf.mxu3  ;;  %v1660_v60 = vpop.f32.mrf.mxu1  ;;  %v1886_v61 = vsel %vm1839_vm2, %v1883_v34, %v1885_v1 }
 0x2d9   : > { %v2873_v4 = vsel %vm2777_vm6, 0.0, %v1886_v61 }
 0x2da   : > { %v2723_v41 = vadd.f32 %v2722_v3, %v2634_v17  ;;  %v1961_v3 = vadd.s32 192, %v4477_v54 }
 0x2dc   : > { %v2902_v51 = vadd.f32 %v2870_v58, %v2723_v41 }
 0x2de   : > { %v2933_v48 = vadd.f32 %v2932_v9, %v2902_v51  ;;  %v2971_v44 = vmul.f32 %v2902_v51, %v2902_v51  ;;  %v3698_v42 = vpack.c.bf16 %v2902_v51, %v2901_v46  ;;  %v1659_v9 = vadd.f32 %v1658_v16, %v1569_v59  ;;  %v1574_v28 = vpop.f32.mrf.mxu0 }
 0x2df   : > { %v2636_v26 = vpop.f32.mrf.mxu2  ;;  %v2141_v59 = vand.u32 7, %v1961_v3 }
 0x2e0   : > { %v3002_v63 = vadd.f32 %v3001_v49, %v2971_v44  ;;  %3738 = vst [vmem:[%s4511_s9 + $0x48] sm:$0xff] %v3698_v42   ;;  %v2637_v53 = vadd.f32 %v2636_v26, %v2469_v50  ;;  %v2725_v10 = vpop.f32.mrf.mxu3  ;;  %v1663_v17 = vpop.f32.mrf.mxu1  ;;  %v1887_v41 = vrot.slane %v1659_v9, 1  ;;  %v1964_v9 = vadd.s32 216, %v4477_v54 }
 0x2e1   : > { %vm2377_vm10 = vcmp.eq.s32.totalorder %v2141_v59, 0  ;;  %vm2779_vm11 = vcmp.eq.s32.totalorder %v2141_v59, 7 }
 0x2e2   : > { %v2726_v12 = vadd.f32 %v2725_v10, %v2637_v53  ;;  %v1888_v16 = vsel %vm1839_vm2, %v1885_v1, %v1887_v41  ;;  %v2473_v36 = vsel %vm2377_vm10, 0.0, %v4450_v13 }
 0x2e3   : > { %v2874_v37 = vsel %vm2778_vm9, 0.0, %v1888_v16 }
 0x2e4   : > { %v2903_v32 = vadd.f32 %v2871_v15, %v2726_v12 }
 0x2e6   : > { %v2934_v29 = vadd.f32 %v2933_v48, %v2903_v32  ;;  %v2972_v45 = vmul.f32 %v2903_v32, %v2903_v32  ;;  %v1661_v48 = vadd.f32 %v1660_v60, %v1571_v52  ;;  %v1576_v53 = vpop.f32.mrf.mxu0 }
 0x2e7   : > { %v2638_v7 = vpop.f32.mrf.mxu2 }
 0x2e8   : > { %v3003_v47 = vadd.f32 %v3002_v63, %v2972_v45  ;;  %v2639_v31 = vadd.f32 %v2638_v7, %v2470_v33  ;;  %v2727_v18 = vpop.f32.mrf.mxu3  ;;  %v1889_v63 = vrot.slane %v1661_v48, 1  ;;  %v1665_v10 = vpop.f32.mrf.mxu1  ;;  %v1965_v48 = vadd.s32 224, %v4477_v54 }
 0x2ea   : > { %v2728_v23 = vadd.f32 %v2727_v18, %v2639_v31  ;;  %v1890_v7 = vsel %vm1839_vm2, %v1887_v41, %v1889_v63 }
 0x2eb   : > { %v2875_v52 = vsel %vm2779_vm11, 0.0, %v1890_v7 }
 0x2ec   : > { %v2904_v0 = vadd.f32 %v2872_v27, %v2728_v23 }
 0x2ee   : > { %v2935_v20 = vadd.f32 %v2934_v29, %v2904_v0  ;;  %v2973_v8 = vmul.f32 %v2904_v0, %v2904_v0  ;;  %v3703_v35 = vpack.c.bf16 %v2904_v0, %v2903_v32  ;;  %v2148_v32 = vand.u32 7, %v1962_v57  ;;  %v1579_v18 = vpop.f32.mrf.mxu0 }
 0x2ef   : > { %v2641_v46 = vpop.f32.mrf.mxu2  ;;  %v1664_v29 = vadd.f32 %v1663_v17, %v1574_v28  ;;  %v1666_v0 = vadd.f32 %v1665_v10, %v1576_v53  ;;  %v2162_v17 = vand.u32 7, %v1964_v9 }
 0x2f0   : > { %v3004_v11 = vadd.f32 %v3003_v47, %v2973_v8  ;;  %3739 = vst [vmem:[%s4511_s9 + $0x50] sm:$0xff] %v3703_v35   ;;  %v2642_v43 = vadd.f32 %v2641_v46, %v2471_v56  ;;  %v2730_v25 = vpop.f32.mrf.mxu3  ;;  %v1963_v47 = vadd.s32 208, %v4477_v54  ;;  %vm2378_vm12 = vcmp.eq.s32.totalorder %v2148_v32, 0  ;;  %v1668_v23 = vpop.f32.mrf.mxu1 }
 0x2f1   : > { %v1891_v31 = vrot.slane %v1664_v29, 1  ;;  %v2474_v27 = vsel %vm2378_vm12, 0.0, %v4456_v30  ;;  %vm2780_vm13 = vcmp.eq.s32.totalorder %v2148_v32, 7  ;;  %vm2380_vm0 = vcmp.eq.s32.totalorder %v2162_v17, 0 }
 0x2f2   : > { %v2731_v49 = vadd.f32 %v2730_v25, %v2642_v43  ;;  %v2155_v1 = vand.u32 7, %v1963_v47  ;;  %vm2782_vm1 = vcmp.eq.s32.totalorder %v2162_v17, 7 }
 0x2f3   : > { %v1892_v35 = vsel %vm1839_vm2, %v1889_v63, %v1891_v31 }
 0x2f4   : > { %v2905_v58 = vadd.f32 %v2873_v4, %v2731_v49  ;;  %v2876_v6 = vsel %vm2780_vm13, 0.0, %v1892_v35  ;;  %vm2379_vm14 = vcmp.eq.s32.totalorder %v2155_v1, 0  ;;  %vm2781_vm15 = vcmp.eq.s32.totalorder %v2155_v1, 7 }
 0x2f5   : > { %v2475_v28 = vsel %vm2379_vm14, 0.0, %v4460_v2  ;;  %v1669_v4 = vadd.f32 %v1668_v23, %v1579_v18  ;;  %v1967_v23 = vadd.s32 240, %v4477_v54 }
 0x2f6   : > { %v2936_v24 = vadd.f32 %v2935_v20, %v2905_v58  ;;  %v2974_v21 = vmul.f32 %v2905_v58, %v2905_v58 }
 0x2f7   : > { %v2643_v51 = vpop.f32.mrf.mxu2 }
 0x2f8   : > { %v3005_v44 = vadd.f32 %v3004_v11, %v2974_v21  ;;  %v2644_v42 = vadd.f32 %v2643_v51, %v2472_v40  ;;  %v2732_v50 = vpop.f32.mrf.mxu3  ;;  %v1893_v11 = vrot.slane %v1666_v0, 1  ;;  %v1581_v21 = vpop.f32.mrf.mxu0 }
 0x2f9   : > { %v1670_v40 = vpop.f32.mrf.mxu1 }
 0x2fa   : > { %v2733_v26 = vadd.f32 %v2732_v50, %v2644_v42  ;;  %v2476_v50 = vsel %vm2380_vm0, 0.0, %v4466_v5  ;;  %v1671_v57 = vadd.f32 %v1670_v40, %v1581_v21 }
 0x2fc   : > { %v2906_v55 = vadd.f32 %v2874_v37, %v2733_v26  ;;  %v2169_v37 = vand.u32 7, %v1965_v48  ;;  %v1897_v32 = vrot.slane %v1671_v57, 1 }
 0x2fe   : > { %v2937_v62 = vadd.f32 %v2936_v24, %v2906_v55  ;;  %v2975_v12 = vmul.f32 %v2906_v55, %v2906_v55  ;;  %v3708_v15 = vpack.c.bf16 %v2906_v55, %v2905_v58  ;;  %v1894_v58 = vsel %vm1839_vm2, %v1891_v31, %v1893_v11 }
 0x2ff   : > { %v2646_v34 = vpop.f32.mrf.mxu2  ;;  %v2877_v59 = vsel %vm2781_vm15, 0.0, %v1894_v58  ;;  %vm2381_vm3 = vcmp.eq.s32.totalorder %v2169_v37, 0  ;;  %vm2783_vm4 = vcmp.eq.s32.totalorder %v2169_v37, 7  ;;  %v4736_v58 = vld [vmem:[#allocation8_spill] sm:$0xff] }
 0x300   : > { %v3006_v45 = vadd.f32 %v3005_v44, %v2975_v12  ;;  %3740 = vst [vmem:[%s4511_s9 + $0x58] sm:$0xff] %v3708_v15   ;;  %v2647_v33 = vadd.f32 %v2646_v34, %v2473_v36  ;;  %v2735_v22 = vpop.f32.mrf.mxu3  ;;  %v1895_v44 = vrot.slane %v1669_v4, 1  ;;  %v1584_v12 = vpop.f32.mrf.mxu0  ;;  %v1966_v34 = vadd.s32 232, %v4477_v54 }
 0x301   : > { %v1673_v15 = vpop.f32.mrf.mxu1  ;;  %v2477_v7 = vsel %vm2381_vm3, 0.0, %v4470_v38 }
 0x302   : > { %v2736_v19 = vadd.f32 %v2735_v22, %v2647_v33  ;;  %v1896_v55 = vsel %vm1839_vm2, %v1893_v11, %v1895_v44 }
 0x303   : > { %v2878_v36 = vsel %vm2782_vm1, 0.0, %v1896_v55 }
 0x304   : > { %v2907_v14 = vadd.f32 %v2875_v52, %v2736_v19  ;;  %v2176_v19 = vand.u32 7, %v1966_v34  ;;  %v1674_v52 = vadd.f32 %v1673_v15, %v1584_v12 }
 0x306   : > { %v2938_v60 = vadd.f32 %v2937_v62, %v2907_v14  ;;  %v2976_v13 = vmul.f32 %v2907_v14, %v2907_v14  ;;  %vm2382_vm5 = vcmp.eq.s32.totalorder %v2176_v19, 0  ;;  %vm2784_vm6 = vcmp.eq.s32.totalorder %v2176_v19, 7 }
 0x307   : > { %v2648_v39 = vpop.f32.mrf.mxu2 }
 0x308   : > { %v3007_v20 = vadd.f32 %v3006_v45, %v2976_v13  ;;  %v2649_v8 = vadd.f32 %v2648_v39, %v2474_v27  ;;  %v2737_v56 = vpop.f32.mrf.mxu3  ;;  %v1899_v27 = vrot.slane %v1674_v52, 1  ;;  %v1586_v1 = vpop.f32.mrf.mxu0 }
 0x309   : > { %v1675_v0 = vpop.f32.mrf.mxu1 }
 0x30a   : > { %v2738_v46 = vadd.f32 %v2737_v56, %v2649_v8  ;;  %v4735_v8 = vld [vmem:[#allocation7_spill] sm:$0xff] }
 0x30b   : > { %v2478_v35 = vsel %vm2382_vm5, 0.0, %v4735_v8 }
 0x30c   : > { %v2908_v43 = vadd.f32 %v2876_v6, %v2738_v46  ;;  %v2183_v46 = vand.u32 7, %v1967_v23  ;;  %v1676_v6 = vadd.f32 %v1675_v0, %v1586_v1 }
 0x30e   : > { %v2939_v61 = vadd.f32 %v2938_v60, %v2908_v43  ;;  %v2977_v25 = vmul.f32 %v2908_v43, %v2908_v43  ;;  %v3713_v30 = vpack.c.bf16 %v2908_v43, %v2907_v14  ;;  %v1898_v14 = vsel %vm1839_vm2, %v1895_v44, %v1897_v32 }
 0x30f   : > { %v2651_v49 = vpop.f32.mrf.mxu2  ;;  %v2879_v13 = vsel %vm2783_vm4, 0.0, %v1898_v14  ;;  %v1900_v43 = vsel %vm1839_vm2, %v1897_v32, %v1899_v27  ;;  %vm2383_vm7 = vcmp.eq.s32.totalorder %v2183_v46, 0  ;;  %vm2785_vm9 = vcmp.eq.s32.totalorder %v2183_v46, 7 }
 0x310   : > { %v3008_v3 = vadd.f32 %v3007_v20, %v2977_v25  ;;  %3741 = vst [vmem:[%s4511_s9 + $0x60] sm:$0xff] %v3713_v30   ;;  %v2652_v41 = vadd.f32 %v2651_v49, %v2475_v28  ;;  %v2740_v24 = vpop.f32.mrf.mxu3  ;;  %v2880_v30 = vsel %vm2784_vm6, 0.0, %v1900_v43  ;;  %v1968_v28 = vadd.s32 248, %v4477_v54 }
 0x311   : > { %v1901_v49 = vrot.slane %v1676_v6, 1 }
 0x312   : > { %v2741_v51 = vadd.f32 %v2740_v24, %v2652_v41  ;;  %v2479_v24 = vsel %vm2383_vm7, 0.0, %v4736_v58  ;;  %v2190_v40 = vand.u32 7, %v1968_v28 }
 0x313   : > { %v1902_v48 = vsel %vm1839_vm2, %v1899_v27, %v1901_v49 }
 0x314   : > { %v2909_v42 = vadd.f32 %v2877_v59, %v2741_v51  ;;  %vm2384_vm10 = vcmp.eq.s32.totalorder %v2190_v40, 0  ;;  %vm2786_vm11 = vcmp.eq.s32.totalorder %v2190_v40, 7 }
 0x316   : > { %v2940_v2 = vadd.f32 %v2939_v61, %v2909_v42  ;;  %v2978_v16 = vmul.f32 %v2909_v42, %v2909_v42 }
 0x317   : > { %v2653_v26 = vpop.f32.mrf.mxu2 }
 0x318   : > { %v3009_v63 = vadd.f32 %v3008_v3, %v2978_v16  ;;  %v2654_v53 = vadd.f32 %v2653_v26, %v2476_v50  ;;  %v2742_v10 = vpop.f32.mrf.mxu3  ;;  %v4737_v26 = vld [vmem:[#allocation9_spill] sm:$0xff] }
 0x319   : > { %v2480_v37 = vsel %vm2384_vm10, 0.0, %v4737_v26 }
 0x31a   : > { %v2743_v62 = vadd.f32 %v2742_v10, %v2654_v53 }
 0x31c   : > { %v2910_v29 = vadd.f32 %v2878_v36, %v2743_v62 }
 0x31e   : > { %v2941_v5 = vadd.f32 %v2940_v2, %v2910_v29  ;;  %v2979_v45 = vmul.f32 %v2910_v29, %v2910_v29  ;;  %v3718_v33 = vpack.c.bf16 %v2910_v29, %v2909_v42  ;;  %v2881_v2 = vsel %vm2785_vm9, 0.0, %v1902_v48 }
 0x31f   : > { %v2656_v22 = vpop.f32.mrf.mxu2 }
 0x320   : > { %v3010_v47 = vadd.f32 %v3009_v63, %v2979_v45  ;;  %3742 = vst [vmem:[%s4511_s9 + $0x68] sm:$0xff] %v3718_v33   ;;  %v2657_v31 = vadd.f32 %v2656_v22, %v2477_v7  ;;  %v2745_v18 = vpop.f32.mrf.mxu3  ;;  %v1935_v63 = vsel %vm1839_vm2, %v1901_v49, 0.0 }
 0x321   : > { %v2882_v12 = vsel %vm2786_vm11, 0.0, %v1935_v63 }
 0x322   : > { %v2746_v60 = vadd.f32 %v2745_v18, %v2657_v31 }
 0x324   : > { %v2911_v39 = vadd.f32 %v2879_v13, %v2746_v60 }
 0x326   : > { %v2942_v38 = vadd.f32 %v2941_v5, %v2911_v39  ;;  %v2980_v20 = vmul.f32 %v2911_v39, %v2911_v39 }
 0x327   : > { %v2658_v56 = vpop.f32.mrf.mxu2 }
 0x328   : > { %v3011_v9 = vadd.f32 %v3010_v47, %v2980_v20  ;;  %v2659_v11 = vadd.f32 %v2658_v56, %v2478_v35  ;;  %v2747_v61 = vpop.f32.mrf.mxu3 }
 0x32a   : > { %v2748_v25 = vadd.f32 %v2747_v61, %v2659_v11 }
 0x32c   : > { %v2912_v17 = vadd.f32 %v2880_v30, %v2748_v25 }
 0x32e   : > { %v2943_v4 = vadd.f32 %v2942_v38, %v2912_v17  ;;  %v2981_v3 = vmul.f32 %v2912_v17, %v2912_v17  ;;  %v3723_v41 = vpack.c.bf16 %v2912_v17, %v2911_v39 }
 0x32f   : > { %v2661_v21 = vpop.f32.mrf.mxu2 }
 0x330   : > { %v3012_v51 = vadd.f32 %v3011_v9, %v2981_v3  ;;  %3743 = vst [vmem:[%s4511_s9 + $0x70] sm:$0xff] %v3723_v41   ;;  %v2662_v59 = vadd.f32 %v2661_v21, %v2479_v24  ;;  %v2750_v44 = vpop.f32.mrf.mxu3 }
 0x332   : > { %v2751_v42 = vadd.f32 %v2750_v44, %v2662_v59 }
 0x334   : > { %v2913_v54 = vadd.f32 %v2881_v2, %v2751_v42 }
 0x336   : > { %v2944_v16 = vadd.f32 %v2943_v4, %v2913_v54  ;;  %v2982_v50 = vmul.f32 %v2913_v54, %v2913_v54 }
 0x337   : > { %v2663_v57 = vpop.f32.mrf.mxu2 }
 0x338   : > { %v3013_v53 = vadd.f32 %v3012_v51, %v2982_v50  ;;  %v2664_v55 = vadd.f32 %v2663_v57, %v2480_v37  ;;  %v2752_v10 = vpop.f32.mrf.mxu3 }
 0x33a   : > { %v2753_v62 = vadd.f32 %v2752_v10, %v2664_v55 }
 0x33c   : > { %v2914_v15 = vadd.f32 %v2882_v12, %v2753_v62 }
 0x33e   : > { %v2945_v36 = vadd.f32 %v2944_v16, %v2914_v15  ;;  %v2983_v34 = vmul.f32 %v2914_v15, %v2914_v15  ;;  %v3728_v32 = vpack.c.bf16 %v2914_v15, %v2913_v54 }
 0x340   : > { %v2946_v29 = vrot.slane %v2945_v36, 4  ;;  %v3014_v5 = vadd.f32 %v3013_v53, %v2983_v34  ;;  %3744 = vst [vmem:[%s4511_s9 + $0x78] sm:$0xff] %v3728_v32  }
 0x342   : > { %v2947_v45 = vadd.f32 %v2946_v29, %v2945_v36  ;;  %v3015_v33 = vrot.slane %v3014_v5, 4 }
 0x344   : > { %v2948_v7 = vrot.slane %v2947_v45, 2  ;;  %v3016_v22 = vadd.f32 %v3015_v33, %v3014_v5 }
 0x346   : > { %v2949_v19 = vadd.f32 %v2948_v7, %v2947_v45  ;;  %v3017_v52 = vrot.slane %v3016_v22, 2 }
 0x348   : > { %v2950_v47 = vrot.slane %v2949_v19, 1  ;;  %v3018_v31 = vadd.f32 %v3017_v52, %v3016_v22 }
 0x34a   : > { %v3019_v14 = vrot.slane %v3018_v31, 1  ;;  %v2951_v18 = vadd.f32 %v2950_v47, %v2949_v19 }
 0x34c   : > { %v3020_v60 = vadd.f32 %v3019_v14, %v3018_v31 }
 0x34e   : > { %v3021_v13 = vsel %vm1710_vm8, %v2951_v18, %v3020_v60 }
 0x34f   : > { %3022 = vst [vmem:[%s259_s11] sm:$0x3] %v3021_v13 }
 0x350 PF: > { %s17_s21 = sadd.s32 1, %s3759_s21  }
 0x351   : > { %p14_p5 = scmp.ge.s32.totalorder %s17_s21, 4  }
 0x353   :  { %16 = sbr.rel (!%p14_p5) target bundleno = 1 (0x1), region = 84 }

</bundles_post_ra>
